<compile_context>
chip_gen: v5e
topology: v5e:2x2
jax: 0.10.0
libtpu: 0.0.40
codegen_flags: <defaults>
</compile_context>

<pallas_src>
import functools

import jax
import jax.numpy as jnp
from jax import lax
from jax.experimental import pallas as pl
from jax.experimental.pallas import tpu as pltpu


def _round_up(x, m):
    return (x + m - 1) // m * m


# Dense-kernel tile caps (raised per review). With these caps every fc layer of
# this model is a single (M, N, K) block -> no padding, no scratch, no pl.when.
_MAX_TM, _MAX_TN, _MAX_TK = 512, 512, 2048
_VMEM_LIMIT = 32 * 1024 * 1024   # explicit: v5e's scoped default is only 16 MiB


# ---------------------------------------------------------------------------
# Fused stride-1 convolution kernel (im2col folded into the kernel)
# ---------------------------------------------------------------------------
def _conv_kernel(x_ref, w_ref, b_ref, o_ref, acc_ref, *, offsets, rows, activation):
    # x_ref: (R, Cin) flattened padded image slab (VMEM, fetched once per image)
    # w_ref: (k*k, Cin, Cout) resident packed weights
    for idx, off in enumerate(offsets):
        a = x_ref[pl.ds(off, rows), :]                       # shifted window
        part = jnp.dot(a, w_ref[idx], preferred_element_type=jnp.float32)
        if idx == 0:
            acc_ref[...] = part
        else:
            acc_ref[...] += part
    out = acc_ref[...] + b_ref[...]                          # f32 epilogue (v5e-safe)
    if activation == "relu":
        out = jnp.maximum(out, 0.0)
    elif activation == "sigmoid":
        out = jax.nn.sigmoid(out)
    o_ref[...] = out.astype(o_ref.dtype)


def _conv_stride1_fused(xp, w_packed, b_packed, k, Ho, Wo, activation, out_dtype):
    """Stride-1 kxk conv on an already spatially padded NHWC input.

    xp:       (N, Hp, Wp, Cin) with Hp = Ho+k-1, Wp = Wo+k-1
    w_packed: (k*k, Cin, Cout) bf16, position index = i*k + j
    b_packed: (1, Cout) f32
    returns   (N, Ho, Wo, Cout) in out_dtype
    """
    N, Hp, Wp, Ce = xp.shape
    assert Hp == Ho + k - 1 and Wp == Wo + k - 1
    assert w_packed.shape[0] == k * k and w_packed.shape[1] == Ce
    Cout = w_packed.shape[2]

    rows = _round_up(Ho * Wp, 8)                  # output rows computed per image
    R = _round_up((k - 1) * (Wp + 1) + rows, 8)   # input rows needed (window + halo)

    x2 = xp.astype(jnp.bfloat16).reshape(N, Hp * Wp, Ce)
    x2 = jnp.pad(x2, ((0, 0), (0, R - Hp * Wp), (0, 0)))
    offsets = tuple(i * Wp + j for i in range(k) for j in range(k))

    out = pl.pallas_call(
        functools.partial(_conv_kernel, offsets=offsets, rows=rows,
                          activation=activation),
        out_shape=jax.ShapeDtypeStruct((N, rows, Cout), out_dtype),
        grid=(N,),
        in_specs=[
            pl.BlockSpec((None, R, Ce), lambda n: (n, 0, 0)),       # per-image slab
            pl.BlockSpec((k * k, Ce, Cout), lambda n: (0, 0, 0)),   # resident weights
            pl.BlockSpec((1, Cout), lambda n: (0, 0)),
        ],
        out_specs=pl.BlockSpec((None, rows, Cout), lambda n: (n, 0, 0)),
        scratch_shapes=[pltpu.VMEM((rows, Cout), jnp.float32)],
        compiler_params=pltpu.CompilerParams(
            dimension_semantics=("parallel",),     # batch across TCs on v7x
            vmem_limit_bytes=_VMEM_LIMIT,
        ),
    )(x2, w_packed, b_packed)

    # Junk columns/rows (padded width + row round-up) are finite and sliced off.
    out = out[:, :Ho * Wp, :].reshape(N, Ho, Wp, Cout)[:, :, :Wo, :]
    return out


def conv2d_s2d(x, w_packed, b_packed, activation, out_dtype=jnp.bfloat16):
    """Conv2d(k=4, s=2, p=1) as pad + space-to-depth(2) + fused 2x2/s1 conv."""
    N, H, W, C = x.shape
    Ho, Wo = H // 2, W // 2
    xp = jnp.pad(x.astype(jnp.bfloat16), ((0, 0), (1, 1), (1, 1), (0, 0)))
    xs = (xp.reshape(N, Ho + 1, 2, Wo + 1, 2, C)
            .transpose(0, 1, 3, 2, 4, 5)
            .reshape(N, Ho + 1, Wo + 1, 4 * C))              # channels = (dy, dx, c)
    return _conv_stride1_fused(xs, w_packed, b_packed, 2, Ho, Wo,
                               activation, out_dtype)


def conv_transpose2d_fused(x, w_packed, b_packed, activation,
                           out_dtype=jnp.bfloat16):
    """ConvTranspose2d(k=4, s=2, p=1) as sub-pixel 3x3/s1 conv + pixel shuffle."""
    N, H, W, _ = x.shape
    Cout = w_packed.shape[2] // 4
    xp = jnp.pad(x.astype(jnp.bfloat16), ((0, 0), (1, 1), (1, 1), (0, 0)))
    y = _conv_stride1_fused(xp, w_packed, b_packed, 3, H, W, activation, out_dtype)
    # pixel shuffle of the 4 phases (performed in the narrow kernel out dtype)
    y = (y.reshape(N, H, W, 2, 2, Cout)
          .transpose(0, 1, 3, 2, 4, 5)
          .reshape(N, 2 * H, 2 * W, Cout))
    return y


# ---------------------------------------------------------------------------
# Dense (fully-connected) Pallas kernels
# ---------------------------------------------------------------------------
def _dense_onek_kernel(a_ref, b_ref, bias_ref, o_ref, *, activation):
    acc = jnp.dot(a_ref[...], b_ref[...], preferred_element_type=jnp.float32)
    acc = acc + bias_ref[...]
    if activation == "relu":
        acc = jnp.maximum(acc, 0.0)
    elif activation == "sigmoid":
        acc = jax.nn.sigmoid(acc)
    o_ref[...] = acc.astype(o_ref.dtype)


def _dense_multik_kernel(a_ref, b_ref, bias_ref, o_ref, acc_ref, *, activation):
    k = pl.program_id(2)

    @pl.when(k == 0)
    def _():
        acc_ref[...] = jnp.zeros_like(acc_ref)

    acc_ref[...] += jnp.dot(a_ref[...], b_ref[...],
                            preferred_element_type=jnp.float32)

    @pl.when(k == pl.num_programs(2) - 1)
    def _():
        acc = acc_ref[...] + bias_ref[...]
        if activation == "relu":
            acc = jnp.maximum(acc, 0.0)
        elif activation == "sigmoid":
            acc = jax.nn.sigmoid(acc)
        o_ref[...] = acc.astype(o_ref.dtype)


def _pad2d(x, rows, cols, dtype):
    if x.shape != (rows, cols):
        x = jnp.zeros((rows, cols), x.dtype).at[:x.shape[0], :x.shape[1]].set(x)
    return x.astype(dtype)


def pallas_dense(a, b, bias2d, activation="none", out_dtype=jnp.float32):
    """act(a @ b + bias).  a:[M,K]; b:[K,N] bf16 pre-packed; bias2d:[1,N] f32."""
    M, K = a.shape
    K2, N = b.shape
    assert K == K2 and bias2d.shape == (1, N)

    def pick(dim, cap):
        # full-dim single block (no padding) when it fits under the cap
        return (dim, dim) if dim <= cap else (cap, _round_up(dim, cap))

    tm, Mp = pick(M, _MAX_TM)
    tn, Np = pick(N, _MAX_TN)
    tk, Kp = pick(K, _MAX_TK)

    a_p = _pad2d(a, Mp, Kp, jnp.bfloat16)
    b_p = _pad2d(b, Kp, Np, jnp.bfloat16)          # no-op: pre-packed at init
    bias_p = _pad2d(bias2d, 1, Np, jnp.float32)    # no-op: pre-packed at init

    if Kp == tk:   # single K step: no accumulator scratch, no init/epilogue
        out = pl.pallas_call(
            functools.partial(_dense_onek_kernel, activation=activation),
            out_shape=jax.ShapeDtypeStruct((Mp, Np), out_dtype),
            grid=(Mp // tm, Np // tn),
            in_specs=[
                pl.BlockSpec((tm, tk), lambda i, j: (i, 0)),
                pl.BlockSpec((tk, tn), lambda i, j: (0, j)),
                pl.BlockSpec((1, tn), lambda i, j: (0, j)),
            ],
            out_specs=pl.BlockSpec((tm, tn), lambda i, j: (i, j)),
            compiler_params=pltpu.CompilerParams(
                dimension_semantics=("parallel", "parallel"),
                vmem_limit_bytes=_VMEM_LIMIT,
            ),
        )(a_p, b_p, bias_p)
    else:          # generic tiled fallback (not hit at this model's shapes)
        out = pl.pallas_call(
            functools.partial(_dense_multik_kernel, activation=activation),
            out_shape=jax.ShapeDtypeStruct((Mp, Np), out_dtype),
            grid=(Mp // tm, Np // tn, Kp // tk),
            in_specs=[
                pl.BlockSpec((tm, tk), lambda i, j, k: (i, k)),
                pl.BlockSpec((tk, tn), lambda i, j, k: (k, j)),
                pl.BlockSpec((1, tn), lambda i, j, k: (0, j)),
            ],
            out_specs=pl.BlockSpec((tm, tn), lambda i, j, k: (i, j)),
            scratch_shapes=[pltpu.VMEM((tm, tn), jnp.float32)],
            compiler_params=pltpu.CompilerParams(
                dimension_semantics=("parallel", "parallel", "arbitrary"),
                vmem_limit_bytes=_VMEM_LIMIT,
            ),
        )(a_p, b_p, bias_p)

    if (Mp, Np) != (M, N):
        out = out[:M, :N]
    return out


# ---------------------------------------------------------------------------
# VAE: parameter init (torch layouts), one-time packing, forward
# ---------------------------------------------------------------------------
def init_vae_params(key, latent_dim, image_size, num_channels):
    feat = 128 * (image_size[0] // 8) * (image_size[1] // 8)
    ks = jax.random.split(key, 18)
    w = lambda k, shape: 0.05 * jax.random.normal(k, shape, jnp.float32)
    p = {}
    p["enc1_w"] = w(ks[0], (32, num_channels, 4, 4)); p["enc1_b"] = w(ks[1], (32,))
    p["enc2_w"] = w(ks[2], (64, 32, 4, 4));           p["enc2_b"] = w(ks[3], (64,))
    p["enc3_w"] = w(ks[4], (128, 64, 4, 4));          p["enc3_b"] = w(ks[5], (128,))
    p["mu_w"]   = w(ks[6], (latent_dim, feat));       p["mu_b"]   = w(ks[7], (latent_dim,))
    p["lv_w"]   = w(ks[8], (latent_dim, feat));       p["lv_b"]   = w(ks[9], (latent_dim,))
    p["dec0_w"] = w(ks[10], (feat, latent_dim));      p["dec0_b"] = w(ks[11], (feat,))
    p["dec1_w"] = w(ks[12], (128, 64, 4, 4));         p["dec1_b"] = w(ks[13], (64,))
    p["dec2_w"] = w(ks[14], (64, 32, 4, 4));          p["dec2_b"] = w(ks[15], (32,))
    p["dec3_w"] = w(ks[16], (32, num_channels, 4, 4)); p["dec3_b"] = w(ks[17], (num_channels,))
    return p


def pack_vae_params(p, latent_dim, image_size):
    """One-time layout transforms so the forward pass does zero weight repacking."""
    H8, W8 = image_size[0] // 8, image_size[1] // 8
    feat = 128 * H8 * W8

    def enc_conv_w(w):   # torch (Cout,Cin,4,4) -> (4, 4*Cin, Cout) bf16, s2d layout
        Cout, Cin = w.shape[0], w.shape[1]
        w6 = w.transpose(2, 3, 1, 0).reshape(2, 2, 2, 2, Cin, Cout)   # (i,dy,j,dx,ci,co)
        w6 = w6.transpose(0, 2, 1, 3, 4, 5)                            # (i,j,dy,dx,ci,co)
        return w6.reshape(4, 4 * Cin, Cout).astype(jnp.bfloat16)

    def deconv_w(w):     # torch (Cin,Cout,4,4) -> sub-pixel packed (9, Cin, 4*Cout)
        Cin, Cout = w.shape[0], w.shape[1]
        wp = jnp.zeros((3, 3, Cin, 2, 2, Cout), jnp.float32)
        for a in range(2):
            for b in range(2):
                for dh in range(2):
                    for dw in range(2):
                        wp = wp.at[a + dh, b + dw, :, a, b, :].set(
                            w[:, :, 3 - a - 2 * dh, 3 - b - 2 * dw])
        return wp.reshape(9, Cin, 4 * Cout).astype(jnp.bfloat16)

    def fc_enc_w(w):     # torch [latent, feat(c,h,w)] -> [feat(h,w,c), latent]
        return (w.reshape(latent_dim, 128, H8, W8)
                 .transpose(0, 2, 3, 1).reshape(latent_dim, feat).T)

    bias_row = lambda b: b.reshape(1, -1).astype(jnp.float32)

    q = {}
    q["enc1_w"] = enc_conv_w(p["enc1_w"]); q["enc1_b"] = bias_row(p["enc1_b"])
    q["enc2_w"] = enc_conv_w(p["enc2_w"]); q["enc2_b"] = bias_row(p["enc2_b"])
    q["enc3_w"] = enc_conv_w(p["enc3_w"]); q["enc3_b"] = bias_row(p["enc3_b"])
    # fused mu / logvar matmul
    q["mulv_w"] = jnp.concatenate([fc_enc_w(p["mu_w"]), fc_enc_w(p["lv_w"])],
                                  axis=1).astype(jnp.bfloat16)
    q["mulv_b"] = bias_row(jnp.concatenate([p["mu_b"], p["lv_b"]]))
    # decoder fc: torch [feat(c,h,w), latent] -> [latent, feat(h,w,c)]
    q["dec0_w"] = (p["dec0_w"].reshape(128, H8, W8, latent_dim)
                   .transpose(1, 2, 0, 3).reshape(feat, latent_dim).T
                   ).astype(jnp.bfloat16)
    q["dec0_b"] = bias_row(p["dec0_b"].reshape(128, H8, W8)
                           .transpose(1, 2, 0).reshape(feat))
    q["dec1_w"] = deconv_w(p["dec1_w"]); q["dec1_b"] = bias_row(jnp.tile(p["dec1_b"], 4))
    q["dec2_w"] = deconv_w(p["dec2_w"]); q["dec2_b"] = bias_row(jnp.tile(p["dec2_b"], 4))
    q["dec3_w"] = deconv_w(p["dec3_w"]); q["dec3_b"] = bias_row(jnp.tile(p["dec3_b"], 4))
    return q


def vae_forward(packed, x_nchw, eps, image_size):
    N = x_nchw.shape[0]
    H8, W8 = image_size[0] // 8, image_size[1] // 8
    latent = eps.shape[1]

    x = jnp.transpose(x_nchw, (0, 2, 3, 1)).astype(jnp.bfloat16)   # NCHW -> NHWC once
    # encoder (bf16 activations end-to-end)
    h = conv2d_s2d(x, packed["enc1_w"], packed["enc1_b"], "relu")
    h = conv2d_s2d(h, packed["enc2_w"], packed["enc2_b"], "relu")
    h = conv2d_s2d(h, packed["enc3_w"], packed["enc3_b"], "relu")
    h_flat = h.reshape(N, -1)                                      # NHWC flatten
    mulv = pallas_dense(h_flat, packed["mulv_w"], packed["mulv_b"],
                        "none", jnp.float32)
    mu, logvar = mulv[:, :latent], mulv[:, latent:]
    # reparameterize: 2x16 elements -> plain jnp (kernel launch removed per review)
    z = mu + eps * jnp.exp(0.5 * logvar)
    # decoder
    d = pallas_dense(z, packed["dec0_w"], packed["dec0_b"], "relu", jnp.bfloat16)
    d = d.reshape(N, H8, W8, 128)
    d = conv_transpose2d_fused(d, packed["dec1_w"], packed["dec1_b"], "relu")
    d = conv_transpose2d_fused(d, packed["dec2_w"], packed["dec2_b"], "relu")
    xr = conv_transpose2d_fused(d, packed["dec3_w"], packed["dec3_b"], "sigmoid",
                                out_dtype=jnp.float32)
    x_recon = jnp.transpose(xr, (0, 3, 1, 2))                      # NHWC -> NCHW
    return x_recon, mu, logvar


# ---------------------------------------------------------------------------
# Pure-JAX reference (lax convs, torch layouts) for numerical validation
# ---------------------------------------------------------------------------
def vae_reference(params, x_nchw, eps, image_size):
    q = lambda w: w.astype(jnp.bfloat16).astype(jnp.float32)   # match kernel quant
    dn = ("NCHW", "OIHW", "NCHW")

    def conv(x, w, b):
        y = lax.conv_general_dilated(x, q(w), (2, 2), ((1, 1), (1, 1)),
                                     dimension_numbers=dn)
        return jax.nn.relu(y + b.reshape(1, -1, 1, 1))

    def deconv(x, w, b, act):
        wf = jnp.flip(q(w), (2, 3)).transpose(1, 0, 2, 3)      # -> OIHW, flipped
        y = lax.conv_general_dilated(x, wf, (1, 1), ((2, 2), (2, 2)),
                                     lhs_dilation=(2, 2), dimension_numbers=dn)
        y = y + b.reshape(1, -1, 1, 1)
        return jax.nn.relu(y) if act == "relu" else jax.nn.sigmoid(y)

    h = conv(x_nchw, params["enc1_w"], params["enc1_b"])
    h = conv(h, params["enc2_w"], params["enc2_b"])
    h = conv(h, params["enc3_w"], params["enc3_b"])
    hf = h.reshape(h.shape[0], -1)
    mu = hf @ q(params["mu_w"]).T + params["mu_b"]
    logvar = hf @ q(params["lv_w"]).T + params["lv_b"]
    z = mu + eps * jnp.exp(0.5 * logvar)
    d = jax.nn.relu(z @ q(params["dec0_w"]).T + params["dec0_b"])
    H8, W8 = image_size[0] // 8, image_size[1] // 8
    d = d.reshape(-1, 128, H8, W8)
    d = deconv(d, params["dec1_w"], params["dec1_b"], "relu")
    d = deconv(d, params["dec2_w"], params["dec2_b"], "relu")
    xr = deconv(d, params["dec3_w"], params["dec3_b"], "sigmoid")
    return xr, mu, logvar


if __name__ == "__main__":
    latent_dim = 16
    image_size = (16, 16)
    num_channels = 3
    batch = 2

    key = jax.random.PRNGKey(0)
    k_param, k_x, k_eps = jax.random.split(key, 3)
    params = init_vae_params(k_param, latent_dim, image_size, num_channels)
    packed = pack_vae_params(params, latent_dim, image_size)

    x = jax.random.normal(k_x, (batch, num_channels, *image_size), jnp.float32)
    eps = jax.random.normal(k_eps, (batch, latent_dim), jnp.float32)

    forward = jax.jit(functools.partial(vae_forward, image_size=image_size))
    x_recon, mu, logvar = forward(packed, x, eps)
    jax.block_until_ready((x_recon, mu, logvar))

    assert x_recon.shape == (batch, num_channels, *image_size)
    assert mu.shape == (batch, latent_dim)
    assert logvar.shape == (batch, latent_dim)
    assert bool(jnp.all(jnp.isfinite(x_recon)))

    # Numerical check (bf16 operands in the Pallas path -> loose tolerances).
    ref = jax.jit(functools.partial(vae_reference, image_size=image_size))
    xr_ref, mu_ref, lv_ref = ref(params, x, eps)
    d_mu = float(jnp.max(jnp.abs(mu - mu_ref)))
    d_lv = float(jnp.max(jnp.abs(logvar - lv_ref)))
    d_xr = float(jnp.max(jnp.abs(x_recon - xr_ref)))
    assert d_mu < 0.1 and d_lv < 0.1, ("mu/logvar mismatch", d_mu, d_lv)
    assert d_xr < 0.05, ("recon mismatch", d_xr)

    print("KERNEL_OK")
</pallas_src>

<mosaic_0001>
module attributes {stable_mosaic.version = 11 : i64} {
  func.func @_conv_kernel(%arg0: i32, %arg1: memref<1x88x12xbf16, #tpu.memory_space<vmem>>, %arg2: memref<4x12x32xbf16, #tpu.memory_space<vmem>>, %arg3: memref<1x32xf32, #tpu.memory_space<vmem>>, %arg4: memref<1x72x32xbf16, #tpu.memory_space<vmem>>, %arg5: memref<72x32xf32, #tpu.memory_space<vmem>>) attributes {dimension_semantics = [#tpu.dimension_semantics<parallel>], iteration_bounds = array<i64: 2>, scalar_prefetch = 0 : i64, scratch_operands = 1 : i64, tpu.core_type = #tpu.core_type<tc>, window_params = [{transform_indices = @transform_0, window_bounds = array<i64: 1, 88, 12>}, {pipeline_mode = #tpu.pipeline_mode<synchronous>, transform_indices = @transform_1, window_bounds = array<i64: 4, 12, 32>}, {pipeline_mode = #tpu.pipeline_mode<synchronous>, transform_indices = @transform_2, window_bounds = array<i64: 1, 32>}, {transform_indices = @transform_3, window_bounds = array<i64: 1, 72, 32>}]} {
    %c0 = arith.constant 0 : index
    %c0_0 = arith.constant 0 : index
    %c0_1 = arith.constant 0 : index
    %0 = vector.load %arg1[%c0, %c0_0, %c0_1] : memref<1x88x12xbf16, #tpu.memory_space<vmem>>, vector<1x72x12xbf16>
    %1 = vector.shape_cast %0 : vector<1x72x12xbf16> to vector<72x12xbf16>
    %c0_2 = arith.constant 0 : index
    %c0_3 = arith.constant 0 : index
    %c0_4 = arith.constant 0 : index
    %2 = vector.load %arg2[%c0_2, %c0_3, %c0_4] : memref<4x12x32xbf16, #tpu.memory_space<vmem>>, vector<1x12x32xbf16>
    %3 = vector.shape_cast %2 : vector<1x12x32xbf16> to vector<12x32xbf16>
    %cst = arith.constant dense<0.000000e+00> : vector<72x32xf32>
    %4 = tpu.matmul %1, %3, %cst {dimension_numbers = #tpu.dot_dimension_numbers<[1], [0], [0], [1], [0, 0, 1, 1], [], []>} : vector<72x12xbf16>, vector<12x32xbf16>, vector<72x32xf32> -> vector<72x32xf32>
    %c0_5 = arith.constant 0 : index
    %c0_6 = arith.constant 0 : index
    %5 = vector.load %arg5[%c0_5, %c0_6] : memref<72x32xf32, #tpu.memory_space<vmem>>, vector<72x32xf32>
    tpu.vector_store %arg5[%c0_5, %c0_6], %4 {strides = array<i32>} : memref<72x32xf32, #tpu.memory_space<vmem>>, vector<72x32xf32>,
    %c0_7 = arith.constant 0 : index
    %c1 = arith.constant 1 : index
    %c0_8 = arith.constant 0 : index
    %6 = vector.load %arg1[%c0_7, %c1, %c0_8] : memref<1x88x12xbf16, #tpu.memory_space<vmem>>, vector<1x72x12xbf16>
    %7 = vector.shape_cast %6 : vector<1x72x12xbf16> to vector<72x12xbf16>
    %c1_9 = arith.constant 1 : index
    %c0_10 = arith.constant 0 : index
    %c0_11 = arith.constant 0 : index
    %8 = vector.load %arg2[%c1_9, %c0_10, %c0_11] : memref<4x12x32xbf16, #tpu.memory_space<vmem>>, vector<1x12x32xbf16>
    %9 = vector.shape_cast %8 : vector<1x12x32xbf16> to vector<12x32xbf16>
    %cst_12 = arith.constant dense<0.000000e+00> : vector<72x32xf32>
    %10 = tpu.matmul %7, %9, %cst_12 {dimension_numbers = #tpu.dot_dimension_numbers<[1], [0], [0], [1], [0, 0, 1, 1], [], []>} : vector<72x12xbf16>, vector<12x32xbf16>, vector<72x32xf32> -> vector<72x32xf32>
    %c0_13 = arith.constant 0 : index
    %c0_14 = arith.constant 0 : index
    %11 = vector.load %arg5[%c0_13, %c0_14] : memref<72x32xf32, #tpu.memory_space<vmem>>, vector<72x32xf32>
    %12 = arith.addf %11, %10 : vector<72x32xf32>
    %c0_15 = arith.constant 0 : index
    %c0_16 = arith.constant 0 : index
    %13 = vector.load %arg5[%c0_15, %c0_16] : memref<72x32xf32, #tpu.memory_space<vmem>>, vector<72x32xf32>
    tpu.vector_store %arg5[%c0_15, %c0_16], %12 {strides = array<i32>} : memref<72x32xf32, #tpu.memory_space<vmem>>, vector<72x32xf32>,
    %c0_17 = arith.constant 0 : index
    %c9 = arith.constant 9 : index
    %c0_18 = arith.constant 0 : index
    %14 = vector.load %arg1[%c0_17, %c9, %c0_18] : memref<1x88x12xbf16, #tpu.memory_space<vmem>>, vector<1x72x12xbf16>
    %15 = vector.shape_cast %14 : vector<1x72x12xbf16> to vector<72x12xbf16>
    %c2 = arith.constant 2 : index
    %c0_19 = arith.constant 0 : index
    %c0_20 = arith.constant 0 : index
    %16 = vector.load %arg2[%c2, %c0_19, %c0_20] : memref<4x12x32xbf16, #tpu.memory_space<vmem>>, vector<1x12x32xbf16>
    %17 = vector.shape_cast %16 : vector<1x12x32xbf16> to vector<12x32xbf16>
    %cst_21 = arith.constant dense<0.000000e+00> : vector<72x32xf32>
    %18 = tpu.matmul %15, %17, %cst_21 {dimension_numbers = #tpu.dot_dimension_numbers<[1], [0], [0], [1], [0, 0, 1, 1], [], []>} : vector<72x12xbf16>, vector<12x32xbf16>, vector<72x32xf32> -> vector<72x32xf32>
    %c0_22 = arith.constant 0 : index
    %c0_23 = arith.constant 0 : index
    %19 = vector.load %arg5[%c0_22, %c0_23] : memref<72x32xf32, #tpu.memory_space<vmem>>, vector<72x32xf32>
    %20 = arith.addf %19, %18 : vector<72x32xf32>
    %c0_24 = arith.constant 0 : index
    %c0_25 = arith.constant 0 : index
    %21 = vector.load %arg5[%c0_24, %c0_25] : memref<72x32xf32, #tpu.memory_space<vmem>>, vector<72x32xf32>
    tpu.vector_store %arg5[%c0_24, %c0_25], %20 {strides = array<i32>} : memref<72x32xf32, #tpu.memory_space<vmem>>, vector<72x32xf32>,
    %c0_26 = arith.constant 0 : index
    %c10 = arith.constant 10 : index
    %c0_27 = arith.constant 0 : index
    %22 = vector.load %arg1[%c0_26, %c10, %c0_27] : memref<1x88x12xbf16, #tpu.memory_space<vmem>>, vector<1x72x12xbf16>
    %23 = vector.shape_cast %22 : vector<1x72x12xbf16> to vector<72x12xbf16>
    %c3 = arith.constant 3 : index
    %c0_28 = arith.constant 0 : index
    %c0_29 = arith.constant 0 : index
    %24 = vector.load %arg2[%c3, %c0_28, %c0_29] : memref<4x12x32xbf16, #tpu.memory_space<vmem>>, vector<1x12x32xbf16>
    %25 = vector.shape_cast %24 : vector<1x12x32xbf16> to vector<12x32xbf16>
    %cst_30 = arith.constant dense<0.000000e+00> : vector<72x32xf32>
    %26 = tpu.matmul %23, %25, %cst_30 {dimension_numbers = #tpu.dot_dimension_numbers<[1], [0], [0], [1], [0, 0, 1, 1], [], []>} : vector<72x12xbf16>, vector<12x32xbf16>, vector<72x32xf32> -> vector<72x32xf32>
    %c0_31 = arith.constant 0 : index
    %c0_32 = arith.constant 0 : index
    %27 = vector.load %arg5[%c0_31, %c0_32] : memref<72x32xf32, #tpu.memory_space<vmem>>, vector<72x32xf32>
    %28 = arith.addf %27, %26 : vector<72x32xf32>
    %c0_33 = arith.constant 0 : index
    %c0_34 = arith.constant 0 : index
    %29 = vector.load %arg5[%c0_33, %c0_34] : memref<72x32xf32, #tpu.memory_space<vmem>>, vector<72x32xf32>
    tpu.vector_store %arg5[%c0_33, %c0_34], %28 {strides = array<i32>} : memref<72x32xf32, #tpu.memory_space<vmem>>, vector<72x32xf32>,
    %c0_35 = arith.constant 0 : index
    %c0_36 = arith.constant 0 : index
    %30 = vector.load %arg5[%c0_35, %c0_36] : memref<72x32xf32, #tpu.memory_space<vmem>>, vector<72x32xf32>
    %c0_37 = arith.constant 0 : index
    %c0_38 = arith.constant 0 : index
    %31 = vector.load %arg3[%c0_37, %c0_38] : memref<1x32xf32, #tpu.memory_space<vmem>>, vector<1x32xf32>
    %32 = vector.broadcast %31 : vector<1x32xf32> to vector<72x32xf32>
    %33 = arith.addf %30, %32 : vector<72x32xf32>
    %cst_39 = arith.constant 0.000000e+00 : f32
    %34 = vector.broadcast %cst_39 : f32 to vector<72x32xf32>
    %35 = arith.maximumf %33, %34 : vector<72x32xf32>
    %36 = arith.truncf %35 : vector<72x32xf32> to vector<72x32xbf16>
    %c0_40 = arith.constant 0 : index
    %c0_41 = arith.constant 0 : index
    %c0_42 = arith.constant 0 : index
    %37 = vector.load %arg4[%c0_40, %c0_41, %c0_42] : memref<1x72x32xbf16, #tpu.memory_space<vmem>>, vector<1x72x32xbf16>
    %38 = vector.shape_cast %37 : vector<1x72x32xbf16> to vector<72x32xbf16>
    %39 = vector.shape_cast %36 : vector<72x32xbf16> to vector<1x72x32xbf16>
    tpu.vector_store %arg4[%c0_40, %c0_41, %c0_42], %39 {strides = array<i32>} : memref<1x72x32xbf16, #tpu.memory_space<vmem>>, vector<1x72x32xbf16>,
    return
  }
  func.func @transform_0(%arg0: i32) -> (i32, i32, i32) {
    %c0_i32 = arith.constant 0 : i32
    %c0_i32_0 = arith.constant 0 : i32
    %c0_i32_1 = arith.constant 0 : i32
    return %arg0, %c0_i32, %c0_i32_0 : i32, i32, i32
  }
  func.func @transform_1(%arg0: i32) -> (i32, i32, i32) {
    %c0_i32 = arith.constant 0 : i32
    %c0_i32_0 = arith.constant 0 : i32
    %c0_i32_1 = arith.constant 0 : i32
    %c0_i32_2 = arith.constant 0 : i32
    return %c0_i32, %c0_i32_0, %c0_i32_1 : i32, i32, i32
  }
  func.func @transform_2(%arg0: i32) -> (i32, i32) {
    %c0_i32 = arith.constant 0 : i32
    %c0_i32_0 = arith.constant 0 : i32
    %c0_i32_1 = arith.constant 0 : i32
    return %c0_i32, %c0_i32_0 : i32, i32
  }
  func.func @transform_3(%arg0: i32) -> (i32, i32, i32) {
    %c0_i32 = arith.constant 0 : i32
    %c0_i32_0 = arith.constant 0 : i32
    %c0_i32_1 = arith.constant 0 : i32
    return %arg0, %c0_i32, %c0_i32_0 : i32, i32, i32
  }
}

module attributes {stable_mosaic.version = 11 : i64} {
  func.func @_conv_kernel(%arg0: i32, %arg1: memref<1x32x128xbf16, #tpu.memory_space<vmem>>, %arg2: memref<4x128x64xbf16, #tpu.memory_space<vmem>>, %arg3: memref<1x64xf32, #tpu.memory_space<vmem>>, %arg4: memref<1x24x64xbf16, #tpu.memory_space<vmem>>, %arg5: memref<24x64xf32, #tpu.memory_space<vmem>>) attributes {dimension_semantics = [#tpu.dimension_semantics<parallel>], iteration_bounds = array<i64: 2>, scalar_prefetch = 0 : i64, scratch_operands = 1 : i64, tpu.core_type = #tpu.core_type<tc>, window_params = [{transform_indices = @transform_0, window_bounds = array<i64: 1, 32, 128>}, {pipeline_mode = #tpu.pipeline_mode<synchronous>, transform_indices = @transform_1, window_bounds = array<i64: 4, 128, 64>}, {pipeline_mode = #tpu.pipeline_mode<synchronous>, transform_indices = @transform_2, window_bounds = array<i64: 1, 64>}, {transform_indices = @transform_3, window_bounds = array<i64: 1, 24, 64>}]} {
    %c0 = arith.constant 0 : index
    %c0_0 = arith.constant 0 : index
    %c0_1 = arith.constant 0 : index
    %0 = vector.load %arg1[%c0, %c0_0, %c0_1] : memref<1x32x128xbf16, #tpu.memory_space<vmem>>, vector<1x24x128xbf16>
    %1 = vector.shape_cast %0 : vector<1x24x128xbf16> to vector<24x128xbf16>
    %c0_2 = arith.constant 0 : index
    %c0_3 = arith.constant 0 : index
    %c0_4 = arith.constant 0 : index
    %2 = vector.load %arg2[%c0_2, %c0_3, %c0_4] : memref<4x128x64xbf16, #tpu.memory_space<vmem>>, vector<1x128x64xbf16>
    %3 = vector.shape_cast %2 : vector<1x128x64xbf16> to vector<128x64xbf16>
    %cst = arith.constant dense<0.000000e+00> : vector<24x64xf32>
    %4 = tpu.matmul %1, %3, %cst {dimension_numbers = #tpu.dot_dimension_numbers<[1], [0], [0], [1], [0, 0, 1, 1], [], []>} : vector<24x128xbf16>, vector<128x64xbf16>, vector<24x64xf32> -> vector<24x64xf32>
    %c0_5 = arith.constant 0 : index
    %c0_6 = arith.constant 0 : index
    %5 = vector.load %arg5[%c0_5, %c0_6] : memref<24x64xf32, #tpu.memory_space<vmem>>, vector<24x64xf32>
    tpu.vector_store %arg5[%c0_5, %c0_6], %4 {strides = array<i32>} : memref<24x64xf32, #tpu.memory_space<vmem>>, vector<24x64xf32>,
    %c0_7 = arith.constant 0 : index
    %c1 = arith.constant 1 : index
    %c0_8 = arith.constant 0 : index
    %6 = vector.load %arg1[%c0_7, %c1, %c0_8] : memref<1x32x128xbf16, #tpu.memory_space<vmem>>, vector<1x24x128xbf16>
    %7 = vector.shape_cast %6 : vector<1x24x128xbf16> to vector<24x128xbf16>
    %c1_9 = arith.constant 1 : index
    %c0_10 = arith.constant 0 : index
    %c0_11 = arith.constant 0 : index
    %8 = vector.load %arg2[%c1_9, %c0_10, %c0_11] : memref<4x128x64xbf16, #tpu.memory_space<vmem>>, vector<1x128x64xbf16>
    %9 = vector.shape_cast %8 : vector<1x128x64xbf16> to vector<128x64xbf16>
    %cst_12 = arith.constant dense<0.000000e+00> : vector<24x64xf32>
    %10 = tpu.matmul %7, %9, %cst_12 {dimension_numbers = #tpu.dot_dimension_numbers<[1], [0], [0], [1], [0, 0, 1, 1], [], []>} : vector<24x128xbf16>, vector<128x64xbf16>, vector<24x64xf32> -> vector<24x64xf32>
    %c0_13 = arith.constant 0 : index
    %c0_14 = arith.constant 0 : index
    %11 = vector.load %arg5[%c0_13, %c0_14] : memref<24x64xf32, #tpu.memory_space<vmem>>, vector<24x64xf32>
    %12 = arith.addf %11, %10 : vector<24x64xf32>
    %c0_15 = arith.constant 0 : index
    %c0_16 = arith.constant 0 : index
    %13 = vector.load %arg5[%c0_15, %c0_16] : memref<24x64xf32, #tpu.memory_space<vmem>>, vector<24x64xf32>
    tpu.vector_store %arg5[%c0_15, %c0_16], %12 {strides = array<i32>} : memref<24x64xf32, #tpu.memory_space<vmem>>, vector<24x64xf32>,
    %c0_17 = arith.constant 0 : index
    %c5 = arith.constant 5 : index
    %c0_18 = arith.constant 0 : index
    %14 = vector.load %arg1[%c0_17, %c5, %c0_18] : memref<1x32x128xbf16, #tpu.memory_space<vmem>>, vector<1x24x128xbf16>
    %15 = vector.shape_cast %14 : vector<1x24x128xbf16> to vector<24x128xbf16>
    %c2 = arith.constant 2 : index
    %c0_19 = arith.constant 0 : index
    %c0_20 = arith.constant 0 : index
    %16 = vector.load %arg2[%c2, %c0_19, %c0_20] : memref<4x128x64xbf16, #tpu.memory_space<vmem>>, vector<1x128x64xbf16>
    %17 = vector.shape_cast %16 : vector<1x128x64xbf16> to vector<128x64xbf16>
    %cst_21 = arith.constant dense<0.000000e+00> : vector<24x64xf32>
    %18 = tpu.matmul %15, %17, %cst_21 {dimension_numbers = #tpu.dot_dimension_numbers<[1], [0], [0], [1], [0, 0, 1, 1], [], []>} : vector<24x128xbf16>, vector<128x64xbf16>, vector<24x64xf32> -> vector<24x64xf32>
    %c0_22 = arith.constant 0 : index
    %c0_23 = arith.constant 0 : index
    %19 = vector.load %arg5[%c0_22, %c0_23] : memref<24x64xf32, #tpu.memory_space<vmem>>, vector<24x64xf32>
    %20 = arith.addf %19, %18 : vector<24x64xf32>
    %c0_24 = arith.constant 0 : index
    %c0_25 = arith.constant 0 : index
    %21 = vector.load %arg5[%c0_24, %c0_25] : memref<24x64xf32, #tpu.memory_space<vmem>>, vector<24x64xf32>
    tpu.vector_store %arg5[%c0_24, %c0_25], %20 {strides = array<i32>} : memref<24x64xf32, #tpu.memory_space<vmem>>, vector<24x64xf32>,
    %c0_26 = arith.constant 0 : index
    %c6 = arith.constant 6 : index
    %c0_27 = arith.constant 0 : index
    %22 = vector.load %arg1[%c0_26, %c6, %c0_27] : memref<1x32x128xbf16, #tpu.memory_space<vmem>>, vector<1x24x128xbf16>
    %23 = vector.shape_cast %22 : vector<1x24x128xbf16> to vector<24x128xbf16>
    %c3 = arith.constant 3 : index
    %c0_28 = arith.constant 0 : index
    %c0_29 = arith.constant 0 : index
    %24 = vector.load %arg2[%c3, %c0_28, %c0_29] : memref<4x128x64xbf16, #tpu.memory_space<vmem>>, vector<1x128x64xbf16>
    %25 = vector.shape_cast %24 : vector<1x128x64xbf16> to vector<128x64xbf16>
    %cst_30 = arith.constant dense<0.000000e+00> : vector<24x64xf32>
    %26 = tpu.matmul %23, %25, %cst_30 {dimension_numbers = #tpu.dot_dimension_numbers<[1], [0], [0], [1], [0, 0, 1, 1], [], []>} : vector<24x128xbf16>, vector<128x64xbf16>, vector<24x64xf32> -> vector<24x64xf32>
    %c0_31 = arith.constant 0 : index
    %c0_32 = arith.constant 0 : index
    %27 = vector.load %arg5[%c0_31, %c0_32] : memref<24x64xf32, #tpu.memory_space<vmem>>, vector<24x64xf32>
    %28 = arith.addf %27, %26 : vector<24x64xf32>
    %c0_33 = arith.constant 0 : index
    %c0_34 = arith.constant 0 : index
    %29 = vector.load %arg5[%c0_33, %c0_34] : memref<24x64xf32, #tpu.memory_space<vmem>>, vector<24x64xf32>
    tpu.vector_store %arg5[%c0_33, %c0_34], %28 {strides = array<i32>} : memref<24x64xf32, #tpu.memory_space<vmem>>, vector<24x64xf32>,
    %c0_35 = arith.constant 0 : index
    %c0_36 = arith.constant 0 : index
    %30 = vector.load %arg5[%c0_35, %c0_36] : memref<24x64xf32, #tpu.memory_space<vmem>>, vector<24x64xf32>
    %c0_37 = arith.constant 0 : index
    %c0_38 = arith.constant 0 : index
    %31 = vector.load %arg3[%c0_37, %c0_38] : memref<1x64xf32, #tpu.memory_space<vmem>>, vector<1x64xf32>
    %32 = vector.broadcast %31 : vector<1x64xf32> to vector<24x64xf32>
    %33 = arith.addf %30, %32 : vector<24x64xf32>
    %cst_39 = arith.constant 0.000000e+00 : f32
    %34 = vector.broadcast %cst_39 : f32 to vector<24x64xf32>
    %35 = arith.maximumf %33, %34 : vector<24x64xf32>
    %36 = arith.truncf %35 : vector<24x64xf32> to vector<24x64xbf16>
    %c0_40 = arith.constant 0 : index
    %c0_41 = arith.constant 0 : index
    %c0_42 = arith.constant 0 : index
    %37 = vector.load %arg4[%c0_40, %c0_41, %c0_42] : memref<1x24x64xbf16, #tpu.memory_space<vmem>>, vector<1x24x64xbf16>
    %38 = vector.shape_cast %37 : vector<1x24x64xbf16> to vector<24x64xbf16>
    %39 = vector.shape_cast %36 : vector<24x64xbf16> to vector<1x24x64xbf16>
    tpu.vector_store %arg4[%c0_40, %c0_41, %c0_42], %39 {strides = array<i32>} : memref<1x24x64xbf16, #tpu.memory_space<vmem>>, vector<1x24x64xbf16>,
    return
  }
  func.func @transform_0(%arg0: i32) -> (i32, i32, i32) {
    %c0_i32 = arith.constant 0 : i32
    %c0_i32_0 = arith.constant 0 : i32
    %c0_i32_1 = arith.constant 0 : i32
    return %arg0, %c0_i32, %c0_i32_0 : i32, i32, i32
  }
  func.func @transform_1(%arg0: i32) -> (i32, i32, i32) {
    %c0_i32 = arith.constant 0 : i32
    %c0_i32_0 = arith.constant 0 : i32
    %c0_i32_1 = arith.constant 0 : i32
    %c0_i32_2 = arith.constant 0 : i32
    return %c0_i32, %c0_i32_0, %c0_i32_1 : i32, i32, i32
  }
  func.func @transform_2(%arg0: i32) -> (i32, i32) {
    %c0_i32 = arith.constant 0 : i32
    %c0_i32_0 = arith.constant 0 : i32
    %c0_i32_1 = arith.constant 0 : i32
    return %c0_i32, %c0_i32_0 : i32, i32
  }
  func.func @transform_3(%arg0: i32) -> (i32, i32, i32) {
    %c0_i32 = arith.constant 0 : i32
    %c0_i32_0 = arith.constant 0 : i32
    %c0_i32_1 = arith.constant 0 : i32
    return %arg0, %c0_i32, %c0_i32_0 : i32, i32, i32
  }
}

module attributes {stable_mosaic.version = 11 : i64} {
  func.func @_conv_kernel(%arg0: i32, %arg1: memref<1x16x256xbf16, #tpu.memory_space<vmem>>, %arg2: memref<4x256x128xbf16, #tpu.memory_space<vmem>>, %arg3: memref<1x128xf32, #tpu.memory_space<vmem>>, %arg4: memref<1x8x128xbf16, #tpu.memory_space<vmem>>, %arg5: memref<8x128xf32, #tpu.memory_space<vmem>>) attributes {dimension_semantics = [#tpu.dimension_semantics<parallel>], iteration_bounds = array<i64: 2>, scalar_prefetch = 0 : i64, scratch_operands = 1 : i64, tpu.core_type = #tpu.core_type<tc>, window_params = [{transform_indices = @transform_0, window_bounds = array<i64: 1, 16, 256>}, {pipeline_mode = #tpu.pipeline_mode<synchronous>, transform_indices = @transform_1, window_bounds = array<i64: 4, 256, 128>}, {pipeline_mode = #tpu.pipeline_mode<synchronous>, transform_indices = @transform_2, window_bounds = array<i64: 1, 128>}, {transform_indices = @transform_3, window_bounds = array<i64: 1, 8, 128>}]} {
    %c0 = arith.constant 0 : index
    %c0_0 = arith.constant 0 : index
    %c0_1 = arith.constant 0 : index
    %0 = vector.load %arg1[%c0, %c0_0, %c0_1] : memref<1x16x256xbf16, #tpu.memory_space<vmem>>, vector<1x8x256xbf16>
    %1 = vector.shape_cast %0 : vector<1x8x256xbf16> to vector<8x256xbf16>
    %c0_2 = arith.constant 0 : index
    %c0_3 = arith.constant 0 : index
    %c0_4 = arith.constant 0 : index
    %2 = vector.load %arg2[%c0_2, %c0_3, %c0_4] : memref<4x256x128xbf16, #tpu.memory_space<vmem>>, vector<1x256x128xbf16>
    %3 = vector.shape_cast %2 : vector<1x256x128xbf16> to vector<256x128xbf16>
    %cst = arith.constant dense<0.000000e+00> : vector<8x128xf32>
    %4 = tpu.matmul %1, %3, %cst {dimension_numbers = #tpu.dot_dimension_numbers<[1], [0], [0], [1], [0, 0, 1, 1], [], []>} : vector<8x256xbf16>, vector<256x128xbf16>, vector<8x128xf32> -> vector<8x128xf32>
    %c0_5 = arith.constant 0 : index
    %c0_6 = arith.constant 0 : index
    %5 = vector.load %arg5[%c0_5, %c0_6] : memref<8x128xf32, #tpu.memory_space<vmem>>, vector<8x128xf32>
    tpu.vector_store %arg5[%c0_5, %c0_6], %4 {strides = array<i32>} : memref<8x128xf32, #tpu.memory_space<vmem>>, vector<8x128xf32>,
    %c0_7 = arith.constant 0 : index
    %c1 = arith.constant 1 : index
    %c0_8 = arith.constant 0 : index
    %6 = vector.load %arg1[%c0_7, %c1, %c0_8] : memref<1x16x256xbf16, #tpu.memory_space<vmem>>, vector<1x8x256xbf16>
    %7 = vector.shape_cast %6 : vector<1x8x256xbf16> to vector<8x256xbf16>
    %c1_9 = arith.constant 1 : index
    %c0_10 = arith.constant 0 : index
    %c0_11 = arith.constant 0 : index
    %8 = vector.load %arg2[%c1_9, %c0_10, %c0_11] : memref<4x256x128xbf16, #tpu.memory_space<vmem>>, vector<1x256x128xbf16>
    %9 = vector.shape_cast %8 : vector<1x256x128xbf16> to vector<256x128xbf16>
    %cst_12 = arith.constant dense<0.000000e+00> : vector<8x128xf32>
    %10 = tpu.matmul %7, %9, %cst_12 {dimension_numbers = #tpu.dot_dimension_numbers<[1], [0], [0], [1], [0, 0, 1, 1], [], []>} : vector<8x256xbf16>, vector<256x128xbf16>, vector<8x128xf32> -> vector<8x128xf32>
    %c0_13 = arith.constant 0 : index
    %c0_14 = arith.constant 0 : index
    %11 = vector.load %arg5[%c0_13, %c0_14] : memref<8x128xf32, #tpu.memory_space<vmem>>, vector<8x128xf32>
    %12 = arith.addf %11, %10 : vector<8x128xf32>
    %c0_15 = arith.constant 0 : index
    %c0_16 = arith.constant 0 : index
    %13 = vector.load %arg5[%c0_15, %c0_16] : memref<8x128xf32, #tpu.memory_space<vmem>>, vector<8x128xf32>
    tpu.vector_store %arg5[%c0_15, %c0_16], %12 {strides = array<i32>} : memref<8x128xf32, #tpu.memory_space<vmem>>, vector<8x128xf32>,
    %c0_17 = arith.constant 0 : index
    %c3 = arith.constant 3 : index
    %c0_18 = arith.constant 0 : index
    %14 = vector.load %arg1[%c0_17, %c3, %c0_18] : memref<1x16x256xbf16, #tpu.memory_space<vmem>>, vector<1x8x256xbf16>
    %15 = vector.shape_cast %14 : vector<1x8x256xbf16> to vector<8x256xbf16>
    %c2 = arith.constant 2 : index
    %c0_19 = arith.constant 0 : index
    %c0_20 = arith.constant 0 : index
    %16 = vector.load %arg2[%c2, %c0_19, %c0_20] : memref<4x256x128xbf16, #tpu.memory_space<vmem>>, vector<1x256x128xbf16>
    %17 = vector.shape_cast %16 : vector<1x256x128xbf16> to vector<256x128xbf16>
    %cst_21 = arith.constant dense<0.000000e+00> : vector<8x128xf32>
    %18 = tpu.matmul %15, %17, %cst_21 {dimension_numbers = #tpu.dot_dimension_numbers<[1], [0], [0], [1], [0, 0, 1, 1], [], []>} : vector<8x256xbf16>, vector<256x128xbf16>, vector<8x128xf32> -> vector<8x128xf32>
    %c0_22 = arith.constant 0 : index
    %c0_23 = arith.constant 0 : index
    %19 = vector.load %arg5[%c0_22, %c0_23] : memref<8x128xf32, #tpu.memory_space<vmem>>, vector<8x128xf32>
    %20 = arith.addf %19, %18 : vector<8x128xf32>
    %c0_24 = arith.constant 0 : index
    %c0_25 = arith.constant 0 : index
    %21 = vector.load %arg5[%c0_24, %c0_25] : memref<8x128xf32, #tpu.memory_space<vmem>>, vector<8x128xf32>
    tpu.vector_store %arg5[%c0_24, %c0_25], %20 {strides = array<i32>} : memref<8x128xf32, #tpu.memory_space<vmem>>, vector<8x128xf32>,
    %c0_26 = arith.constant 0 : index
    %c4 = arith.constant 4 : index
    %c0_27 = arith.constant 0 : index
    %22 = vector.load %arg1[%c0_26, %c4, %c0_27] : memref<1x16x256xbf16, #tpu.memory_space<vmem>>, vector<1x8x256xbf16>
    %23 = vector.shape_cast %22 : vector<1x8x256xbf16> to vector<8x256xbf16>
    %c3_28 = arith.constant 3 : index
    %c0_29 = arith.constant 0 : index
    %c0_30 = arith.constant 0 : index
    %24 = vector.load %arg2[%c3_28, %c0_29, %c0_30] : memref<4x256x128xbf16, #tpu.memory_space<vmem>>, vector<1x256x128xbf16>
    %25 = vector.shape_cast %24 : vector<1x256x128xbf16> to vector<256x128xbf16>
    %cst_31 = arith.constant dense<0.000000e+00> : vector<8x128xf32>
    %26 = tpu.matmul %23, %25, %cst_31 {dimension_numbers = #tpu.dot_dimension_numbers<[1], [0], [0], [1], [0, 0, 1, 1], [], []>} : vector<8x256xbf16>, vector<256x128xbf16>, vector<8x128xf32> -> vector<8x128xf32>
    %c0_32 = arith.constant 0 : index
    %c0_33 = arith.constant 0 : index
    %27 = vector.load %arg5[%c0_32, %c0_33] : memref<8x128xf32, #tpu.memory_space<vmem>>, vector<8x128xf32>
    %28 = arith.addf %27, %26 : vector<8x128xf32>
    %c0_34 = arith.constant 0 : index
    %c0_35 = arith.constant 0 : index
    %29 = vector.load %arg5[%c0_34, %c0_35] : memref<8x128xf32, #tpu.memory_space<vmem>>, vector<8x128xf32>
    tpu.vector_store %arg5[%c0_34, %c0_35], %28 {strides = array<i32>} : memref<8x128xf32, #tpu.memory_space<vmem>>, vector<8x128xf32>,
    %c0_36 = arith.constant 0 : index
    %c0_37 = arith.constant 0 : index
    %30 = vector.load %arg5[%c0_36, %c0_37] : memref<8x128xf32, #tpu.memory_space<vmem>>, vector<8x128xf32>
    %c0_38 = arith.constant 0 : index
    %c0_39 = arith.constant 0 : index
    %31 = vector.load %arg3[%c0_38, %c0_39] : memref<1x128xf32, #tpu.memory_space<vmem>>, vector<1x128xf32>
    %32 = vector.broadcast %31 : vector<1x128xf32> to vector<8x128xf32>
    %33 = arith.addf %30, %32 : vector<8x128xf32>
    %cst_40 = arith.constant 0.000000e+00 : f32
    %34 = vector.broadcast %cst_40 : f32 to vector<8x128xf32>
    %35 = arith.maximumf %33, %34 : vector<8x128xf32>
    %36 = arith.truncf %35 : vector<8x128xf32> to vector<8x128xbf16>
    %c0_41 = arith.constant 0 : index
    %c0_42 = arith.constant 0 : index
    %c0_43 = arith.constant 0 : index
    %37 = vector.load %arg4[%c0_41, %c0_42, %c0_43] : memref<1x8x128xbf16, #tpu.memory_space<vmem>>, vector<1x8x128xbf16>
    %38 = vector.shape_cast %37 : vector<1x8x128xbf16> to vector<8x128xbf16>
    %39 = vector.shape_cast %36 : vector<8x128xbf16> to vector<1x8x128xbf16>
    tpu.vector_store %arg4[%c0_41, %c0_42, %c0_43], %39 {strides = array<i32>} : memref<1x8x128xbf16, #tpu.memory_space<vmem>>, vector<1x8x128xbf16>,
    return
  }
  func.func @transform_0(%arg0: i32) -> (i32, i32, i32) {
    %c0_i32 = arith.constant 0 : i32
    %c0_i32_0 = arith.constant 0 : i32
    %c0_i32_1 = arith.constant 0 : i32
    return %arg0, %c0_i32, %c0_i32_0 : i32, i32, i32
  }
  func.func @transform_1(%arg0: i32) -> (i32, i32, i32) {
    %c0_i32 = arith.constant 0 : i32
    %c0_i32_0 = arith.constant 0 : i32
    %c0_i32_1 = arith.constant 0 : i32
    %c0_i32_2 = arith.constant 0 : i32
    return %c0_i32, %c0_i32_0, %c0_i32_1 : i32, i32, i32
  }
  func.func @transform_2(%arg0: i32) -> (i32, i32) {
    %c0_i32 = arith.constant 0 : i32
    %c0_i32_0 = arith.constant 0 : i32
    %c0_i32_1 = arith.constant 0 : i32
    return %c0_i32, %c0_i32_0 : i32, i32
  }
  func.func @transform_3(%arg0: i32) -> (i32, i32, i32) {
    %c0_i32 = arith.constant 0 : i32
    %c0_i32_0 = arith.constant 0 : i32
    %c0_i32_1 = arith.constant 0 : i32
    return %arg0, %c0_i32, %c0_i32_0 : i32, i32, i32
  }
}

module attributes {stable_mosaic.version = 11 : i64} {
  func.func @_dense_onek_kernel(%arg0: i32, %arg1: i32, %arg2: memref<2x512xbf16, #tpu.memory_space<vmem>>, %arg3: memref<512x32xbf16, #tpu.memory_space<vmem>>, %arg4: memref<1x32xf32, #tpu.memory_space<vmem>>, %arg5: memref<2x32xf32, #tpu.memory_space<vmem>>) attributes {dimension_semantics = [#tpu.dimension_semantics<parallel>, #tpu.dimension_semantics<parallel>], iteration_bounds = array<i64: 1, 1>, scalar_prefetch = 0 : i64, scratch_operands = 0 : i64, tpu.core_type = #tpu.core_type<tc>, window_params = [{transform_indices = @transform_0, window_bounds = array<i64: 2, 512>}, {transform_indices = @transform_1, window_bounds = array<i64: 512, 32>}, {transform_indices = @transform_2, window_bounds = array<i64: 1, 32>}, {transform_indices = @transform_3, window_bounds = array<i64: 2, 32>}]} {
    %c0 = arith.constant 0 : index
    %c0_0 = arith.constant 0 : index
    %0 = vector.load %arg2[%c0, %c0_0] : memref<2x512xbf16, #tpu.memory_space<vmem>>, vector<2x512xbf16>
    %c0_1 = arith.constant 0 : index
    %c0_2 = arith.constant 0 : index
    %1 = vector.load %arg3[%c0_1, %c0_2] : memref<512x32xbf16, #tpu.memory_space<vmem>>, vector<512x32xbf16>
    %cst = arith.constant dense<0.000000e+00> : vector<2x32xf32>
    %2 = tpu.matmul %0, %1, %cst {dimension_numbers = #tpu.dot_dimension_numbers<[1], [0], [0], [1], [0, 0, 1, 1], [], []>} : vector<2x512xbf16>, vector<512x32xbf16>, vector<2x32xf32> -> vector<2x32xf32>
    %c0_3 = arith.constant 0 : index
    %c0_4 = arith.constant 0 : index
    %3 = vector.load %arg4[%c0_3, %c0_4] : memref<1x32xf32, #tpu.memory_space<vmem>>, vector<1x32xf32>
    %4 = vector.broadcast %3 : vector<1x32xf32> to vector<2x32xf32>
    %5 = arith.addf %2, %4 : vector<2x32xf32>
    %c0_5 = arith.constant 0 : index
    %c0_6 = arith.constant 0 : index
    %6 = vector.load %arg5[%c0_5, %c0_6] : memref<2x32xf32, #tpu.memory_space<vmem>>, vector<2x32xf32>
    tpu.vector_store %arg5[%c0_5, %c0_6], %5 {strides = array<i32>} : memref<2x32xf32, #tpu.memory_space<vmem>>, vector<2x32xf32>,
    return
  }
  func.func @transform_0(%arg0: i32, %arg1: i32) -> (i32, i32) {
    %c0_i32 = arith.constant 0 : i32
    %c0_i32_0 = arith.constant 0 : i32
    return %arg0, %c0_i32 : i32, i32
  }
  func.func @transform_1(%arg0: i32, %arg1: i32) -> (i32, i32) {
    %c0_i32 = arith.constant 0 : i32
    %c0_i32_0 = arith.constant 0 : i32
    return %c0_i32, %arg1 : i32, i32
  }
  func.func @transform_2(%arg0: i32, %arg1: i32) -> (i32, i32) {
    %c0_i32 = arith.constant 0 : i32
    %c0_i32_0 = arith.constant 0 : i32
    return %c0_i32, %arg1 : i32, i32
  }
  func.func @transform_3(%arg0: i32, %arg1: i32) -> (i32, i32) {
    %c0_i32 = arith.constant 0 : i32
    return %arg0, %arg1 : i32, i32
  }
}

module attributes {stable_mosaic.version = 11 : i64} {
  func.func @_dense_onek_kernel(%arg0: i32, %arg1: i32, %arg2: memref<2x16xbf16, #tpu.memory_space<vmem>>, %arg3: memref<16x512xbf16, #tpu.memory_space<vmem>>, %arg4: memref<1x512xf32, #tpu.memory_space<vmem>>, %arg5: memref<2x512xbf16, #tpu.memory_space<vmem>>) attributes {dimension_semantics = [#tpu.dimension_semantics<parallel>, #tpu.dimension_semantics<parallel>], iteration_bounds = array<i64: 1, 1>, scalar_prefetch = 0 : i64, scratch_operands = 0 : i64, tpu.core_type = #tpu.core_type<tc>, window_params = [{transform_indices = @transform_0, window_bounds = array<i64: 2, 16>}, {transform_indices = @transform_1, window_bounds = array<i64: 16, 512>}, {transform_indices = @transform_2, window_bounds = array<i64: 1, 512>}, {transform_indices = @transform_3, window_bounds = array<i64: 2, 512>}]} {
    %c0 = arith.constant 0 : index
    %c0_0 = arith.constant 0 : index
    %0 = vector.load %arg2[%c0, %c0_0] : memref<2x16xbf16, #tpu.memory_space<vmem>>, vector<2x16xbf16>
    %c0_1 = arith.constant 0 : index
    %c0_2 = arith.constant 0 : index
    %1 = vector.load %arg3[%c0_1, %c0_2] : memref<16x512xbf16, #tpu.memory_space<vmem>>, vector<16x512xbf16>
    %cst = arith.constant dense<0.000000e+00> : vector<2x512xf32>
    %2 = tpu.matmul %0, %1, %cst {dimension_numbers = #tpu.dot_dimension_numbers<[1], [0], [0], [1], [0, 0, 1, 1], [], []>} : vector<2x16xbf16>, vector<16x512xbf16>, vector<2x512xf32> -> vector<2x512xf32>
    %c0_3 = arith.constant 0 : index
    %c0_4 = arith.constant 0 : index
    %3 = vector.load %arg4[%c0_3, %c0_4] : memref<1x512xf32, #tpu.memory_space<vmem>>, vector<1x512xf32>
    %4 = vector.broadcast %3 : vector<1x512xf32> to vector<2x512xf32>
    %5 = arith.addf %2, %4 : vector<2x512xf32>
    %cst_5 = arith.constant 0.000000e+00 : f32
    %6 = vector.broadcast %cst_5 : f32 to vector<2x512xf32>
    %7 = arith.maximumf %5, %6 : vector<2x512xf32>
    %8 = arith.truncf %7 : vector<2x512xf32> to vector<2x512xbf16>
    %c0_6 = arith.constant 0 : index
    %c0_7 = arith.constant 0 : index
    %9 = vector.load %arg5[%c0_6, %c0_7] : memref<2x512xbf16, #tpu.memory_space<vmem>>, vector<2x512xbf16>
    tpu.vector_store %arg5[%c0_6, %c0_7], %8 {strides = array<i32>} : memref<2x512xbf16, #tpu.memory_space<vmem>>, vector<2x512xbf16>,
    return
  }
  func.func @transform_0(%arg0: i32, %arg1: i32) -> (i32, i32) {
    %c0_i32 = arith.constant 0 : i32
    %c0_i32_0 = arith.constant 0 : i32
    return %arg0, %c0_i32 : i32, i32
  }
  func.func @transform_1(%arg0: i32, %arg1: i32) -> (i32, i32) {
    %c0_i32 = arith.constant 0 : i32
    %c0_i32_0 = arith.constant 0 : i32
    return %c0_i32, %arg1 : i32, i32
  }
  func.func @transform_2(%arg0: i32, %arg1: i32) -> (i32, i32) {
    %c0_i32 = arith.constant 0 : i32
    %c0_i32_0 = arith.constant 0 : i32
    return %c0_i32, %arg1 : i32, i32
  }
  func.func @transform_3(%arg0: i32, %arg1: i32) -> (i32, i32) {
    %c0_i32 = arith.constant 0 : i32
    return %arg0, %arg1 : i32, i32
  }
}

module attributes {stable_mosaic.version = 11 : i64} {
  func.func @_conv_kernel(%arg0: i32, %arg1: memref<1x24x128xbf16, #tpu.memory_space<vmem>>, %arg2: memref<9x128x256xbf16, #tpu.memory_space<vmem>>, %arg3: memref<1x256xf32, #tpu.memory_space<vmem>>, %arg4: memref<1x8x256xbf16, #tpu.memory_space<vmem>>, %arg5: memref<8x256xf32, #tpu.memory_space<vmem>>) attributes {dimension_semantics = [#tpu.dimension_semantics<parallel>], iteration_bounds = array<i64: 2>, scalar_prefetch = 0 : i64, scratch_operands = 1 : i64, tpu.core_type = #tpu.core_type<tc>, window_params = [{transform_indices = @transform_0, window_bounds = array<i64: 1, 24, 128>}, {pipeline_mode = #tpu.pipeline_mode<synchronous>, transform_indices = @transform_1, window_bounds = array<i64: 9, 128, 256>}, {pipeline_mode = #tpu.pipeline_mode<synchronous>, transform_indices = @transform_2, window_bounds = array<i64: 1, 256>}, {transform_indices = @transform_3, window_bounds = array<i64: 1, 8, 256>}]} {
    %c0 = arith.constant 0 : index
    %c0_0 = arith.constant 0 : index
    %c0_1 = arith.constant 0 : index
    %0 = vector.load %arg1[%c0, %c0_0, %c0_1] : memref<1x24x128xbf16, #tpu.memory_space<vmem>>, vector<1x8x128xbf16>
    %1 = vector.shape_cast %0 : vector<1x8x128xbf16> to vector<8x128xbf16>
    %c0_2 = arith.constant 0 : index
    %c0_3 = arith.constant 0 : index
    %c0_4 = arith.constant 0 : index
    %2 = vector.load %arg2[%c0_2, %c0_3, %c0_4] : memref<9x128x256xbf16, #tpu.memory_space<vmem>>, vector<1x128x256xbf16>
    %3 = vector.shape_cast %2 : vector<1x128x256xbf16> to vector<128x256xbf16>
    %cst = arith.constant dense<0.000000e+00> : vector<8x256xf32>
    %4 = tpu.matmul %1, %3, %cst {dimension_numbers = #tpu.dot_dimension_numbers<[1], [0], [0], [1], [0, 0, 1, 1], [], []>} : vector<8x128xbf16>, vector<128x256xbf16>, vector<8x256xf32> -> vector<8x256xf32>
    %c0_5 = arith.constant 0 : index
    %c0_6 = arith.constant 0 : index
    %5 = vector.load %arg5[%c0_5, %c0_6] : memref<8x256xf32, #tpu.memory_space<vmem>>, vector<8x256xf32>
    tpu.vector_store %arg5[%c0_5, %c0_6], %4 {strides = array<i32>} : memref<8x256xf32, #tpu.memory_space<vmem>>, vector<8x256xf32>,
    %c0_7 = arith.constant 0 : index
    %c1 = arith.constant 1 : index
    %c0_8 = arith.constant 0 : index
    %6 = vector.load %arg1[%c0_7, %c1, %c0_8] : memref<1x24x128xbf16, #tpu.memory_space<vmem>>, vector<1x8x128xbf16>
    %7 = vector.shape_cast %6 : vector<1x8x128xbf16> to vector<8x128xbf16>
    %c1_9 = arith.constant 1 : index
    %c0_10 = arith.constant 0 : index
    %c0_11 = arith.constant 0 : index
    %8 = vector.load %arg2[%c1_9, %c0_10, %c0_11] : memref<9x128x256xbf16, #tpu.memory_space<vmem>>, vector<1x128x256xbf16>
    %9 = vector.shape_cast %8 : vector<1x128x256xbf16> to vector<128x256xbf16>
    %cst_12 = arith.constant dense<0.000000e+00> : vector<8x256xf32>
    %10 = tpu.matmul %7, %9, %cst_12 {dimension_numbers = #tpu.dot_dimension_numbers<[1], [0], [0], [1], [0, 0, 1, 1], [], []>} : vector<8x128xbf16>, vector<128x256xbf16>, vector<8x256xf32> -> vector<8x256xf32>
    %c0_13 = arith.constant 0 : index
    %c0_14 = arith.constant 0 : index
    %11 = vector.load %arg5[%c0_13, %c0_14] : memref<8x256xf32, #tpu.memory_space<vmem>>, vector<8x256xf32>
    %12 = arith.addf %11, %10 : vector<8x256xf32>
    %c0_15 = arith.constant 0 : index
    %c0_16 = arith.constant 0 : index
    %13 = vector.load %arg5[%c0_15, %c0_16] : memref<8x256xf32, #tpu.memory_space<vmem>>, vector<8x256xf32>
    tpu.vector_store %arg5[%c0_15, %c0_16], %12 {strides = array<i32>} : memref<8x256xf32, #tpu.memory_space<vmem>>, vector<8x256xf32>,
    %c0_17 = arith.constant 0 : index
    %c2 = arith.constant 2 : index
    %c0_18 = arith.constant 0 : index
    %14 = vector.load %arg1[%c0_17, %c2, %c0_18] : memref<1x24x128xbf16, #tpu.memory_space<vmem>>, vector<1x8x128xbf16>
    %15 = vector.shape_cast %14 : vector<1x8x128xbf16> to vector<8x128xbf16>
    %c2_19 = arith.constant 2 : index
    %c0_20 = arith.constant 0 : index
    %c0_21 = arith.constant 0 : index
    %16 = vector.load %arg2[%c2_19, %c0_20, %c0_21] : memref<9x128x256xbf16, #tpu.memory_space<vmem>>, vector<1x128x256xbf16>
    %17 = vector.shape_cast %16 : vector<1x128x256xbf16> to vector<128x256xbf16>
    %cst_22 = arith.constant dense<0.000000e+00> : vector<8x256xf32>
    %18 = tpu.matmul %15, %17, %cst_22 {dimension_numbers = #tpu.dot_dimension_numbers<[1], [0], [0], [1], [0, 0, 1, 1], [], []>} : vector<8x128xbf16>, vector<128x256xbf16>, vector<8x256xf32> -> vector<8x256xf32>
    %c0_23 = arith.constant 0 : index
    %c0_24 = arith.constant 0 : index
    %19 = vector.load %arg5[%c0_23, %c0_24] : memref<8x256xf32, #tpu.memory_space<vmem>>, vector<8x256xf32>
    %20 = arith.addf %19, %18 : vector<8x256xf32>
    %c0_25 = arith.constant 0 : index
    %c0_26 = arith.constant 0 : index
    %21 = vector.load %arg5[%c0_25, %c0_26] : memref<8x256xf32, #tpu.memory_space<vmem>>, vector<8x256xf32>
    tpu.vector_store %arg5[%c0_25, %c0_26], %20 {strides = array<i32>} : memref<8x256xf32, #tpu.memory_space<vmem>>, vector<8x256xf32>,
    %c0_27 = arith.constant 0 : index
    %c4 = arith.constant 4 : index
    %c0_28 = arith.constant 0 : index
    %22 = vector.load %arg1[%c0_27, %c4, %c0_28] : memref<1x24x128xbf16, #tpu.memory_space<vmem>>, vector<1x8x128xbf16>
    %23 = vector.shape_cast %22 : vector<1x8x128xbf16> to vector<8x128xbf16>
    %c3 = arith.constant 3 : index
    %c0_29 = arith.constant 0 : index
    %c0_30 = arith.constant 0 : index
    %24 = vector.load %arg2[%c3, %c0_29, %c0_30] : memref<9x128x256xbf16, #tpu.memory_space<vmem>>, vector<1x128x256xbf16>
    %25 = vector.shape_cast %24 : vector<1x128x256xbf16> to vector<128x256xbf16>
    %cst_31 = arith.constant dense<0.000000e+00> : vector<8x256xf32>
    %26 = tpu.matmul %23, %25, %cst_31 {dimension_numbers = #tpu.dot_dimension_numbers<[1], [0], [0], [1], [0, 0, 1, 1], [], []>} : vector<8x128xbf16>, vector<128x256xbf16>, vector<8x256xf32> -> vector<8x256xf32>
    %c0_32 = arith.constant 0 : index
    %c0_33 = arith.constant 0 : index
    %27 = vector.load %arg5[%c0_32, %c0_33] : memref<8x256xf32, #tpu.memory_space<vmem>>, vector<8x256xf32>
    %28 = arith.addf %27, %26 : vector<8x256xf32>
    %c0_34 = arith.constant 0 : index
    %c0_35 = arith.constant 0 : index
    %29 = vector.load %arg5[%c0_34, %c0_35] : memref<8x256xf32, #tpu.memory_space<vmem>>, vector<8x256xf32>
    tpu.vector_store %arg5[%c0_34, %c0_35], %28 {strides = array<i32>} : memref<8x256xf32, #tpu.memory_space<vmem>>, vector<8x256xf32>,
    %c0_36 = arith.constant 0 : index
    %c5 = arith.constant 5 : index
    %c0_37 = arith.constant 0 : index
    %30 = vector.load %arg1[%c0_36, %c5, %c0_37] : memref<1x24x128xbf16, #tpu.memory_space<vmem>>, vector<1x8x128xbf16>
    %31 = vector.shape_cast %30 : vector<1x8x128xbf16> to vector<8x128xbf16>
    %c4_38 = arith.constant 4 : index
    %c0_39 = arith.constant 0 : index
    %c0_40 = arith.constant 0 : index
    %32 = vector.load %arg2[%c4_38, %c0_39, %c0_40] : memref<9x128x256xbf16, #tpu.memory_space<vmem>>, vector<1x128x256xbf16>
    %33 = vector.shape_cast %32 : vector<1x128x256xbf16> to vector<128x256xbf16>
    %cst_41 = arith.constant dense<0.000000e+00> : vector<8x256xf32>
    %34 = tpu.matmul %31, %33, %cst_41 {dimension_numbers = #tpu.dot_dimension_numbers<[1], [0], [0], [1], [0, 0, 1, 1], [], []>} : vector<8x128xbf16>, vector<128x256xbf16>, vector<8x256xf32> -> vector<8x256xf32>
    %c0_42 = arith.constant 0 : index
    %c0_43 = arith.constant 0 : index
    %35 = vector.load %arg5[%c0_42, %c0_43] : memref<8x256xf32, #tpu.memory_space<vmem>>, vector<8x256xf32>
    %36 = arith.addf %35, %34 : vector<8x256xf32>
    %c0_44 = arith.constant 0 : index
    %c0_45 = arith.constant 0 : index
    %37 = vector.load %arg5[%c0_44, %c0_45] : memref<8x256xf32, #tpu.memory_space<vmem>>, vector<8x256xf32>
    tpu.vector_store %arg5[%c0_44, %c0_45], %36 {strides = array<i32>} : memref<8x256xf32, #tpu.memory_space<vmem>>, vector<8x256xf32>,
    %c0_46 = arith.constant 0 : index
    %c6 = arith.constant 6 : index
    %c0_47 = arith.constant 0 : index
    %38 = vector.load %arg1[%c0_46, %c6, %c0_47] : memref<1x24x128xbf16, #tpu.memory_space<vmem>>, vector<1x8x128xbf16>
    %39 = vector.shape_cast %38 : vector<1x8x128xbf16> to vector<8x128xbf16>
    %c5_48 = arith.constant 5 : index
    %c0_49 = arith.constant 0 : index
    %c0_50 = arith.constant 0 : index
    %40 = vector.load %arg2[%c5_48, %c0_49, %c0_50] : memref<9x128x256xbf16, #tpu.memory_space<vmem>>, vector<1x128x256xbf16>
    %41 = vector.shape_cast %40 : vector<1x128x256xbf16> to vector<128x256xbf16>
    %cst_51 = arith.constant dense<0.000000e+00> : vector<8x256xf32>
    %42 = tpu.matmul %39, %41, %cst_51 {dimension_numbers = #tpu.dot_dimension_numbers<[1], [0], [0], [1], [0, 0, 1, 1], [], []>} : vector<8x128xbf16>, vector<128x256xbf16>, vector<8x256xf32> -> vector<8x256xf32>
    %c0_52 = arith.constant 0 : index
    %c0_53 = arith.constant 0 : index
    %43 = vector.load %arg5[%c0_52, %c0_53] : memref<8x256xf32, #tpu.memory_space<vmem>>, vector<8x256xf32>
    %44 = arith.addf %43, %42 : vector<8x256xf32>
    %c0_54 = arith.constant 0 : index
    %c0_55 = arith.constant 0 : index
    %45 = vector.load %arg5[%c0_54, %c0_55] : memref<8x256xf32, #tpu.memory_space<vmem>>, vector<8x256xf32>
    tpu.vector_store %arg5[%c0_54, %c0_55], %44 {strides = array<i32>} : memref<8x256xf32, #tpu.memory_space<vmem>>, vector<8x256xf32>,
    %c0_56 = arith.constant 0 : index
    %c8 = arith.constant 8 : index
    %c0_57 = arith.constant 0 : index
    %46 = vector.load %arg1[%c0_56, %c8, %c0_57] : memref<1x24x128xbf16, #tpu.memory_space<vmem>>, vector<1x8x128xbf16>
    %47 = vector.shape_cast %46 : vector<1x8x128xbf16> to vector<8x128xbf16>
    %c6_58 = arith.constant 6 : index
    %c0_59 = arith.constant 0 : index
    %c0_60 = arith.constant 0 : index
    %48 = vector.load %arg2[%c6_58, %c0_59, %c0_60] : memref<9x128x256xbf16, #tpu.memory_space<vmem>>, vector<1x128x256xbf16>
    %49 = vector.shape_cast %48 : vector<1x128x256xbf16> to vector<128x256xbf16>
    %cst_61 = arith.constant dense<0.000000e+00> : vector<8x256xf32>
    %50 = tpu.matmul %47, %49, %cst_61 {dimension_numbers = #tpu.dot_dimension_numbers<[1], [0], [0], [1], [0, 0, 1, 1], [], []>} : vector<8x128xbf16>, vector<128x256xbf16>, vector<8x256xf32> -> vector<8x256xf32>
    %c0_62 = arith.constant 0 : index
    %c0_63 = arith.constant 0 : index
    %51 = vector.load %arg5[%c0_62, %c0_63] : memref<8x256xf32, #tpu.memory_space<vmem>>, vector<8x256xf32>
    %52 = arith.addf %51, %50 : vector<8x256xf32>
    %c0_64 = arith.constant 0 : index
    %c0_65 = arith.constant 0 : index
    %53 = vector.load %arg5[%c0_64, %c0_65] : memref<8x256xf32, #tpu.memory_space<vmem>>, vector<8x256xf32>
    tpu.vector_store %arg5[%c0_64, %c0_65], %52 {strides = array<i32>} : memref<8x256xf32, #tpu.memory_space<vmem>>, vector<8x256xf32>,
    %c0_66 = arith.constant 0 : index
    %c9 = arith.constant 9 : index
    %c0_67 = arith.constant 0 : index
    %54 = vector.load %arg1[%c0_66, %c9, %c0_67] : memref<1x24x128xbf16, #tpu.memory_space<vmem>>, vector<1x8x128xbf16>
    %55 = vector.shape_cast %54 : vector<1x8x128xbf16> to vector<8x128xbf16>
    %c7 = arith.constant 7 : index
    %c0_68 = arith.constant 0 : index
    %c0_69 = arith.constant 0 : index
    %56 = vector.load %arg2[%c7, %c0_68, %c0_69] : memref<9x128x256xbf16, #tpu.memory_space<vmem>>, vector<1x128x256xbf16>
    %57 = vector.shape_cast %56 : vector<1x128x256xbf16> to vector<128x256xbf16>
    %cst_70 = arith.constant dense<0.000000e+00> : vector<8x256xf32>
    %58 = tpu.matmul %55, %57, %cst_70 {dimension_numbers = #tpu.dot_dimension_numbers<[1], [0], [0], [1], [0, 0, 1, 1], [], []>} : vector<8x128xbf16>, vector<128x256xbf16>, vector<8x256xf32> -> vector<8x256xf32>
    %c0_71 = arith.constant 0 : index
    %c0_72 = arith.constant 0 : index
    %59 = vector.load %arg5[%c0_71, %c0_72] : memref<8x256xf32, #tpu.memory_space<vmem>>, vector<8x256xf32>
    %60 = arith.addf %59, %58 : vector<8x256xf32>
    %c0_73 = arith.constant 0 : index
    %c0_74 = arith.constant 0 : index
    %61 = vector.load %arg5[%c0_73, %c0_74] : memref<8x256xf32, #tpu.memory_space<vmem>>, vector<8x256xf32>
    tpu.vector_store %arg5[%c0_73, %c0_74], %60 {strides = array<i32>} : memref<8x256xf32, #tpu.memory_space<vmem>>, vector<8x256xf32>,
    %c0_75 = arith.constant 0 : index
    %c10 = arith.constant 10 : index
    %c0_76 = arith.constant 0 : index
    %62 = vector.load %arg1[%c0_75, %c10, %c0_76] : memref<1x24x128xbf16, #tpu.memory_space<vmem>>, vector<1x8x128xbf16>
    %63 = vector.shape_cast %62 : vector<1x8x128xbf16> to vector<8x128xbf16>
    %c8_77 = arith.constant 8 : index
    %c0_78 = arith.constant 0 : index
    %c0_79 = arith.constant 0 : index
    %64 = vector.load %arg2[%c8_77, %c0_78, %c0_79] : memref<9x128x256xbf16, #tpu.memory_space<vmem>>, vector<1x128x256xbf16>
    %65 = vector.shape_cast %64 : vector<1x128x256xbf16> to vector<128x256xbf16>
    %cst_80 = arith.constant dense<0.000000e+00> : vector<8x256xf32>
    %66 = tpu.matmul %63, %65, %cst_80 {dimension_numbers = #tpu.dot_dimension_numbers<[1], [0], [0], [1], [0, 0, 1, 1], [], []>} : vector<8x128xbf16>, vector<128x256xbf16>, vector<8x256xf32> -> vector<8x256xf32>
    %c0_81 = arith.constant 0 : index
    %c0_82 = arith.constant 0 : index
    %67 = vector.load %arg5[%c0_81, %c0_82] : memref<8x256xf32, #tpu.memory_space<vmem>>, vector<8x256xf32>
    %68 = arith.addf %67, %66 : vector<8x256xf32>
    %c0_83 = arith.constant 0 : index
    %c0_84 = arith.constant 0 : index
    %69 = vector.load %arg5[%c0_83, %c0_84] : memref<8x256xf32, #tpu.memory_space<vmem>>, vector<8x256xf32>
    tpu.vector_store %arg5[%c0_83, %c0_84], %68 {strides = array<i32>} : memref<8x256xf32, #tpu.memory_space<vmem>>, vector<8x256xf32>,
    %c0_85 = arith.constant 0 : index
    %c0_86 = arith.constant 0 : index
    %70 = vector.load %arg5[%c0_85, %c0_86] : memref<8x256xf32, #tpu.memory_space<vmem>>, vector<8x256xf32>
    %c0_87 = arith.constant 0 : index
    %c0_88 = arith.constant 0 : index
    %71 = vector.load %arg3[%c0_87, %c0_88] : memref<1x256xf32, #tpu.memory_space<vmem>>, vector<1x256xf32>
    %72 = vector.broadcast %71 : vector<1x256xf32> to vector<8x256xf32>
    %73 = arith.addf %70, %72 : vector<8x256xf32>
    %cst_89 = arith.constant 0.000000e+00 : f32
    %74 = vector.broadcast %cst_89 : f32 to vector<8x256xf32>
    %75 = arith.maximumf %73, %74 : vector<8x256xf32>
    %76 = arith.truncf %75 : vector<8x256xf32> to vector<8x256xbf16>
    %c0_90 = arith.constant 0 : index
    %c0_91 = arith.constant 0 : index
    %c0_92 = arith.constant 0 : index
    %77 = vector.load %arg4[%c0_90, %c0_91, %c0_92] : memref<1x8x256xbf16, #tpu.memory_space<vmem>>, vector<1x8x256xbf16>
    %78 = vector.shape_cast %77 : vector<1x8x256xbf16> to vector<8x256xbf16>
    %79 = vector.shape_cast %76 : vector<8x256xbf16> to vector<1x8x256xbf16>
    tpu.vector_store %arg4[%c0_90, %c0_91, %c0_92], %79 {strides = array<i32>} : memref<1x8x256xbf16, #tpu.memory_space<vmem>>, vector<1x8x256xbf16>,
    return
  }
  func.func @transform_0(%arg0: i32) -> (i32, i32, i32) {
    %c0_i32 = arith.constant 0 : i32
    %c0_i32_0 = arith.constant 0 : i32
    %c0_i32_1 = arith.constant 0 : i32
    return %arg0, %c0_i32, %c0_i32_0 : i32, i32, i32
  }
  func.func @transform_1(%arg0: i32) -> (i32, i32, i32) {
    %c0_i32 = arith.constant 0 : i32
    %c0_i32_0 = arith.constant 0 : i32
    %c0_i32_1 = arith.constant 0 : i32
    %c0_i32_2 = arith.constant 0 : i32
    return %c0_i32, %c0_i32_0, %c0_i32_1 : i32, i32, i32
  }
  func.func @transform_2(%arg0: i32) -> (i32, i32) {
    %c0_i32 = arith.constant 0 : i32
    %c0_i32_0 = arith.constant 0 : i32
    %c0_i32_1 = arith.constant 0 : i32
    return %c0_i32, %c0_i32_0 : i32, i32
  }
  func.func @transform_3(%arg0: i32) -> (i32, i32, i32) {
    %c0_i32 = arith.constant 0 : i32
    %c0_i32_0 = arith.constant 0 : i32
    %c0_i32_1 = arith.constant 0 : i32
    return %arg0, %c0_i32, %c0_i32_0 : i32, i32, i32
  }
}

module attributes {stable_mosaic.version = 11 : i64} {
  func.func @_conv_kernel(%arg0: i32, %arg1: memref<1x40x64xbf16, #tpu.memory_space<vmem>>, %arg2: memref<9x64x128xbf16, #tpu.memory_space<vmem>>, %arg3: memref<1x128xf32, #tpu.memory_space<vmem>>, %arg4: memref<1x24x128xbf16, #tpu.memory_space<vmem>>, %arg5: memref<24x128xf32, #tpu.memory_space<vmem>>) attributes {dimension_semantics = [#tpu.dimension_semantics<parallel>], iteration_bounds = array<i64: 2>, scalar_prefetch = 0 : i64, scratch_operands = 1 : i64, tpu.core_type = #tpu.core_type<tc>, window_params = [{transform_indices = @transform_0, window_bounds = array<i64: 1, 40, 64>}, {pipeline_mode = #tpu.pipeline_mode<synchronous>, transform_indices = @transform_1, window_bounds = array<i64: 9, 64, 128>}, {pipeline_mode = #tpu.pipeline_mode<synchronous>, transform_indices = @transform_2, window_bounds = array<i64: 1, 128>}, {transform_indices = @transform_3, window_bounds = array<i64: 1, 24, 128>}]} {
    %c0 = arith.constant 0 : index
    %c0_0 = arith.constant 0 : index
    %c0_1 = arith.constant 0 : index
    %0 = vector.load %arg1[%c0, %c0_0, %c0_1] : memref<1x40x64xbf16, #tpu.memory_space<vmem>>, vector<1x24x64xbf16>
    %1 = vector.shape_cast %0 : vector<1x24x64xbf16> to vector<24x64xbf16>
    %c0_2 = arith.constant 0 : index
    %c0_3 = arith.constant 0 : index
    %c0_4 = arith.constant 0 : index
    %2 = vector.load %arg2[%c0_2, %c0_3, %c0_4] : memref<9x64x128xbf16, #tpu.memory_space<vmem>>, vector<1x64x128xbf16>
    %3 = vector.shape_cast %2 : vector<1x64x128xbf16> to vector<64x128xbf16>
    %cst = arith.constant dense<0.000000e+00> : vector<24x128xf32>
    %4 = tpu.matmul %1, %3, %cst {dimension_numbers = #tpu.dot_dimension_numbers<[1], [0], [0], [1], [0, 0, 1, 1], [], []>} : vector<24x64xbf16>, vector<64x128xbf16>, vector<24x128xf32> -> vector<24x128xf32>
    %c0_5 = arith.constant 0 : index
    %c0_6 = arith.constant 0 : index
    %5 = vector.load %arg5[%c0_5, %c0_6] : memref<24x128xf32, #tpu.memory_space<vmem>>, vector<24x128xf32>
    tpu.vector_store %arg5[%c0_5, %c0_6], %4 {strides = array<i32>} : memref<24x128xf32, #tpu.memory_space<vmem>>, vector<24x128xf32>,
    %c0_7 = arith.constant 0 : index
    %c1 = arith.constant 1 : index
    %c0_8 = arith.constant 0 : index
    %6 = vector.load %arg1[%c0_7, %c1, %c0_8] : memref<1x40x64xbf16, #tpu.memory_space<vmem>>, vector<1x24x64xbf16>
    %7 = vector.shape_cast %6 : vector<1x24x64xbf16> to vector<24x64xbf16>
    %c1_9 = arith.constant 1 : index
    %c0_10 = arith.constant 0 : index
    %c0_11 = arith.constant 0 : index
    %8 = vector.load %arg2[%c1_9, %c0_10, %c0_11] : memref<9x64x128xbf16, #tpu.memory_space<vmem>>, vector<1x64x128xbf16>
    %9 = vector.shape_cast %8 : vector<1x64x128xbf16> to vector<64x128xbf16>
    %cst_12 = arith.constant dense<0.000000e+00> : vector<24x128xf32>
    %10 = tpu.matmul %7, %9, %cst_12 {dimension_numbers = #tpu.dot_dimension_numbers<[1], [0], [0], [1], [0, 0, 1, 1], [], []>} : vector<24x64xbf16>, vector<64x128xbf16>, vector<24x128xf32> -> vector<24x128xf32>
    %c0_13 = arith.constant 0 : index
    %c0_14 = arith.constant 0 : index
    %11 = vector.load %arg5[%c0_13, %c0_14] : memref<24x128xf32, #tpu.memory_space<vmem>>, vector<24x128xf32>
    %12 = arith.addf %11, %10 : vector<24x128xf32>
    %c0_15 = arith.constant 0 : index
    %c0_16 = arith.constant 0 : index
    %13 = vector.load %arg5[%c0_15, %c0_16] : memref<24x128xf32, #tpu.memory_space<vmem>>, vector<24x128xf32>
    tpu.vector_store %arg5[%c0_15, %c0_16], %12 {strides = array<i32>} : memref<24x128xf32, #tpu.memory_space<vmem>>, vector<24x128xf32>,
    %c0_17 = arith.constant 0 : index
    %c2 = arith.constant 2 : index
    %c0_18 = arith.constant 0 : index
    %14 = vector.load %arg1[%c0_17, %c2, %c0_18] : memref<1x40x64xbf16, #tpu.memory_space<vmem>>, vector<1x24x64xbf16>
    %15 = vector.shape_cast %14 : vector<1x24x64xbf16> to vector<24x64xbf16>
    %c2_19 = arith.constant 2 : index
    %c0_20 = arith.constant 0 : index
    %c0_21 = arith.constant 0 : index
    %16 = vector.load %arg2[%c2_19, %c0_20, %c0_21] : memref<9x64x128xbf16, #tpu.memory_space<vmem>>, vector<1x64x128xbf16>
    %17 = vector.shape_cast %16 : vector<1x64x128xbf16> to vector<64x128xbf16>
    %cst_22 = arith.constant dense<0.000000e+00> : vector<24x128xf32>
    %18 = tpu.matmul %15, %17, %cst_22 {dimension_numbers = #tpu.dot_dimension_numbers<[1], [0], [0], [1], [0, 0, 1, 1], [], []>} : vector<24x64xbf16>, vector<64x128xbf16>, vector<24x128xf32> -> vector<24x128xf32>
    %c0_23 = arith.constant 0 : index
    %c0_24 = arith.constant 0 : index
    %19 = vector.load %arg5[%c0_23, %c0_24] : memref<24x128xf32, #tpu.memory_space<vmem>>, vector<24x128xf32>
    %20 = arith.addf %19, %18 : vector<24x128xf32>
    %c0_25 = arith.constant 0 : index
    %c0_26 = arith.constant 0 : index
    %21 = vector.load %arg5[%c0_25, %c0_26] : memref<24x128xf32, #tpu.memory_space<vmem>>, vector<24x128xf32>
    tpu.vector_store %arg5[%c0_25, %c0_26], %20 {strides = array<i32>} : memref<24x128xf32, #tpu.memory_space<vmem>>, vector<24x128xf32>,
    %c0_27 = arith.constant 0 : index
    %c6 = arith.constant 6 : index
    %c0_28 = arith.constant 0 : index
    %22 = vector.load %arg1[%c0_27, %c6, %c0_28] : memref<1x40x64xbf16, #tpu.memory_space<vmem>>, vector<1x24x64xbf16>
    %23 = vector.shape_cast %22 : vector<1x24x64xbf16> to vector<24x64xbf16>
    %c3 = arith.constant 3 : index
    %c0_29 = arith.constant 0 : index
    %c0_30 = arith.constant 0 : index
    %24 = vector.load %arg2[%c3, %c0_29, %c0_30] : memref<9x64x128xbf16, #tpu.memory_space<vmem>>, vector<1x64x128xbf16>
    %25 = vector.shape_cast %24 : vector<1x64x128xbf16> to vector<64x128xbf16>
    %cst_31 = arith.constant dense<0.000000e+00> : vector<24x128xf32>
    %26 = tpu.matmul %23, %25, %cst_31 {dimension_numbers = #tpu.dot_dimension_numbers<[1], [0], [0], [1], [0, 0, 1, 1], [], []>} : vector<24x64xbf16>, vector<64x128xbf16>, vector<24x128xf32> -> vector<24x128xf32>
    %c0_32 = arith.constant 0 : index
    %c0_33 = arith.constant 0 : index
    %27 = vector.load %arg5[%c0_32, %c0_33] : memref<24x128xf32, #tpu.memory_space<vmem>>, vector<24x128xf32>
    %28 = arith.addf %27, %26 : vector<24x128xf32>
    %c0_34 = arith.constant 0 : index
    %c0_35 = arith.constant 0 : index
    %29 = vector.load %arg5[%c0_34, %c0_35] : memref<24x128xf32, #tpu.memory_space<vmem>>, vector<24x128xf32>
    tpu.vector_store %arg5[%c0_34, %c0_35], %28 {strides = array<i32>} : memref<24x128xf32, #tpu.memory_space<vmem>>, vector<24x128xf32>,
    %c0_36 = arith.constant 0 : index
    %c7 = arith.constant 7 : index
    %c0_37 = arith.constant 0 : index
    %30 = vector.load %arg1[%c0_36, %c7, %c0_37] : memref<1x40x64xbf16, #tpu.memory_space<vmem>>, vector<1x24x64xbf16>
    %31 = vector.shape_cast %30 : vector<1x24x64xbf16> to vector<24x64xbf16>
    %c4 = arith.constant 4 : index
    %c0_38 = arith.constant 0 : index
    %c0_39 = arith.constant 0 : index
    %32 = vector.load %arg2[%c4, %c0_38, %c0_39] : memref<9x64x128xbf16, #tpu.memory_space<vmem>>, vector<1x64x128xbf16>
    %33 = vector.shape_cast %32 : vector<1x64x128xbf16> to vector<64x128xbf16>
    %cst_40 = arith.constant dense<0.000000e+00> : vector<24x128xf32>
    %34 = tpu.matmul %31, %33, %cst_40 {dimension_numbers = #tpu.dot_dimension_numbers<[1], [0], [0], [1], [0, 0, 1, 1], [], []>} : vector<24x64xbf16>, vector<64x128xbf16>, vector<24x128xf32> -> vector<24x128xf32>
    %c0_41 = arith.constant 0 : index
    %c0_42 = arith.constant 0 : index
    %35 = vector.load %arg5[%c0_41, %c0_42] : memref<24x128xf32, #tpu.memory_space<vmem>>, vector<24x128xf32>
    %36 = arith.addf %35, %34 : vector<24x128xf32>
    %c0_43 = arith.constant 0 : index
    %c0_44 = arith.constant 0 : index
    %37 = vector.load %arg5[%c0_43, %c0_44] : memref<24x128xf32, #tpu.memory_space<vmem>>, vector<24x128xf32>
    tpu.vector_store %arg5[%c0_43, %c0_44], %36 {strides = array<i32>} : memref<24x128xf32, #tpu.memory_space<vmem>>, vector<24x128xf32>,
    %c0_45 = arith.constant 0 : index
    %c8 = arith.constant 8 : index
    %c0_46 = arith.constant 0 : index
    %38 = vector.load %arg1[%c0_45, %c8, %c0_46] : memref<1x40x64xbf16, #tpu.memory_space<vmem>>, vector<1x24x64xbf16>
    %39 = vector.shape_cast %38 : vector<1x24x64xbf16> to vector<24x64xbf16>
    %c5 = arith.constant 5 : index
    %c0_47 = arith.constant 0 : index
    %c0_48 = arith.constant 0 : index
    %40 = vector.load %arg2[%c5, %c0_47, %c0_48] : memref<9x64x128xbf16, #tpu.memory_space<vmem>>, vector<1x64x128xbf16>
    %41 = vector.shape_cast %40 : vector<1x64x128xbf16> to vector<64x128xbf16>
    %cst_49 = arith.constant dense<0.000000e+00> : vector<24x128xf32>
    %42 = tpu.matmul %39, %41, %cst_49 {dimension_numbers = #tpu.dot_dimension_numbers<[1], [0], [0], [1], [0, 0, 1, 1], [], []>} : vector<24x64xbf16>, vector<64x128xbf16>, vector<24x128xf32> -> vector<24x128xf32>
    %c0_50 = arith.constant 0 : index
    %c0_51 = arith.constant 0 : index
    %43 = vector.load %arg5[%c0_50, %c0_51] : memref<24x128xf32, #tpu.memory_space<vmem>>, vector<24x128xf32>
    %44 = arith.addf %43, %42 : vector<24x128xf32>
    %c0_52 = arith.constant 0 : index
    %c0_53 = arith.constant 0 : index
    %45 = vector.load %arg5[%c0_52, %c0_53] : memref<24x128xf32, #tpu.memory_space<vmem>>, vector<24x128xf32>
    tpu.vector_store %arg5[%c0_52, %c0_53], %44 {strides = array<i32>} : memref<24x128xf32, #tpu.memory_space<vmem>>, vector<24x128xf32>,
    %c0_54 = arith.constant 0 : index
    %c12 = arith.constant 12 : index
    %c0_55 = arith.constant 0 : index
    %46 = vector.load %arg1[%c0_54, %c12, %c0_55] : memref<1x40x64xbf16, #tpu.memory_space<vmem>>, vector<1x24x64xbf16>
    %47 = vector.shape_cast %46 : vector<1x24x64xbf16> to vector<24x64xbf16>
    %c6_56 = arith.constant 6 : index
    %c0_57 = arith.constant 0 : index
    %c0_58 = arith.constant 0 : index
    %48 = vector.load %arg2[%c6_56, %c0_57, %c0_58] : memref<9x64x128xbf16, #tpu.memory_space<vmem>>, vector<1x64x128xbf16>
    %49 = vector.shape_cast %48 : vector<1x64x128xbf16> to vector<64x128xbf16>
    %cst_59 = arith.constant dense<0.000000e+00> : vector<24x128xf32>
    %50 = tpu.matmul %47, %49, %cst_59 {dimension_numbers = #tpu.dot_dimension_numbers<[1], [0], [0], [1], [0, 0, 1, 1], [], []>} : vector<24x64xbf16>, vector<64x128xbf16>, vector<24x128xf32> -> vector<24x128xf32>
    %c0_60 = arith.constant 0 : index
    %c0_61 = arith.constant 0 : index
    %51 = vector.load %arg5[%c0_60, %c0_61] : memref<24x128xf32, #tpu.memory_space<vmem>>, vector<24x128xf32>
    %52 = arith.addf %51, %50 : vector<24x128xf32>
    %c0_62 = arith.constant 0 : index
    %c0_63 = arith.constant 0 : index
    %53 = vector.load %arg5[%c0_62, %c0_63] : memref<24x128xf32, #tpu.memory_space<vmem>>, vector<24x128xf32>
    tpu.vector_store %arg5[%c0_62, %c0_63], %52 {strides = array<i32>} : memref<24x128xf32, #tpu.memory_space<vmem>>, vector<24x128xf32>,
    %c0_64 = arith.constant 0 : index
    %c13 = arith.constant 13 : index
    %c0_65 = arith.constant 0 : index
    %54 = vector.load %arg1[%c0_64, %c13, %c0_65] : memref<1x40x64xbf16, #tpu.memory_space<vmem>>, vector<1x24x64xbf16>
    %55 = vector.shape_cast %54 : vector<1x24x64xbf16> to vector<24x64xbf16>
    %c7_66 = arith.constant 7 : index
    %c0_67 = arith.constant 0 : index
    %c0_68 = arith.constant 0 : index
    %56 = vector.load %arg2[%c7_66, %c0_67, %c0_68] : memref<9x64x128xbf16, #tpu.memory_space<vmem>>, vector<1x64x128xbf16>
    %57 = vector.shape_cast %56 : vector<1x64x128xbf16> to vector<64x128xbf16>
    %cst_69 = arith.constant dense<0.000000e+00> : vector<24x128xf32>
    %58 = tpu.matmul %55, %57, %cst_69 {dimension_numbers = #tpu.dot_dimension_numbers<[1], [0], [0], [1], [0, 0, 1, 1], [], []>} : vector<24x64xbf16>, vector<64x128xbf16>, vector<24x128xf32> -> vector<24x128xf32>
    %c0_70 = arith.constant 0 : index
    %c0_71 = arith.constant 0 : index
    %59 = vector.load %arg5[%c0_70, %c0_71] : memref<24x128xf32, #tpu.memory_space<vmem>>, vector<24x128xf32>
    %60 = arith.addf %59, %58 : vector<24x128xf32>
    %c0_72 = arith.constant 0 : index
    %c0_73 = arith.constant 0 : index
    %61 = vector.load %arg5[%c0_72, %c0_73] : memref<24x128xf32, #tpu.memory_space<vmem>>, vector<24x128xf32>
    tpu.vector_store %arg5[%c0_72, %c0_73], %60 {strides = array<i32>} : memref<24x128xf32, #tpu.memory_space<vmem>>, vector<24x128xf32>,
    %c0_74 = arith.constant 0 : index
    %c14 = arith.constant 14 : index
    %c0_75 = arith.constant 0 : index
    %62 = vector.load %arg1[%c0_74, %c14, %c0_75] : memref<1x40x64xbf16, #tpu.memory_space<vmem>>, vector<1x24x64xbf16>
    %63 = vector.shape_cast %62 : vector<1x24x64xbf16> to vector<24x64xbf16>
    %c8_76 = arith.constant 8 : index
    %c0_77 = arith.constant 0 : index
    %c0_78 = arith.constant 0 : index
    %64 = vector.load %arg2[%c8_76, %c0_77, %c0_78] : memref<9x64x128xbf16, #tpu.memory_space<vmem>>, vector<1x64x128xbf16>
    %65 = vector.shape_cast %64 : vector<1x64x128xbf16> to vector<64x128xbf16>
    %cst_79 = arith.constant dense<0.000000e+00> : vector<24x128xf32>
    %66 = tpu.matmul %63, %65, %cst_79 {dimension_numbers = #tpu.dot_dimension_numbers<[1], [0], [0], [1], [0, 0, 1, 1], [], []>} : vector<24x64xbf16>, vector<64x128xbf16>, vector<24x128xf32> -> vector<24x128xf32>
    %c0_80 = arith.constant 0 : index
    %c0_81 = arith.constant 0 : index
    %67 = vector.load %arg5[%c0_80, %c0_81] : memref<24x128xf32, #tpu.memory_space<vmem>>, vector<24x128xf32>
    %68 = arith.addf %67, %66 : vector<24x128xf32>
    %c0_82 = arith.constant 0 : index
    %c0_83 = arith.constant 0 : index
    %69 = vector.load %arg5[%c0_82, %c0_83] : memref<24x128xf32, #tpu.memory_space<vmem>>, vector<24x128xf32>
    tpu.vector_store %arg5[%c0_82, %c0_83], %68 {strides = array<i32>} : memref<24x128xf32, #tpu.memory_space<vmem>>, vector<24x128xf32>,
    %c0_84 = arith.constant 0 : index
    %c0_85 = arith.constant 0 : index
    %70 = vector.load %arg5[%c0_84, %c0_85] : memref<24x128xf32, #tpu.memory_space<vmem>>, vector<24x128xf32>
    %c0_86 = arith.constant 0 : index
    %c0_87 = arith.constant 0 : index
    %71 = vector.load %arg3[%c0_86, %c0_87] : memref<1x128xf32, #tpu.memory_space<vmem>>, vector<1x128xf32>
    %72 = vector.broadcast %71 : vector<1x128xf32> to vector<24x128xf32>
    %73 = arith.addf %70, %72 : vector<24x128xf32>
    %cst_88 = arith.constant 0.000000e+00 : f32
    %74 = vector.broadcast %cst_88 : f32 to vector<24x128xf32>
    %75 = arith.maximumf %73, %74 : vector<24x128xf32>
    %76 = arith.truncf %75 : vector<24x128xf32> to vector<24x128xbf16>
    %c0_89 = arith.constant 0 : index
    %c0_90 = arith.constant 0 : index
    %c0_91 = arith.constant 0 : index
    %77 = vector.load %arg4[%c0_89, %c0_90, %c0_91] : memref<1x24x128xbf16, #tpu.memory_space<vmem>>, vector<1x24x128xbf16>
    %78 = vector.shape_cast %77 : vector<1x24x128xbf16> to vector<24x128xbf16>
    %79 = vector.shape_cast %76 : vector<24x128xbf16> to vector<1x24x128xbf16>
    tpu.vector_store %arg4[%c0_89, %c0_90, %c0_91], %79 {strides = array<i32>} : memref<1x24x128xbf16, #tpu.memory_space<vmem>>, vector<1x24x128xbf16>,
    return
  }
  func.func @transform_0(%arg0: i32) -> (i32, i32, i32) {
    %c0_i32 = arith.constant 0 : i32
    %c0_i32_0 = arith.constant 0 : i32
    %c0_i32_1 = arith.constant 0 : i32
    return %arg0, %c0_i32, %c0_i32_0 : i32, i32, i32
  }
  func.func @transform_1(%arg0: i32) -> (i32, i32, i32) {
    %c0_i32 = arith.constant 0 : i32
    %c0_i32_0 = arith.constant 0 : i32
    %c0_i32_1 = arith.constant 0 : i32
    %c0_i32_2 = arith.constant 0 : i32
    return %c0_i32, %c0_i32_0, %c0_i32_1 : i32, i32, i32
  }
  func.func @transform_2(%arg0: i32) -> (i32, i32) {
    %c0_i32 = arith.constant 0 : i32
    %c0_i32_0 = arith.constant 0 : i32
    %c0_i32_1 = arith.constant 0 : i32
    return %c0_i32, %c0_i32_0 : i32, i32
  }
  func.func @transform_3(%arg0: i32) -> (i32, i32, i32) {
    %c0_i32 = arith.constant 0 : i32
    %c0_i32_0 = arith.constant 0 : i32
    %c0_i32_1 = arith.constant 0 : i32
    return %arg0, %c0_i32, %c0_i32_0 : i32, i32, i32
  }
}

module attributes {stable_mosaic.version = 11 : i64} {
  func.func @_conv_kernel(%arg0: i32, %arg1: memref<1x104x32xbf16, #tpu.memory_space<vmem>>, %arg2: memref<9x32x12xbf16, #tpu.memory_space<vmem>>, %arg3: memref<1x12xf32, #tpu.memory_space<vmem>>, %arg4: memref<1x80x12xf32, #tpu.memory_space<vmem>>, %arg5: memref<80x12xf32, #tpu.memory_space<vmem>>) attributes {dimension_semantics = [#tpu.dimension_semantics<parallel>], iteration_bounds = array<i64: 2>, scalar_prefetch = 0 : i64, scratch_operands = 1 : i64, tpu.core_type = #tpu.core_type<tc>, window_params = [{transform_indices = @transform_0, window_bounds = array<i64: 1, 104, 32>}, {pipeline_mode = #tpu.pipeline_mode<synchronous>, transform_indices = @transform_1, window_bounds = array<i64: 9, 32, 12>}, {pipeline_mode = #tpu.pipeline_mode<synchronous>, transform_indices = @transform_2, window_bounds = array<i64: 1, 12>}, {transform_indices = @transform_3, window_bounds = array<i64: 1, 80, 12>}]} {
    %c0 = arith.constant 0 : index
    %c0_0 = arith.constant 0 : index
    %c0_1 = arith.constant 0 : index
    %0 = vector.load %arg1[%c0, %c0_0, %c0_1] : memref<1x104x32xbf16, #tpu.memory_space<vmem>>, vector<1x80x32xbf16>
    %1 = vector.shape_cast %0 : vector<1x80x32xbf16> to vector<80x32xbf16>
    %c0_2 = arith.constant 0 : index
    %c0_3 = arith.constant 0 : index
    %c0_4 = arith.constant 0 : index
    %2 = vector.load %arg2[%c0_2, %c0_3, %c0_4] : memref<9x32x12xbf16, #tpu.memory_space<vmem>>, vector<1x32x12xbf16>
    %3 = vector.shape_cast %2 : vector<1x32x12xbf16> to vector<32x12xbf16>
    %cst = arith.constant dense<0.000000e+00> : vector<80x12xf32>
    %4 = tpu.matmul %1, %3, %cst {dimension_numbers = #tpu.dot_dimension_numbers<[1], [0], [0], [1], [0, 0, 1, 1], [], []>} : vector<80x32xbf16>, vector<32x12xbf16>, vector<80x12xf32> -> vector<80x12xf32>
    %c0_5 = arith.constant 0 : index
    %c0_6 = arith.constant 0 : index
    %5 = vector.load %arg5[%c0_5, %c0_6] : memref<80x12xf32, #tpu.memory_space<vmem>>, vector<80x12xf32>
    tpu.vector_store %arg5[%c0_5, %c0_6], %4 {strides = array<i32>} : memref<80x12xf32, #tpu.memory_space<vmem>>, vector<80x12xf32>,
    %c0_7 = arith.constant 0 : index
    %c1 = arith.constant 1 : index
    %c0_8 = arith.constant 0 : index
    %6 = vector.load %arg1[%c0_7, %c1, %c0_8] : memref<1x104x32xbf16, #tpu.memory_space<vmem>>, vector<1x80x32xbf16>
    %7 = vector.shape_cast %6 : vector<1x80x32xbf16> to vector<80x32xbf16>
    %c1_9 = arith.constant 1 : index
    %c0_10 = arith.constant 0 : index
    %c0_11 = arith.constant 0 : index
    %8 = vector.load %arg2[%c1_9, %c0_10, %c0_11] : memref<9x32x12xbf16, #tpu.memory_space<vmem>>, vector<1x32x12xbf16>
    %9 = vector.shape_cast %8 : vector<1x32x12xbf16> to vector<32x12xbf16>
    %cst_12 = arith.constant dense<0.000000e+00> : vector<80x12xf32>
    %10 = tpu.matmul %7, %9, %cst_12 {dimension_numbers = #tpu.dot_dimension_numbers<[1], [0], [0], [1], [0, 0, 1, 1], [], []>} : vector<80x32xbf16>, vector<32x12xbf16>, vector<80x12xf32> -> vector<80x12xf32>
    %c0_13 = arith.constant 0 : index
    %c0_14 = arith.constant 0 : index
    %11 = vector.load %arg5[%c0_13, %c0_14] : memref<80x12xf32, #tpu.memory_space<vmem>>, vector<80x12xf32>
    %12 = arith.addf %11, %10 : vector<80x12xf32>
    %c0_15 = arith.constant 0 : index
    %c0_16 = arith.constant 0 : index
    %13 = vector.load %arg5[%c0_15, %c0_16] : memref<80x12xf32, #tpu.memory_space<vmem>>, vector<80x12xf32>
    tpu.vector_store %arg5[%c0_15, %c0_16], %12 {strides = array<i32>} : memref<80x12xf32, #tpu.memory_space<vmem>>, vector<80x12xf32>,
    %c0_17 = arith.constant 0 : index
    %c2 = arith.constant 2 : index
    %c0_18 = arith.constant 0 : index
    %14 = vector.load %arg1[%c0_17, %c2, %c0_18] : memref<1x104x32xbf16, #tpu.memory_space<vmem>>, vector<1x80x32xbf16>
    %15 = vector.shape_cast %14 : vector<1x80x32xbf16> to vector<80x32xbf16>
    %c2_19 = arith.constant 2 : index
    %c0_20 = arith.constant 0 : index
    %c0_21 = arith.constant 0 : index
    %16 = vector.load %arg2[%c2_19, %c0_20, %c0_21] : memref<9x32x12xbf16, #tpu.memory_space<vmem>>, vector<1x32x12xbf16>
    %17 = vector.shape_cast %16 : vector<1x32x12xbf16> to vector<32x12xbf16>
    %cst_22 = arith.constant dense<0.000000e+00> : vector<80x12xf32>
    %18 = tpu.matmul %15, %17, %cst_22 {dimension_numbers = #tpu.dot_dimension_numbers<[1], [0], [0], [1], [0, 0, 1, 1], [], []>} : vector<80x32xbf16>, vector<32x12xbf16>, vector<80x12xf32> -> vector<80x12xf32>
    %c0_23 = arith.constant 0 : index
    %c0_24 = arith.constant 0 : index
    %19 = vector.load %arg5[%c0_23, %c0_24] : memref<80x12xf32, #tpu.memory_space<vmem>>, vector<80x12xf32>
    %20 = arith.addf %19, %18 : vector<80x12xf32>
    %c0_25 = arith.constant 0 : index
    %c0_26 = arith.constant 0 : index
    %21 = vector.load %arg5[%c0_25, %c0_26] : memref<80x12xf32, #tpu.memory_space<vmem>>, vector<80x12xf32>
    tpu.vector_store %arg5[%c0_25, %c0_26], %20 {strides = array<i32>} : memref<80x12xf32, #tpu.memory_space<vmem>>, vector<80x12xf32>,
    %c0_27 = arith.constant 0 : index
    %c10 = arith.constant 10 : index
    %c0_28 = arith.constant 0 : index
    %22 = vector.load %arg1[%c0_27, %c10, %c0_28] : memref<1x104x32xbf16, #tpu.memory_space<vmem>>, vector<1x80x32xbf16>
    %23 = vector.shape_cast %22 : vector<1x80x32xbf16> to vector<80x32xbf16>
    %c3 = arith.constant 3 : index
    %c0_29 = arith.constant 0 : index
    %c0_30 = arith.constant 0 : index
    %24 = vector.load %arg2[%c3, %c0_29, %c0_30] : memref<9x32x12xbf16, #tpu.memory_space<vmem>>, vector<1x32x12xbf16>
    %25 = vector.shape_cast %24 : vector<1x32x12xbf16> to vector<32x12xbf16>
    %cst_31 = arith.constant dense<0.000000e+00> : vector<80x12xf32>
    %26 = tpu.matmul %23, %25, %cst_31 {dimension_numbers = #tpu.dot_dimension_numbers<[1], [0], [0], [1], [0, 0, 1, 1], [], []>} : vector<80x32xbf16>, vector<32x12xbf16>, vector<80x12xf32> -> vector<80x12xf32>
    %c0_32 = arith.constant 0 : index
    %c0_33 = arith.constant 0 : index
    %27 = vector.load %arg5[%c0_32, %c0_33] : memref<80x12xf32, #tpu.memory_space<vmem>>, vector<80x12xf32>
    %28 = arith.addf %27, %26 : vector<80x12xf32>
    %c0_34 = arith.constant 0 : index
    %c0_35 = arith.constant 0 : index
    %29 = vector.load %arg5[%c0_34, %c0_35] : memref<80x12xf32, #tpu.memory_space<vmem>>, vector<80x12xf32>
    tpu.vector_store %arg5[%c0_34, %c0_35], %28 {strides = array<i32>} : memref<80x12xf32, #tpu.memory_space<vmem>>, vector<80x12xf32>,
    %c0_36 = arith.constant 0 : index
    %c11 = arith.constant 11 : index
    %c0_37 = arith.constant 0 : index
    %30 = vector.load %arg1[%c0_36, %c11, %c0_37] : memref<1x104x32xbf16, #tpu.memory_space<vmem>>, vector<1x80x32xbf16>
    %31 = vector.shape_cast %30 : vector<1x80x32xbf16> to vector<80x32xbf16>
    %c4 = arith.constant 4 : index
    %c0_38 = arith.constant 0 : index
    %c0_39 = arith.constant 0 : index
    %32 = vector.load %arg2[%c4, %c0_38, %c0_39] : memref<9x32x12xbf16, #tpu.memory_space<vmem>>, vector<1x32x12xbf16>
    %33 = vector.shape_cast %32 : vector<1x32x12xbf16> to vector<32x12xbf16>
    %cst_40 = arith.constant dense<0.000000e+00> : vector<80x12xf32>
    %34 = tpu.matmul %31, %33, %cst_40 {dimension_numbers = #tpu.dot_dimension_numbers<[1], [0], [0], [1], [0, 0, 1, 1], [], []>} : vector<80x32xbf16>, vector<32x12xbf16>, vector<80x12xf32> -> vector<80x12xf32>
    %c0_41 = arith.constant 0 : index
    %c0_42 = arith.constant 0 : index
    %35 = vector.load %arg5[%c0_41, %c0_42] : memref<80x12xf32, #tpu.memory_space<vmem>>, vector<80x12xf32>
    %36 = arith.addf %35, %34 : vector<80x12xf32>
    %c0_43 = arith.constant 0 : index
    %c0_44 = arith.constant 0 : index
    %37 = vector.load %arg5[%c0_43, %c0_44] : memref<80x12xf32, #tpu.memory_space<vmem>>, vector<80x12xf32>
    tpu.vector_store %arg5[%c0_43, %c0_44], %36 {strides = array<i32>} : memref<80x12xf32, #tpu.memory_space<vmem>>, vector<80x12xf32>,
    %c0_45 = arith.constant 0 : index
    %c12 = arith.constant 12 : index
    %c0_46 = arith.constant 0 : index
    %38 = vector.load %arg1[%c0_45, %c12, %c0_46] : memref<1x104x32xbf16, #tpu.memory_space<vmem>>, vector<1x80x32xbf16>
    %39 = vector.shape_cast %38 : vector<1x80x32xbf16> to vector<80x32xbf16>
    %c5 = arith.constant 5 : index
    %c0_47 = arith.constant 0 : index
    %c0_48 = arith.constant 0 : index
    %40 = vector.load %arg2[%c5, %c0_47, %c0_48] : memref<9x32x12xbf16, #tpu.memory_space<vmem>>, vector<1x32x12xbf16>
    %41 = vector.shape_cast %40 : vector<1x32x12xbf16> to vector<32x12xbf16>
    %cst_49 = arith.constant dense<0.000000e+00> : vector<80x12xf32>
    %42 = tpu.matmul %39, %41, %cst_49 {dimension_numbers = #tpu.dot_dimension_numbers<[1], [0], [0], [1], [0, 0, 1, 1], [], []>} : vector<80x32xbf16>, vector<32x12xbf16>, vector<80x12xf32> -> vector<80x12xf32>
    %c0_50 = arith.constant 0 : index
    %c0_51 = arith.constant 0 : index
    %43 = vector.load %arg5[%c0_50, %c0_51] : memref<80x12xf32, #tpu.memory_space<vmem>>, vector<80x12xf32>
    %44 = arith.addf %43, %42 : vector<80x12xf32>
    %c0_52 = arith.constant 0 : index
    %c0_53 = arith.constant 0 : index
    %45 = vector.load %arg5[%c0_52, %c0_53] : memref<80x12xf32, #tpu.memory_space<vmem>>, vector<80x12xf32>
    tpu.vector_store %arg5[%c0_52, %c0_53], %44 {strides = array<i32>} : memref<80x12xf32, #tpu.memory_space<vmem>>, vector<80x12xf32>,
    %c0_54 = arith.constant 0 : index
    %c20 = arith.constant 20 : index
    %c0_55 = arith.constant 0 : index
    %46 = vector.load %arg1[%c0_54, %c20, %c0_55] : memref<1x104x32xbf16, #tpu.memory_space<vmem>>, vector<1x80x32xbf16>
    %47 = vector.shape_cast %46 : vector<1x80x32xbf16> to vector<80x32xbf16>
    %c6 = arith.constant 6 : index
    %c0_56 = arith.constant 0 : index
    %c0_57 = arith.constant 0 : index
    %48 = vector.load %arg2[%c6, %c0_56, %c0_57] : memref<9x32x12xbf16, #tpu.memory_space<vmem>>, vector<1x32x12xbf16>
    %49 = vector.shape_cast %48 : vector<1x32x12xbf16> to vector<32x12xbf16>
    %cst_58 = arith.constant dense<0.000000e+00> : vector<80x12xf32>
    %50 = tpu.matmul %47, %49, %cst_58 {dimension_numbers = #tpu.dot_dimension_numbers<[1], [0], [0], [1], [0, 0, 1, 1], [], []>} : vector<80x32xbf16>, vector<32x12xbf16>, vector<80x12xf32> -> vector<80x12xf32>
    %c0_59 = arith.constant 0 : index
    %c0_60 = arith.constant 0 : index
    %51 = vector.load %arg5[%c0_59, %c0_60] : memref<80x12xf32, #tpu.memory_space<vmem>>, vector<80x12xf32>
    %52 = arith.addf %51, %50 : vector<80x12xf32>
    %c0_61 = arith.constant 0 : index
    %c0_62 = arith.constant 0 : index
    %53 = vector.load %arg5[%c0_61, %c0_62] : memref<80x12xf32, #tpu.memory_space<vmem>>, vector<80x12xf32>
    tpu.vector_store %arg5[%c0_61, %c0_62], %52 {strides = array<i32>} : memref<80x12xf32, #tpu.memory_space<vmem>>, vector<80x12xf32>,
    %c0_63 = arith.constant 0 : index
    %c21 = arith.constant 21 : index
    %c0_64 = arith.constant 0 : index
    %54 = vector.load %arg1[%c0_63, %c21, %c0_64] : memref<1x104x32xbf16, #tpu.memory_space<vmem>>, vector<1x80x32xbf16>
    %55 = vector.shape_cast %54 : vector<1x80x32xbf16> to vector<80x32xbf16>
    %c7 = arith.constant 7 : index
    %c0_65 = arith.constant 0 : index
    %c0_66 = arith.constant 0 : index
    %56 = vector.load %arg2[%c7, %c0_65, %c0_66] : memref<9x32x12xbf16, #tpu.memory_space<vmem>>, vector<1x32x12xbf16>
    %57 = vector.shape_cast %56 : vector<1x32x12xbf16> to vector<32x12xbf16>
    %cst_67 = arith.constant dense<0.000000e+00> : vector<80x12xf32>
    %58 = tpu.matmul %55, %57, %cst_67 {dimension_numbers = #tpu.dot_dimension_numbers<[1], [0], [0], [1], [0, 0, 1, 1], [], []>} : vector<80x32xbf16>, vector<32x12xbf16>, vector<80x12xf32> -> vector<80x12xf32>
    %c0_68 = arith.constant 0 : index
    %c0_69 = arith.constant 0 : index
    %59 = vector.load %arg5[%c0_68, %c0_69] : memref<80x12xf32, #tpu.memory_space<vmem>>, vector<80x12xf32>
    %60 = arith.addf %59, %58 : vector<80x12xf32>
    %c0_70 = arith.constant 0 : index
    %c0_71 = arith.constant 0 : index
    %61 = vector.load %arg5[%c0_70, %c0_71] : memref<80x12xf32, #tpu.memory_space<vmem>>, vector<80x12xf32>
    tpu.vector_store %arg5[%c0_70, %c0_71], %60 {strides = array<i32>} : memref<80x12xf32, #tpu.memory_space<vmem>>, vector<80x12xf32>,
    %c0_72 = arith.constant 0 : index
    %c22 = arith.constant 22 : index
    %c0_73 = arith.constant 0 : index
    %62 = vector.load %arg1[%c0_72, %c22, %c0_73] : memref<1x104x32xbf16, #tpu.memory_space<vmem>>, vector<1x80x32xbf16>
    %63 = vector.shape_cast %62 : vector<1x80x32xbf16> to vector<80x32xbf16>
    %c8 = arith.constant 8 : index
    %c0_74 = arith.constant 0 : index
    %c0_75 = arith.constant 0 : index
    %64 = vector.load %arg2[%c8, %c0_74, %c0_75] : memref<9x32x12xbf16, #tpu.memory_space<vmem>>, vector<1x32x12xbf16>
    %65 = vector.shape_cast %64 : vector<1x32x12xbf16> to vector<32x12xbf16>
    %cst_76 = arith.constant dense<0.000000e+00> : vector<80x12xf32>
    %66 = tpu.matmul %63, %65, %cst_76 {dimension_numbers = #tpu.dot_dimension_numbers<[1], [0], [0], [1], [0, 0, 1, 1], [], []>} : vector<80x32xbf16>, vector<32x12xbf16>, vector<80x12xf32> -> vector<80x12xf32>
    %c0_77 = arith.constant 0 : index
    %c0_78 = arith.constant 0 : index
    %67 = vector.load %arg5[%c0_77, %c0_78] : memref<80x12xf32, #tpu.memory_space<vmem>>, vector<80x12xf32>
    %68 = arith.addf %67, %66 : vector<80x12xf32>
    %c0_79 = arith.constant 0 : index
    %c0_80 = arith.constant 0 : index
    %69 = vector.load %arg5[%c0_79, %c0_80] : memref<80x12xf32, #tpu.memory_space<vmem>>, vector<80x12xf32>
    tpu.vector_store %arg5[%c0_79, %c0_80], %68 {strides = array<i32>} : memref<80x12xf32, #tpu.memory_space<vmem>>, vector<80x12xf32>,
    %c0_81 = arith.constant 0 : index
    %c0_82 = arith.constant 0 : index
    %70 = vector.load %arg5[%c0_81, %c0_82] : memref<80x12xf32, #tpu.memory_space<vmem>>, vector<80x12xf32>
    %c0_83 = arith.constant 0 : index
    %c0_84 = arith.constant 0 : index
    %71 = vector.load %arg3[%c0_83, %c0_84] : memref<1x12xf32, #tpu.memory_space<vmem>>, vector<1x12xf32>
    %72 = vector.broadcast %71 : vector<1x12xf32> to vector<80x12xf32>
    %73 = arith.addf %70, %72 : vector<80x12xf32>
    %74 = arith.negf %73 : vector<80x12xf32>
    %75 = math.exp %74 : vector<80x12xf32>
    %cst_85 = arith.constant 1.000000e+00 : f32
    %76 = vector.broadcast %cst_85 : f32 to vector<80x12xf32>
    %77 = arith.addf %76, %75 : vector<80x12xf32>
    %78 = arith.divf %76, %77 : vector<80x12xf32>
    %c0_86 = arith.constant 0 : index
    %c0_87 = arith.constant 0 : index
    %c0_88 = arith.constant 0 : index
    %79 = vector.load %arg4[%c0_86, %c0_87, %c0_88] : memref<1x80x12xf32, #tpu.memory_space<vmem>>, vector<1x80x12xf32>
    %80 = vector.shape_cast %79 : vector<1x80x12xf32> to vector<80x12xf32>
    %81 = vector.shape_cast %78 : vector<80x12xf32> to vector<1x80x12xf32>
    tpu.vector_store %arg4[%c0_86, %c0_87, %c0_88], %81 {strides = array<i32>} : memref<1x80x12xf32, #tpu.memory_space<vmem>>, vector<1x80x12xf32>,
    return
  }
  func.func @transform_0(%arg0: i32) -> (i32, i32, i32) {
    %c0_i32 = arith.constant 0 : i32
    %c0_i32_0 = arith.constant 0 : i32
    %c0_i32_1 = arith.constant 0 : i32
    return %arg0, %c0_i32, %c0_i32_0 : i32, i32, i32
  }
  func.func @transform_1(%arg0: i32) -> (i32, i32, i32) {
    %c0_i32 = arith.constant 0 : i32
    %c0_i32_0 = arith.constant 0 : i32
    %c0_i32_1 = arith.constant 0 : i32
    %c0_i32_2 = arith.constant 0 : i32
    return %c0_i32, %c0_i32_0, %c0_i32_1 : i32, i32, i32
  }
  func.func @transform_2(%arg0: i32) -> (i32, i32) {
    %c0_i32 = arith.constant 0 : i32
    %c0_i32_0 = arith.constant 0 : i32
    %c0_i32_1 = arith.constant 0 : i32
    return %c0_i32, %c0_i32_0 : i32, i32
  }
  func.func @transform_3(%arg0: i32) -> (i32, i32, i32) {
    %c0_i32 = arith.constant 0 : i32
    %c0_i32_0 = arith.constant 0 : i32
    %c0_i32_1 = arith.constant 0 : i32
    return %arg0, %c0_i32, %c0_i32_0 : i32, i32, i32
  }
}

</mosaic_0001>

<bundles_post_ra>
// kernel: vae_forward.8
= control target key start
LH: loop header
LB: loop body
LE: loop exit
PB: predicated region body
PF: predicated region fallthrough
CT: control target
= control target key end

     0   :  { %s1020_s12 = smov 0   ;;  %s1197_s0 = inlined_call_operand.vmem [shape: bf16[2,88,12], index: 0, kind: input, shape index: {}]   ;;  %s1198_s1 = inlined_call_operand.vmem [shape: bf16[4,12,32], index: 1, kind: input, shape index: {}]   ;;  %s1199_s2 = inlined_call_operand.vmem [shape: f32[1,32], index: 2, kind: input, shape index: {}]   ;;  %s1200_s3 = inlined_call_operand.vmem [shape: bf16[2,72,32], index: 3, kind: output, shape index: {}]  }
   0x1 LB: > { %s831_s13 = sadd.s32 4294967295, %s998_s12   ;;  %p835_p0 = scmp.ge.s32.totalorder %s998_s12, 1  ;;  %s998_s12 = sphi %s1020_s12, %s13_s12  }
   0x2   : > { %p137_p1 = scmp.lt.s32.totalorder %s998_s12, 3 }
   0x4   : > { %p138_p2 = pnand %p835_p0, %p137_p1 }
   0x5   : > { %p161_p3 = scmp.lt.s32.totalorder (!%p138_p2), %s831_s13, 1 }
   0x6   : > { %141 = sbr.rel (%p138_p2) target bundleno = 253 (0xfd), region = 32 }
   0xb   : > { %v856_v0 = vld [vmem:[%s1198_s1] sm:$0xf]  ;;  %v962_v1 = vld [vmem:[%s1198_s1] sm:$0x30]  ;;  %vm227_vm0 = vcmask 1045504   ;;  %s1202_s13 = smov (!%p161_p3, %s831_s13), 1 }
   0xc   : > { %v857_v2 = vor.u32 %v962_v1, %v856_v0  ;;  %v887_v3 = vld [vmem:[%s1198_s1 + $0x8] sm:$0xf]  ;;  %v968_v4 = vld [vmem:[%s1198_s1 + $0x8] sm:$0x30]  ;;  %v918_v6 = vld [vmem:[%s1198_s1 + $0x10] sm:$0xf] }
   0xd   : > { %v888_v5 = vor.u32 %v968_v4, %v887_v3  ;;  %v974_v7 = vld [vmem:[%s1198_s1 + $0x10] sm:$0x30]  ;;  %v949_v10 = vld [vmem:[%s1198_s1 + $0x18] sm:$0xf]  ;;  %s981_s28 = smul.u32 44, %s1202_s13  ;;  %vm211_vm1 = vcmask 97280  }
   0xe   : > { %v229_v8 = vsel %vm227_vm0, %v857_v2, 0  ;;  %v919_v9 = vor.u32 %v974_v7, %v918_v6  ;;  %v980_v12 = vld [vmem:[%s1198_s1 + $0x18] sm:$0x30]  ;;  %vm633_vm2 = vcmask 1046528   ;;  %vm312_vm3 = vsmask.f32 7424 }
   0xf   : > { %238 = vmatpush.bf16.msra.mxu0 %v229_v8  ;;  %v373_v11 = vsel %vm227_vm0, %v888_v5, 0  ;;  %v950_v14 = vor.u32 %v980_v12, %v949_v10  ;;  %s1061_s6 = scalar_lea.vmem %s1197_s0, %s981_s28  ;;  %vm264_vm4 = vcmask 261120   ;;  %s982_s9 = smul.u32 36, %s1202_s13  ;;  %vm766_vm5 = vcmask 257024  }
  0x10   : > { %382 = vmatpush.bf16.msra.mxu1 %v373_v11  ;;  %v533_v13 = vsel %vm227_vm0, %v919_v9, 0  ;;  %v958_v15 = vld [vmem:[%s1061_s6] sm:$0xff]  ;;  %v964_v17 = vld [vmem:[%s1061_s6 + $0x8] sm:$0xff]  ;;  %v965_v42 = vld [vmem:[%s1061_s6 + $0x10] sm:$0xff] }
  0x11   : > { %542 = vmatpush.bf16.msra.mxu2 %v533_v13  ;;  %v963_v16 = vld [vmem:[%s1061_s6] sm:$0xff]  ;;  %v664_v18 = vsel %vm227_vm0, %v950_v14, 0  ;;  %v970_v20 = vld [vmem:[%s1061_s6 + $0xc] sm:$0xff]  ;;  %v321_v24 = vshll.u32 %v964_v17, 16  ;;  %v975_v25 = vld [vmem:[%s1061_s6 + $0x4] sm:$0xf0]  ;;  %s1145_s14 = scalar_lea.vmem %s1200_s3, %s982_s9 }
  0x12   : > { %v969_v19 = vld [vmem:[%s1061_s6 + $0x4] sm:$0xff]  ;;  %673 = vmatpush.bf16.msra.mxu3 %v664_v18  ;;  %858 = vmatmul.msk.bf16.vlgmr.msra.gmra.mxu0 %vm211_vm1, %v958_v15  ;;  %v314_v22 = vshrl.u32 %v963_v16, 16  ;;  %v316_v23 = vshll.u32 %v963_v16, 16  ;;  %v976_v26 = vld [vmem:[%s1061_s6 + $0xc] sm:$0xff]  ;;  %v481_v29 = vshll.u32 %v970_v20, 16  ;;  %v971_v43 = vld [vmem:[%s1061_s6 + $0x14] sm:$0xff] }
  0x13   : > { %v929_v21 = vld [vmem:[%s1061_s6 + $0x4] sm:$0xe]  ;;  %v474_v27 = vshrl.u32 %v969_v19, 16  ;;  %v476_v28 = vshll.u32 %v969_v19, 16  ;;  %v323_v32 = vrot.slane %v321_v24, 1  ;;  %v635_v33 = vrot.slane %v976_v26, 1 }
  0x14   : > { %v930_v30 = vor.u32 %v975_v25, %v929_v21  ;;  %v318_v31 = vrot.slane %v316_v23, 1  ;;  %v483_v35 = vrot.slane %v481_v29, 1  ;;  %v977_v44 = vld [vmem:[%s1061_s6 + $0x14] sm:$0xff]  ;;  %v959_v45 = vld [vmem:[%s1061_s6 + $0x8] sm:$0xff]  ;;  %v325_v46 = vshrl.u32 %v964_v17, 16  ;;  %v972_v59 = vld [vmem:[%s1061_s6 + $0x1c] sm:$0xff] }
  0x15   : > { %v478_v34 = vrot.slane %v476_v28, 1  ;;  %v329_v47 = vshll.u32 %v965_v42, 16  ;;  %v485_v48 = vshrl.u32 %v970_v20, 16  ;;  %v489_v49 = vshll.u32 %v971_v43, 16  ;;  %v966_v58 = vld [vmem:[%s1061_s6 + $0x18] sm:$0xff]  ;;  %v960_v61 = vld [vmem:[%s1061_s6 + $0x10] sm:$0xff] }
  0x16   : > { %v634_v36 = vrot.slane %v930_v30, 1  ;;  %v319_v37 = vor.u32 %v318_v31, %v314_v22  ;;  %v637_v50 = vrot.slane %v977_v44, 1  ;;  %v327_v51 = vor.u32 %v325_v46, %v323_v32  ;;  %v978_v60 = vld [vmem:[%s1061_s6 + $0x1c] sm:$0xff]  ;;  %v967_v11 = vld [vmem:[%s1061_s6 + $0x20] sm:$0x10] }
  0x17   : > { %v479_v38 = vor.u32 %v478_v34, %v474_v27  ;;  %v331_v52 = vrot.slane %v329_v47, 1  ;;  %v487_v53 = vor.u32 %v485_v48, %v483_v35  ;;  %v491_v54 = vrot.slane %v489_v49, 1  ;;  %v883_v10 = vld [vmem:[%s1061_s6 + $0x20] sm:$0xf]  ;;  %v914_v12 = vld [vmem:[%s1061_s6 + $0x24] sm:$0xf] }
  0x18   : > { %v636_v39 = vsel %vm633_vm2, %v634_v36, %v635_v33  ;;  %v324_v40 = vsel %vm312_vm3, %v319_v37, %v323_v32  ;;  %v638_v55 = vsel %vm633_vm2, %v635_v33, %v637_v50  ;;  %v333_v62 = vshrl.u32 %v965_v42, 16  ;;  %v973_v13 = vld [vmem:[%s1061_s6 + $0x24] sm:$0x10]  ;;  %v945_v15 = vld [vmem:[%s1061_s6 + $0x24] sm:$0xf]  ;;  %v961_v19 = vld [vmem:[%s1061_s6 + $0x18] sm:$0xff] }
  0x19   : > { %951 = vmatmul.msk.bf16.vlgmr.msra.gmra.mxu3 %vm211_vm1, %v636_v39  ;;  %889 = vmatmul.msk.bf16.vlgmr.msra.gmra.mxu1 %vm211_vm1, %v324_v40  ;;  %v484_v41 = vsel %vm312_vm3, %v479_v38, %v483_v35  ;;  %v332_v56 = vsel %vm312_vm3, %v327_v51, %v331_v52  ;;  %v492_v57 = vsel %vm312_vm3, %v487_v53, %v491_v54  ;;  %v337_v63 = vshll.u32 %v966_v58, 16  ;;  %v979_v16 = vld [vmem:[%s1061_s6 + $0x24] sm:$0x10]  ;;  %v180_v32 = vld [vmem:[%s1061_s6 + $0x20] sm:$0xf] }
  0x1a   : > { %920 = vmatmul.msk.bf16.vlgmr.msra.gmra.mxu2 %vm211_vm1, %v484_v41  ;;  %v493_v0 = vshrl.u32 %v971_v43, 16  ;;  %v497_v1 = vshll.u32 %v972_v59, 16  ;;  %v639_v2 = vrot.slane %v978_v60, 1  ;;  %v335_v3 = vor.u32 %v333_v62, %v331_v52 }
  0x1b   : > { %v339_v4 = vrot.slane %v337_v63, 1  ;;  %v884_v14 = vor.u32 %v967_v11, %v883_v10  ;;  %v915_v17 = vor.u32 %v973_v13, %v914_v12  ;;  %v946_v18 = vor.u32 %v979_v16, %v945_v15 }
  0x1c   : > { %v495_v5 = vor.u32 %v493_v0, %v491_v54  ;;  %v499_v6 = vrot.slane %v497_v1, 1  ;;  %v640_v7 = vsel %vm633_vm2, %v637_v50, %v639_v2  ;;  %v341_v20 = vshrl.u32 %v966_v58, 16 }
  0x1d   : > { %v340_v8 = vsel %vm312_vm3, %v335_v3, %v339_v4  ;;  %v345_v21 = vshll.u32 %v884_v14, 16  ;;  %v501_v22 = vshrl.u32 %v972_v59, 16  ;;  %v505_v23 = vshll.u32 %v915_v17, 16 }
  0x1e   : > { %v500_v9 = vsel %vm312_vm3, %v495_v5, %v499_v6  ;;  %v641_v24 = vrot.slane %v946_v18, 1  ;;  %v343_v25 = vor.u32 %v341_v20, %v339_v4  ;;  %v200_v33 = vunpack.c.l.b16 %v180_v32  ;;  %v1134_v5 = vld [vmem:[%s1199_s2] ss:$0 sm:$0xff] }
  0x1f   : > { %v347_v26 = vrot.slane %v345_v21, 1  ;;  %v503_v27 = vor.u32 %v501_v22, %v499_v6  ;;  %v507_v28 = vrot.slane %v505_v23, 1  ;;  %v349_v35 = vshrl.u32 %v884_v14, 16 }
  0x20   : > { %v642_v29 = vsel %vm633_vm2, %v639_v2, %v641_v24  ;;  %v205_v34 = vpack.c.b16 %v200_v33, %v200_v33  ;;  %v509_v36 = vshrl.u32 %v915_v17, 16 }
  0x21   : > { %v348_v30 = vsel %vm312_vm3, %v343_v25, %v347_v26  ;;  %v508_v31 = vsel %vm312_vm3, %v503_v27, %v507_v28  ;;  %v351_v37 = vor.u32 %v349_v35, %v347_v26 }
  0x22   : > { %859 = vmatmul.msk.bf16.gmra.mxu0 %vm211_vm1, %v959_v45  ;;  %v511_v38 = vor.u32 %v509_v36, %v507_v28 }
  0x29   : > { %952 = vmatmul.msk.bf16.gmra.mxu3 %vm211_vm1, %v638_v55  ;;  %890 = vmatmul.msk.bf16.gmra.mxu1 %vm211_vm1, %v332_v56 }
  0x2a   : > { %921 = vmatmul.msk.bf16.gmra.mxu2 %vm211_vm1, %v492_v57 }
  0x32   : > { %860 = vmatmul.msk.bf16.gmra.mxu0 %vm211_vm1, %v960_v61 }
  0x39   : > { %953 = vmatmul.msk.bf16.gmra.mxu3 %vm211_vm1, %v640_v7  ;;  %891 = vmatmul.msk.bf16.gmra.mxu1 %vm211_vm1, %v340_v8 }
  0x3a   : > { %922 = vmatmul.msk.bf16.gmra.mxu2 %vm211_vm1, %v500_v9 }
  0x42   : > { %861 = vmatmul.msk.bf16.gmra.mxu0 %vm211_vm1, %v961_v19 }
  0x49   : > { %954 = vmatmul.msk.bf16.gmra.mxu3 %vm211_vm1, %v642_v29  ;;  %892 = vmatmul.msk.bf16.gmra.mxu1 %vm211_vm1, %v348_v30 }
  0x4a   : > { %923 = vmatmul.msk.bf16.gmra.mxu2 %vm211_vm1, %v508_v31 }
  0x52   : > { %862 = vmatmul.msk.bf16.gmra.mxu0 %vm211_vm1, %v205_v34 }
  0x59   : > { %955 = vmatmul.msk.bf16.gmra.mxu3 %vm211_vm1, %v641_v24  ;;  %893 = vmatmul.msk.bf16.gmra.mxu1 %vm211_vm1, %v351_v37 }
  0x5a   : > { %924 = vmatmul.msk.bf16.gmra.mxu2 %vm211_vm1, %v511_v38 }
  0x8f   : > { %v240_v39 = vpop.f32.mrf.mxu0 }
  0x90   : > { %265 = vst.msk [vmem:[#allocation2] sm:$0xff] %vm264_vm4, %v240_v39 }
  0x96   : > { %v384_v40 = vpop.f32.mrf.mxu1 }
  0x97   : > { %v408_v41 = vld [vmem:[#allocation2] sm:$0xff]  ;;  %v242_v42 = vpop.f32.mrf.mxu0 }
  0x98   : > { %v417_v43 = vadd.f32 %v408_v41, %v384_v40  ;;  %266 = vst.msk [vmem:[#allocation2 + $0x8] sm:$0xff] %vm264_vm4, %v242_v42 }
  0x9a   : > { %426 = vst.msk [vmem:[#allocation2] sm:$0xff] %vm264_vm4, %v417_v43 }
  0x9c   : > { %v675_v44 = vpop.f32.mrf.mxu3 }
  0x9d   : > { %v544_v45 = vpop.f32.mrf.mxu2 }
  0x9e   : > { %v386_v46 = vpop.f32.mrf.mxu1 }
  0x9f   : > { %v409_v47 = vld [vmem:[#allocation2 + $0x8] sm:$0xff]  ;;  %v245_v48 = vpop.f32.mrf.mxu0 }
  0xa0   : > { %v418_v49 = vadd.f32 %v409_v47, %v386_v46  ;;  %267 = vst.msk [vmem:[#allocation2 + $0x10] sm:$0xff] %vm264_vm4, %v245_v48 }
  0xa1   : > { %v568_v50 = vld [vmem:[#allocation2] sm:$0xff] }
  0xa2   : > { %v577_v51 = vadd.f32 %v568_v50, %v544_v45  ;;  %427 = vst.msk [vmem:[#allocation2 + $0x8] sm:$0xff] %vm264_vm4, %v418_v49 }
  0xa4   : > { %v677_v52 = vpop.f32.mrf.mxu3  ;;  %586 = vst.msk [vmem:[#allocation2] sm:$0xff] %vm264_vm4, %v577_v51 }
  0xa5   : > { %v546_v53 = vpop.f32.mrf.mxu2 }
  0xa6   : > { %v389_v54 = vpop.f32.mrf.mxu1 }
  0xa7   : > { %v410_v55 = vld [vmem:[#allocation2 + $0x10] sm:$0xff]  ;;  %v247_v56 = vpop.f32.mrf.mxu0 }
  0xa8   : > { %v419_v57 = vadd.f32 %v410_v55, %v389_v54  ;;  %268 = vst.msk [vmem:[#allocation2 + $0x18] sm:$0xff] %vm264_vm4, %v247_v56 }
  0xa9   : > { %v569_v58 = vld [vmem:[#allocation2 + $0x8] sm:$0xff] }
  0xaa   : > { %v578_v59 = vadd.f32 %v569_v58, %v546_v53  ;;  %428 = vst.msk [vmem:[#allocation2 + $0x10] sm:$0xff] %vm264_vm4, %v419_v57 }
  0xab   : > { %v699_v60 = vld [vmem:[#allocation2] sm:$0xff] }
  0xac   : > { %v680_v61 = vpop.f32.mrf.mxu3  ;;  %v708_v62 = vadd.f32 %v699_v60, %v675_v44  ;;  %587 = vst.msk [vmem:[#allocation2 + $0x8] sm:$0xff] %vm264_vm4, %v578_v59 }
  0xad   : > { %v549_v63 = vpop.f32.mrf.mxu2 }
  0xae   : > { %717 = vst.msk [vmem:[#allocation2] sm:$0xff] %vm264_vm4, %v708_v62  ;;  %v391_v0 = vpop.f32.mrf.mxu1 }
  0xaf   : > { %v411_v1 = vld [vmem:[#allocation2 + $0x18] sm:$0xff]  ;;  %v250_v2 = vpop.f32.mrf.mxu0 }
  0xb0   : > { %v420_v3 = vadd.f32 %v411_v1, %v391_v0  ;;  %269 = vst.msk [vmem:[#allocation2 + $0x20] sm:$0xff] %vm264_vm4, %v250_v2 }
  0xb1   : > { %v570_v4 = vld [vmem:[#allocation2 + $0x10] sm:$0xff] }
  0xb2   : > { %v579_v6 = vadd.f32 %v570_v4, %v549_v63  ;;  %429 = vst.msk [vmem:[#allocation2 + $0x18] sm:$0xff] %vm264_vm4, %v420_v3 }
  0xb3   : > { %v700_v7 = vld [vmem:[#allocation2 + $0x8] sm:$0xff] }
  0xb4   : > { %v682_v8 = vpop.f32.mrf.mxu3  ;;  %v709_v9 = vadd.f32 %v700_v7, %v677_v52  ;;  %588 = vst.msk [vmem:[#allocation2 + $0x10] sm:$0xff] %vm264_vm4, %v579_v6 }
  0xb5   : > { %v726_v10 = vld [vmem:[#allocation2] sm:$0xff]  ;;  %v551_v11 = vpop.f32.mrf.mxu2 }
  0xb6   : > { %v739_v12 = vadd.f32 %v1134_v5, %v726_v10  ;;  %718 = vst.msk [vmem:[#allocation2 + $0x8] sm:$0xff] %vm264_vm4, %v709_v9  ;;  %v394_v13 = vpop.f32.mrf.mxu1 }
  0xb7   : > { %v412_v14 = vld [vmem:[#allocation2 + $0x20] sm:$0xff]  ;;  %v252_v15 = vpop.f32.mrf.mxu0 }
  0xb8   : > { %v748_v16 = vmax.f32 %v739_v12, 0.0  ;;  %v421_v17 = vadd.f32 %v412_v14, %v394_v13  ;;  %270 = vst.msk [vmem:[#allocation2 + $0x28] sm:$0xff] %vm264_vm4, %v252_v15 }
  0xb9   : > { %v571_v18 = vld [vmem:[#allocation2 + $0x18] sm:$0xff] }
  0xba   : > { %v757_v19 = vpack.c.bf16 %v748_v16, %v748_v16  ;;  %v580_v20 = vadd.f32 %v571_v18, %v551_v11  ;;  %430 = vst.msk [vmem:[#allocation2 + $0x20] sm:$0xff] %vm264_vm4, %v421_v17 }
  0xbb   : > { %v701_v21 = vld [vmem:[#allocation2 + $0x10] sm:$0xff] }
  0xbc   : > { %v685_v22 = vpop.f32.mrf.mxu3  ;;  %767 = vst.msk [vmem:[%s1145_s14] sm:$0xf] %vm766_vm5, %v757_v19  ;;  %v710_v23 = vadd.f32 %v701_v21, %v680_v61 }
  0xbd   : > { %v727_v24 = vld [vmem:[#allocation2 + $0x8] sm:$0xff]  ;;  %589 = vst.msk [vmem:[#allocation2 + $0x18] sm:$0xff] %vm264_vm4, %v580_v20  ;;  %v554_v25 = vpop.f32.mrf.mxu2 }
  0xbe   : > { %v740_v26 = vadd.f32 %v1134_v5, %v727_v24  ;;  %719 = vst.msk [vmem:[#allocation2 + $0x10] sm:$0xff] %vm264_vm4, %v710_v23  ;;  %v396_v27 = vpop.f32.mrf.mxu1 }
  0xbf   : > { %v413_v28 = vld [vmem:[#allocation2 + $0x28] sm:$0xff]  ;;  %v255_v29 = vpop.f32.mrf.mxu0 }
  0xc0   : > { %v749_v30 = vmax.f32 %v740_v26, 0.0  ;;  %v422_v31 = vadd.f32 %v413_v28, %v396_v27  ;;  %271 = vst.msk [vmem:[#allocation2 + $0x30] sm:$0xff] %vm264_vm4, %v255_v29 }
  0xc1   : > { %v572_v32 = vld [vmem:[#allocation2 + $0x20] sm:$0xff] }
  0xc2   : > { %v758_v33 = vpack.c.bf16 %v749_v30, %v749_v30  ;;  %v581_v34 = vadd.f32 %v572_v32, %v554_v25  ;;  %431 = vst.msk [vmem:[#allocation2 + $0x28] sm:$0xff] %vm264_vm4, %v422_v31 }
  0xc4   : > { %v687_v35 = vpop.f32.mrf.mxu3  ;;  %768 = vst.msk [vmem:[%s1145_s14 + $0x4] sm:$0xf] %vm766_vm5, %v758_v33  ;;  %v702_v36 = vld [vmem:[#allocation2 + $0x18] sm:$0xff] }
  0xc5   : > { %v728_v37 = vld [vmem:[#allocation2 + $0x10] sm:$0xff]  ;;  %v711_v38 = vadd.f32 %v702_v36, %v682_v8  ;;  %590 = vst.msk [vmem:[#allocation2 + $0x20] sm:$0xff] %vm264_vm4, %v581_v34  ;;  %v556_v39 = vpop.f32.mrf.mxu2 }
  0xc6   : > { %v741_v40 = vadd.f32 %v1134_v5, %v728_v37  ;;  %v399_v41 = vpop.f32.mrf.mxu1 }
  0xc7   : > { %720 = vst.msk [vmem:[#allocation2 + $0x18] sm:$0xff] %vm264_vm4, %v711_v38  ;;  %v414_v42 = vld [vmem:[#allocation2 + $0x30] sm:$0xff]  ;;  %v257_v43 = vpop.f32.mrf.mxu0 }
  0xc8   : > { %v750_v44 = vmax.f32 %v741_v40, 0.0  ;;  %v423_v45 = vadd.f32 %v414_v42, %v399_v41  ;;  %272 = vst.msk [vmem:[#allocation2 + $0x38] sm:$0xff] %vm264_vm4, %v257_v43 }
  0xc9   : > { %v573_v46 = vld [vmem:[#allocation2 + $0x28] sm:$0xff] }
  0xca   : > { %v759_v47 = vpack.c.bf16 %v750_v44, %v750_v44  ;;  %v582_v48 = vadd.f32 %v573_v46, %v556_v39  ;;  %432 = vst.msk [vmem:[#allocation2 + $0x30] sm:$0xff] %vm264_vm4, %v423_v45 }
  0xcc   : > { %v690_v49 = vpop.f32.mrf.mxu3  ;;  %769 = vst.msk [vmem:[%s1145_s14 + $0x8] sm:$0xf] %vm766_vm5, %v759_v47  ;;  %v703_v50 = vld [vmem:[#allocation2 + $0x20] sm:$0xff] }
  0xcd   : > { %v712_v51 = vadd.f32 %v703_v50, %v685_v22  ;;  %591 = vst.msk [vmem:[#allocation2 + $0x28] sm:$0xff] %vm264_vm4, %v582_v48  ;;  %v559_v52 = vpop.f32.mrf.mxu2 }
  0xce   : > { %v729_v53 = vld [vmem:[#allocation2 + $0x18] sm:$0xff]  ;;  %v401_v54 = vpop.f32.mrf.mxu1 }
  0xcf   : > { %v742_v55 = vadd.f32 %v1134_v5, %v729_v53  ;;  %721 = vst.msk [vmem:[#allocation2 + $0x20] sm:$0xff] %vm264_vm4, %v712_v51  ;;  %v415_v56 = vld [vmem:[#allocation2 + $0x38] sm:$0xff]  ;;  %v260_v57 = vpop.f32.mrf.mxu0 }
  0xd0   : > { %v424_v58 = vadd.f32 %v415_v56, %v401_v54  ;;  %273 = vst.msk [vmem:[#allocation2 + $0x40] sm:$0xff] %vm264_vm4, %v260_v57 }
  0xd1   : > { %v751_v59 = vmax.f32 %v742_v55, 0.0  ;;  %v574_v60 = vld [vmem:[#allocation2 + $0x30] sm:$0xff] }
  0xd2   : > { %v583_v61 = vadd.f32 %v574_v60, %v559_v52  ;;  %433 = vst.msk [vmem:[#allocation2 + $0x38] sm:$0xff] %vm264_vm4, %v424_v58 }
  0xd3   : > { %v760_v62 = vpack.c.bf16 %v751_v59, %v751_v59 }
  0xd4   : > { %v692_v63 = vpop.f32.mrf.mxu3  ;;  %v704_v0 = vld [vmem:[#allocation2 + $0x28] sm:$0xff]  ;;  %592 = vst.msk [vmem:[#allocation2 + $0x30] sm:$0xff] %vm264_vm4, %v583_v61 }
  0xd5   : > { %770 = vst.msk [vmem:[%s1145_s14 + $0xc] sm:$0xf] %vm766_vm5, %v760_v62  ;;  %v713_v1 = vadd.f32 %v704_v0, %v687_v35  ;;  %v561_v2 = vpop.f32.mrf.mxu2 }
  0xd6   : > { %v730_v3 = vld [vmem:[#allocation2 + $0x20] sm:$0xff]  ;;  %v404_v4 = vpop.f32.mrf.mxu1 }
  0xd7   : > { %v743_v6 = vadd.f32 %v1134_v5, %v730_v3  ;;  %722 = vst.msk [vmem:[#allocation2 + $0x28] sm:$0xff] %vm264_vm4, %v713_v1  ;;  %v416_v7 = vld [vmem:[#allocation2 + $0x40] sm:$0xff]  ;;  %v262_v8 = vpop.f32.mrf.mxu0 }
  0xd8   : > { %v425_v9 = vadd.f32 %v416_v7, %v404_v4 }
  0xd9   : > { %v752_v10 = vmax.f32 %v743_v6, 0.0  ;;  %v575_v11 = vld [vmem:[#allocation2 + $0x38] sm:$0xff] }
  0xda   : > { %v584_v12 = vadd.f32 %v575_v11, %v561_v2  ;;  %434 = vst.msk [vmem:[#allocation2 + $0x40] sm:$0xff] %vm264_vm4, %v425_v9 }
  0xdb   : > { %v761_v13 = vpack.c.bf16 %v752_v10, %v752_v10  ;;  %v705_v14 = vld [vmem:[#allocation2 + $0x30] sm:$0xff] }
  0xdc   : > { %v695_v15 = vpop.f32.mrf.mxu3  ;;  %v714_v16 = vadd.f32 %v705_v14, %v690_v49  ;;  %593 = vst.msk [vmem:[#allocation2 + $0x38] sm:$0xff] %vm264_vm4, %v584_v12 }
  0xdd   : > { %771 = vst.msk [vmem:[%s1145_s14 + $0x10] sm:$0xf] %vm766_vm5, %v761_v13  ;;  %v564_v17 = vpop.f32.mrf.mxu2 }
  0xde   : > { %v731_v18 = vld [vmem:[#allocation2 + $0x28] sm:$0xff]  ;;  %723 = vst.msk [vmem:[#allocation2 + $0x30] sm:$0xff] %vm264_vm4, %v714_v16  ;;  %v406_v19 = vpop.f32.mrf.mxu1 }
  0xdf   : > { %v744_v20 = vadd.f32 %v1134_v5, %v731_v18 }
  0xe1   : > { %v753_v21 = vmax.f32 %v744_v20, 0.0  ;;  %v576_v22 = vld [vmem:[#allocation2 + $0x40] sm:$0xff] }
  0xe2   : > { %v585_v23 = vadd.f32 %v576_v22, %v564_v17 }
  0xe3   : > { %v762_v24 = vpack.c.bf16 %v753_v21, %v753_v21  ;;  %v706_v25 = vld [vmem:[#allocation2 + $0x38] sm:$0xff] }
  0xe4   : > { %v697_v26 = vpop.f32.mrf.mxu3  ;;  %v715_v27 = vadd.f32 %v706_v25, %v692_v63  ;;  %594 = vst.msk [vmem:[#allocation2 + $0x40] sm:$0xff] %vm264_vm4, %v585_v23 }
  0xe5   : > { %772 = vst.msk [vmem:[%s1145_s14 + $0x14] sm:$0xf] %vm766_vm5, %v762_v24  ;;  %v732_v28 = vld [vmem:[#allocation2 + $0x30] sm:$0xff]  ;;  %v566_v29 = vpop.f32.mrf.mxu2 }
  0xe6   : > { %v745_v30 = vadd.f32 %v1134_v5, %v732_v28  ;;  %724 = vst.msk [vmem:[#allocation2 + $0x38] sm:$0xff] %vm264_vm4, %v715_v27 }
  0xe8   : > { %v754_v31 = vmax.f32 %v745_v30, 0.0 }
  0xea   : > { %v763_v32 = vpack.c.bf16 %v754_v31, %v754_v31 }
  0xeb   : > { %v707_v33 = vld [vmem:[#allocation2 + $0x40] sm:$0xff] }
  0xec   : > { %773 = vst.msk [vmem:[%s1145_s14 + $0x18] sm:$0xf] %vm766_vm5, %v763_v32  ;;  %v716_v34 = vadd.f32 %v707_v33, %v695_v15 }
  0xed   : > { %v733_v35 = vld [vmem:[#allocation2 + $0x38] sm:$0xff] }
  0xee   : > { %v746_v36 = vadd.f32 %v1134_v5, %v733_v35  ;;  %725 = vst.msk [vmem:[#allocation2 + $0x40] sm:$0xff] %vm264_vm4, %v716_v34 }
  0xf0   : > { %v755_v37 = vmax.f32 %v746_v36, 0.0 }
  0xf2   : > { %v764_v38 = vpack.c.bf16 %v755_v37, %v755_v37 }
  0xf4   : > { %774 = vst.msk [vmem:[%s1145_s14 + $0x1c] sm:$0xf] %vm766_vm5, %v764_v38 }
  0xf5   : > { %v734_v39 = vld [vmem:[#allocation2 + $0x40] sm:$0xff] }
  0xf6   : > { %v747_v40 = vadd.f32 %v1134_v5, %v734_v39 }
  0xf8   : > { %v756_v41 = vmax.f32 %v747_v40, 0.0 }
  0xfa   : > { %v765_v42 = vpack.c.bf16 %v756_v41, %v756_v41 }
  0xfc   : > { %775 = vst.msk [vmem:[%s1145_s14 + $0x20] sm:$0xf] %vm766_vm5, %v765_v42 }
  0xfd PF: > { %s13_s12 = sadd.s32 1, %s998_s12  }
  0xfe   : > { %p10_p4 = scmp.ge.s32.totalorder %s13_s12, 4  }
 0x100   :  { %12 = sbr.rel (!%p10_p4) target bundleno = 1 (0x1), region = 65 }

// kernel: vae_forward.9
= control target key start
LH: loop header
LB: loop body
LE: loop exit
PB: predicated region body
PF: predicated region fallthrough
CT: control target
= control target key end

     0   :  { %s999_s12 = smov 0   ;;  %s1150_s0 = inlined_call_operand.vmem [shape: bf16[2,32,128], index: 0, kind: input, shape index: {}]   ;;  %s1151_s1 = inlined_call_operand.vmem [shape: bf16[4,128,64], index: 1, kind: input, shape index: {}]   ;;  %s1152_s2 = inlined_call_operand.vmem [shape: f32[1,64], index: 2, kind: input, shape index: {}]   ;;  %s1153_s3 = inlined_call_operand.vmem [shape: bf16[2,24,64], index: 3, kind: output, shape index: {}]  }
   0x1 LB: > { %s707_s13 = sadd.s32 4294967295, %s977_s12   ;;  %p711_p0 = scmp.ge.s32.totalorder %s977_s12, 1  ;;  %s977_s12 = sphi %s999_s12, %s13_s12  }
   0x2   : > { %p137_p1 = scmp.lt.s32.totalorder %s977_s12, 3 }
   0x4   : > { %p138_p2 = pnand %p711_p0, %p137_p1 }
   0x5   : > { %p161_p3 = scmp.lt.s32.totalorder (!%p138_p2), %s707_s13, 1 }
   0x6   : > { %141 = sbr.rel (%p138_p2) target bundleno = 230 (0xe6), region = 32 }
   0xb   : > { %v930_v0 = vld [vmem:[%s1151_s1 + $0x38] sm:$0xff]  ;;  %v929_v3 = vld [vmem:[%s1151_s1 + $0x30] sm:$0xff]  ;;  %s1155_s13 = smov (!%p161_p3, %s707_s13), 1  ;;  %v928_v8 = vld [vmem:[%s1151_s1 + $0x28] sm:$0xff]  ;;  %vm301_vm0 = vsmask.f32 7424 }
   0xc   : > { %v940_v1 = vld [vmem:[%s1151_s1 + $0x78] sm:$0xff]  ;;  %248 = vmatpush.bf16.msra.mxu0 %v930_v0  ;;  %v939_v4 = vld [vmem:[%s1151_s1 + $0x70] sm:$0xff]  ;;  %v938_v9 = vld [vmem:[%s1151_s1 + $0x68] sm:$0xff]  ;;  %s921_s9 = sshll.u32 %s1155_s13, 4  ;;  %vm425_vm1 = vsmask.f32 5376 }
   0xd   : > { %v950_v2 = vld [vmem:[%s1151_s1 + $0xb8] sm:$0xff]  ;;  %367 = vmatpush.bf16.msra.mxu1 %v940_v1  ;;  %v949_v5 = vld [vmem:[%s1151_s1 + $0xb0] sm:$0xff]  ;;  %v948_v10 = vld [vmem:[%s1151_s1 + $0xa8] sm:$0xff]  ;;  %s1055_s20 = scalar_lea.vmem %s1150_s0, %s921_s9  ;;  %vm551_vm2 = vcmask 1044480   ;;  %vm266_vm3 = vcmask 523264   ;;  %s961_s7 = smul.u32 12, %s1155_s13 }
   0xe   : > { %493 = vmatpush.bf16.msra.mxu2 %v950_v2  ;;  %v960_v6 = vld [vmem:[%s1151_s1 + $0xf8] sm:$0xff]  ;;  %v959_v7 = vld [vmem:[%s1151_s1 + $0xf0] sm:$0xff]  ;;  %v958_v11 = vld [vmem:[%s1151_s1 + $0xe8] sm:$0xff]  ;;  %vm648_vm4 = vcmask 519168  }
   0xf   : > { %605 = vmatpush.bf16.msra.mxu3 %v960_v6  ;;  %v927_v12 = vld [vmem:[%s1151_s1 + $0x20] sm:$0xff]  ;;  %v829_v17 = vld [vmem:[%s1055_s20 + $0x8] sm:$0xf]  ;;  %v942_v18 = vld [vmem:[%s1055_s20 + $0x8] sm:$0x70]  ;;  %s170_s10 = scalar_lea.vmem %s1153_s3, %s961_s7 }
  0x10   : > { %249 = vmatpush.bf16.msra.mxu0 %v929_v3  ;;  %v937_v13 = vld [vmem:[%s1151_s1 + $0x60] sm:$0xff]  ;;  %v926_v19 = vld [vmem:[%s1151_s1 + $0x18] sm:$0xff]  ;;  %v773_v23 = vld [vmem:[%s1055_s20 + $0x8] sm:$0xf]  ;;  %v830_v27 = vor.u32 %v942_v18, %v829_v17 }
  0x11   : > { %368 = vmatpush.bf16.msra.mxu1 %v939_v4  ;;  %v947_v14 = vld [vmem:[%s1151_s1 + $0xa0] sm:$0xff]  ;;  %v936_v22 = vld [vmem:[%s1151_s1 + $0x58] sm:$0xff]  ;;  %v932_v24 = vld [vmem:[%s1055_s20 + $0x8] sm:$0x10] }
  0x12   : > { %494 = vmatpush.bf16.msra.mxu2 %v949_v5  ;;  %v825_v15 = vld [vmem:[%s1055_s20] sm:$0xc]  ;;  %v941_v16 = vld [vmem:[%s1055_s20] sm:$0xf0]  ;;  %v946_v25 = vld [vmem:[%s1151_s1 + $0x98] sm:$0xff]  ;;  %v1082_v29 = vor.u32 %v932_v24, %v773_v23  ;;  %v435_v36 = vshrl.u32 %v830_v27, 16 }
  0x13   : > { %606 = vmatpush.bf16.msra.mxu3 %v959_v7  ;;  %v957_v20 = vld [vmem:[%s1151_s1 + $0xe0] sm:$0xff]  ;;  %v826_v26 = vor.u32 %v941_v16, %v825_v15  ;;  %v956_v28 = vld [vmem:[%s1151_s1 + $0xd8] sm:$0xff]  ;;  %v925_v31 = vld [vmem:[%s1151_s1 + $0x10] sm:$0xff]  ;;  %v438_v37 = vshll.u32 %v830_v27, 16 }
  0x14   : > { %250 = vmatpush.bf16.msra.mxu0 %v928_v8  ;;  %v931_v21 = vld [vmem:[%s1055_s20] sm:$0xff]  ;;  %v935_v32 = vld [vmem:[%s1151_s1 + $0x50] sm:$0xff]  ;;  %v924_v38 = vld [vmem:[%s1151_s1 + $0x8] sm:$0xff]  ;;  %v310_v43 = vshll.u32 %v1082_v29, 16  ;;  %v437_v50 = vrot.slane %v435_v36, 2  ;;  %v314_v8 = vshrl.u32 %v1082_v29, 16 }
  0x15   : > { %369 = vmatpush.bf16.msra.mxu1 %v938_v9  ;;  %v305_v30 = vshll.u32 %v931_v21, 16  ;;  %v945_v33 = vld [vmem:[%s1151_s1 + $0x90] sm:$0xff]  ;;  %v427_v34 = vshrl.u32 %v826_v26, 16  ;;  %v430_v35 = vshll.u32 %v826_v26, 16  ;;  %v934_v39 = vld [vmem:[%s1151_s1 + $0x48] sm:$0xff]  ;;  %v303_v41 = vshrl.u32 %v931_v21, 16 }
  0x16   : > { %495 = vmatpush.bf16.msra.mxu2 %v948_v10  ;;  %v944_v40 = vld [vmem:[%s1151_s1 + $0x88] sm:$0xff]  ;;  %v955_v44 = vld [vmem:[%s1151_s1 + $0xd0] sm:$0xff]  ;;  %v881_v45 = vld [vmem:[%s1055_s20] sm:$0x8]  ;;  %v440_v51 = vrot.slane %v438_v37, 3  ;;  %v312_v57 = vrot.slane %v310_v43, 1 }
  0x17   : > { %607 = vmatpush.bf16.msra.mxu3 %v958_v11  ;;  %v307_v42 = vrot.slane %v305_v30, 1  ;;  %v951_v46 = vld [vmem:[%s1055_s20] sm:$0xf0]  ;;  %v885_v47 = vld [vmem:[%s1055_s20 + $0x8] sm:$0xf]  ;;  %v429_v48 = vrot.slane %v427_v34, 2 }
  0x18   : > { %251 = vmatpush.bf16.msra.mxu0 %v927_v12  ;;  %v432_v49 = vrot.slane %v430_v35, 3  ;;  %v952_v52 = vld [vmem:[%s1055_s20 + $0x8] sm:$0x70]  ;;  %v923_v54 = vld [vmem:[%s1151_s1] sm:$0xff]  ;;  %v882_v58 = vor.u32 %v951_v46, %v881_v45  ;;  %v441_v62 = vor.u32 %v440_v51, %v437_v50  ;;  %v173_v6 = vld [vmem:[%s1055_s20 + $0x8] sm:$0xf]  ;;  %v316_v10 = vor.u32 %v314_v8, %v312_v57 }
  0x19   : > { %370 = vmatpush.bf16.msra.mxu1 %v937_v13  ;;  %v954_v53 = vld [vmem:[%s1151_s1 + $0xc8] sm:$0xff]  ;;  %v933_v55 = vld [vmem:[%s1151_s1 + $0x40] sm:$0xff]  ;;  %v308_v56 = vor.u32 %v307_v42, %v303_v41  ;;  %v886_v59 = vor.u32 %v952_v52, %v885_v47  ;;  %v195_v7 = vunpack.c.l.b16 %v173_v6 }
  0x1a   : > { %496 = vmatpush.bf16.msra.mxu2 %v947_v14  ;;  %v943_v60 = vld [vmem:[%s1151_s1 + $0x80] sm:$0xff]  ;;  %v433_v61 = vor.u32 %v432_v49, %v429_v48  ;;  %v552_v2 = vrot.slane %v882_v58, 3 }
  0x1b   : > { %608 = vmatpush.bf16.msra.mxu3 %v957_v20  ;;  %v922_v63 = vld [vmem:[%s1055_s20] sm:$0xff]  ;;  %v313_v0 = vsel %vm301_vm0, %v308_v56, %v312_v57  ;;  %v553_v3 = vrot.slane %v886_v59, 3  ;;  %v197_v9 = vpack.c.b16 %v195_v7, %v195_v7 }
  0x1c   : > { %252 = vmatpush.bf16.msra.mxu0 %v926_v19  ;;  %v953_v1 = vld [vmem:[%s1151_s1 + $0xc0] sm:$0xff]  ;;  %v442_v4 = vsel %vm425_vm1, %v433_v61, %v441_v62 }
  0x1d   : > { %371 = vmatpush.bf16.msra.mxu1 %v936_v22  ;;  %v554_v5 = vsel %vm551_vm2, %v552_v2, %v553_v3 }
  0x1e   : > { %497 = vmatpush.bf16.msra.mxu2 %v946_v25 }
  0x1f   : > { %609 = vmatpush.bf16.msra.mxu3 %v956_v28 }
  0x20   : > { %253 = vmatpush.bf16.msra.mxu0 %v925_v31 }
  0x21   : > { %372 = vmatpush.bf16.msra.mxu1 %v935_v32 }
  0x22   : > { %498 = vmatpush.bf16.msra.mxu2 %v945_v33 }
  0x23   : > { %610 = vmatpush.bf16.msra.mxu3 %v955_v44 }
  0x24   : > { %254 = vmatpush.bf16.msra.mxu0 %v924_v38 }
  0x25   : > { %373 = vmatpush.bf16.msra.mxu1 %v934_v39 }
  0x26   : > { %499 = vmatpush.bf16.msra.mxu2 %v944_v40  ;;  %v970_v40 = vld [vmem:[%s1152_s2] ss:$0 sm:$0xff] }
  0x27   : > { %611 = vmatpush.bf16.msra.mxu3 %v954_v53 }
  0x28   : > { %255 = vmatpush.bf16.msra.mxu0 %v923_v54 }
  0x29   : > { %374 = vmatpush.bf16.msra.mxu1 %v933_v55 }
  0x2a   : > { %500 = vmatpush.bf16.msra.mxu2 %v943_v60 }
  0x2b   : > { %256 = vmatmul.bf16.vlgmr.msra.gmra.mxu0 %v922_v63  ;;  %612 = vmatpush.bf16.msra.mxu3 %v953_v1 }
  0x2c   : > { %375 = vmatmul.bf16.vlgmr.msra.gmra.mxu1 %v313_v0 }
  0x2d   : > { %501 = vmatmul.bf16.vlgmr.msra.gmra.mxu2 %v442_v4 }
  0x2e   : > { %613 = vmatmul.bf16.vlgmr.msra.gmra.mxu3 %v554_v5 }
  0x3b   : > { %261 = vmatmul.bf16.gmra.mxu0 %v197_v9 }
  0x3c   : > { %380 = vmatmul.bf16.gmra.mxu1 %v316_v10 }
  0x3d   : > { %506 = vmatmul.bf16.gmra.mxu2 %v441_v62 }
  0x3e   : > { %618 = vmatmul.bf16.gmra.mxu3 %v553_v3 }
  0xa8   : > { %v257_v11 = vpop.f32.mrf.mxu0 }
  0xa9   : > { %v376_v12 = vpop.f32.mrf.mxu1  ;;  %267 = vst.msk [vmem:[#allocation2] sm:$0xff] %vm266_vm3, %v257_v11 }
  0xb0   : > { %v502_v13 = vpop.f32.mrf.mxu2  ;;  %v385_v14 = vld [vmem:[#allocation2] sm:$0xff]  ;;  %v259_v15 = vpop.f32.mrf.mxu0 }
  0xb1   : > { %v378_v16 = vpop.f32.mrf.mxu1  ;;  %v388_v17 = vadd.f32 %v385_v14, %v376_v12  ;;  %268 = vst.msk [vmem:[#allocation2 + $0x8] sm:$0xff] %vm266_vm3, %v259_v15  ;;  %v614_v18 = vpop.f32.mrf.mxu3 }
  0xb3   : > { %391 = vst.msk [vmem:[#allocation2] sm:$0xff] %vm266_vm3, %v388_v17 }
  0xb8   : > { %v504_v19 = vpop.f32.mrf.mxu2  ;;  %v386_v20 = vld [vmem:[#allocation2 + $0x8] sm:$0xff]  ;;  %v262_v21 = vpop.f32.mrf.mxu0 }
  0xb9   : > { %v381_v22 = vpop.f32.mrf.mxu1  ;;  %v389_v23 = vadd.f32 %v386_v20, %v378_v16  ;;  %269 = vst.msk [vmem:[#allocation2 + $0x10] sm:$0xff] %vm266_vm3, %v262_v21  ;;  %v616_v25 = vpop.f32.mrf.mxu3 }
  0xba   : > { %v511_v24 = vld [vmem:[#allocation2] sm:$0xff] }
  0xbb   : > { %392 = vst.msk [vmem:[#allocation2 + $0x8] sm:$0xff] %vm266_vm3, %v389_v23  ;;  %v514_v26 = vadd.f32 %v511_v24, %v502_v13 }
  0xbd   : > { %517 = vst.msk [vmem:[#allocation2] sm:$0xff] %vm266_vm3, %v514_v26 }
  0xc0   : > { %v507_v27 = vpop.f32.mrf.mxu2  ;;  %v387_v28 = vld [vmem:[#allocation2 + $0x10] sm:$0xff]  ;;  %v264_v29 = vpop.f32.mrf.mxu0 }
  0xc1   : > { %v383_v30 = vpop.f32.mrf.mxu1  ;;  %v390_v31 = vadd.f32 %v387_v28, %v381_v22  ;;  %v619_v33 = vpop.f32.mrf.mxu3 }
  0xc2   : > { %v512_v32 = vld [vmem:[#allocation2 + $0x8] sm:$0xff] }
  0xc3   : > { %393 = vst.msk [vmem:[#allocation2 + $0x10] sm:$0xff] %vm266_vm3, %v390_v31  ;;  %v515_v34 = vadd.f32 %v512_v32, %v504_v19 }
  0xc4   : > { %v623_v35 = vld [vmem:[#allocation2] sm:$0xff] }
  0xc5   : > { %518 = vst.msk [vmem:[#allocation2 + $0x8] sm:$0xff] %vm266_vm3, %v515_v34  ;;  %v626_v36 = vadd.f32 %v623_v35, %v614_v18 }
  0xc7   : > { %629 = vst.msk [vmem:[#allocation2] sm:$0xff] %vm266_vm3, %v626_v36 }
  0xc8   : > { %v509_v37 = vpop.f32.mrf.mxu2 }
  0xc9   : > { %v621_v39 = vpop.f32.mrf.mxu3 }
  0xca   : > { %v513_v38 = vld [vmem:[#allocation2 + $0x10] sm:$0xff] }
  0xcb   : > { %v516_v41 = vadd.f32 %v513_v38, %v507_v27 }
  0xcc   : > { %v624_v42 = vld [vmem:[#allocation2 + $0x8] sm:$0xff] }
  0xcd   : > { %519 = vst.msk [vmem:[#allocation2 + $0x10] sm:$0xff] %vm266_vm3, %v516_v41  ;;  %v627_v43 = vadd.f32 %v624_v42, %v616_v25 }
  0xce   : > { %v632_v44 = vld [vmem:[#allocation2] sm:$0xff] }
  0xcf   : > { %v639_v45 = vadd.f32 %v970_v40, %v632_v44  ;;  %630 = vst.msk [vmem:[#allocation2 + $0x8] sm:$0xff] %vm266_vm3, %v627_v43 }
  0xd1   : > { %v642_v46 = vmax.f32 %v639_v45, 0.0 }
  0xd3   : > { %v645_v47 = vpack.c.bf16 %v642_v46, %v642_v46 }
  0xd4   : > { %v625_v48 = vld [vmem:[#allocation2 + $0x10] sm:$0xff] }
  0xd5   : > { %649 = vst.msk [vmem:[%s170_s10] sm:$0xf] %vm648_vm4, %v645_v47  ;;  %v628_v49 = vadd.f32 %v625_v48, %v619_v33 }
  0xd6   : > { %v633_v50 = vld [vmem:[#allocation2 + $0x8] sm:$0xff] }
  0xd7   : > { %v640_v51 = vadd.f32 %v970_v40, %v633_v50  ;;  %631 = vst.msk [vmem:[#allocation2 + $0x10] sm:$0xff] %vm266_vm3, %v628_v49 }
  0xd9   : > { %v643_v52 = vmax.f32 %v640_v51, 0.0 }
  0xdb   : > { %v646_v53 = vpack.c.bf16 %v643_v52, %v643_v52 }
  0xdd   : > { %650 = vst.msk [vmem:[%s170_s10 + $0x4] sm:$0xf] %vm648_vm4, %v646_v53 }
  0xde   : > { %v634_v54 = vld [vmem:[#allocation2 + $0x10] sm:$0xff] }
  0xdf   : > { %v641_v55 = vadd.f32 %v970_v40, %v634_v54 }
  0xe1   : > { %v644_v56 = vmax.f32 %v641_v55, 0.0 }
  0xe3   : > { %v647_v57 = vpack.c.bf16 %v644_v56, %v644_v56 }
  0xe5   : > { %651 = vst.msk [vmem:[%s170_s10 + $0x8] sm:$0xf] %vm648_vm4, %v647_v57 }
  0xe6 PF: > { %s13_s12 = sadd.s32 1, %s977_s12  }
  0xe7   : > { %p10_p4 = scmp.ge.s32.totalorder %s13_s12, 4  }
  0xe9   :  { %12 = sbr.rel (!%p10_p4) target bundleno = 1 (0x1), region = 65 }

// kernel: vae_forward.12
= control target key start
LH: loop header
LB: loop body
LE: loop exit
PB: predicated region body
PF: predicated region fallthrough
CT: control target
= control target key end

     0   :  { %vm50_vm0 = vcmask 130048   ;;  %vm117_vm1 = vcmask 1040384   ;;  %vm121_vm2 = vcmask 1042434   ;;  %vm125_vm3 = vcmask 1041408   ;;  %s210_s1 = inlined_call_operand.vmem [shape: bf16[16,512], index: 1, kind: input, shape index: {}]   ;;  %s211_s0 = inlined_call_operand.vmem [shape: bf16[2,16], index: 0, kind: input, shape index: {}]   ;;  %s212_s2 = inlined_call_operand.vmem [shape: f32[1,512], index: 2, kind: input, shape index: {}]   ;;  %s213_s3 = inlined_call_operand.vmem [shape: bf16[2,512], index: 3, kind: output, shape index: {}]  }
   0x1   :  { %v135_v0 = vld [vmem:[%s210_s1] sm:$0xf]  ;;  %v155_v1 = vld [vmem:[%s210_s1 + $0xc] sm:$0xf0]  ;;  %v153_v2 = vld [vmem:[%s210_s1 + $0x4] sm:$0xf] }
   0x2   :  { %v136_v3 = vor.u32 %v155_v1, %v135_v0  ;;  %v137_v4 = vld [vmem:[%s210_s1 + $0x10] sm:$0xf0]  ;;  %v143_v5 = vld [vmem:[%s210_s1 + $0x8] sm:$0xf]  ;;  %v156_v6 = vld [vmem:[%s210_s1 + $0x14] sm:$0xf0] }
   0x3   :  { %v140_v7 = vor.u32 %v153_v2, %v137_v4  ;;  %v144_v8 = vor.u32 %v156_v6, %v143_v5  ;;  %v154_v9 = vld [vmem:[%s210_s1 + $0xc] sm:$0xf]  ;;  %v145_v10 = vld [vmem:[%s210_s1 + $0x18] sm:$0xf0]  ;;  %v15_v12 = vld [vmem:[%s211_s0] sm:$0x1] }
   0x4   :  { %61 = vmatpush.bf16.msra.mxu0 %v136_v3  ;;  %v148_v11 = vor.u32 %v154_v9, %v145_v10  ;;  %v20_v13 = vld [vmem:[%s212_s2] sm:$0xf] }
   0x5   :  { %74 = vmatpush.bf16.msra.mxu1 %v140_v7  ;;  %87 = vmatpush.bf16.msra.mxu2 %v144_v8  ;;  %v22_v14 = vperm.slane %v20_v13, 0  ;;  %v23_v15 = vperm.slane %v20_v13, 1  ;;  %v24_v20 = vperm.slane %v20_v13, 2  ;;  %v25_v23 = vperm.slane %v20_v13, 3 }
   0x6   :  { %100 = vmatpush.bf16.msra.mxu3 %v148_v11 }
   0x7   :  { %149 = vmatmul.msk.bf16.vlgmr.msra.gmra.mxu0 %vm50_vm0, %v15_v12 }
   0x8   :  { %150 = vmatmul.msk.bf16.vlgmr.msra.gmra.mxu1 %vm50_vm0, %v15_v12  ;;  %151 = vmatmul.msk.bf16.vlgmr.msra.gmra.mxu2 %vm50_vm0, %v15_v12 }
   0x9   :  { %152 = vmatmul.msk.bf16.vlgmr.msra.gmra.mxu3 %vm50_vm0, %v15_v12 }
  0x84   :  { %v63_v16 = vpop.f32.mrf.mxu0 }
  0x85   :  { %v64_v17 = vadd.f32 %v63_v16, %v22_v14  ;;  %v76_v18 = vpop.f32.mrf.mxu1 }
  0x86   :  { %v77_v19 = vadd.f32 %v76_v18, %v23_v15 }
  0x87   :  { %v106_v21 = vmax.f32 %v64_v17, 0.0 }
  0x88   :  { %v107_v22 = vmax.f32 %v77_v19, 0.0 }
  0x8a   :  { %v110_v28 = vpack.c.bf16 %v107_v22, %v106_v21 }
  0x8b   :  { %v89_v24 = vpop.f32.mrf.mxu2 }
  0x8c   :  { %v90_v25 = vadd.f32 %v89_v24, %v24_v20  ;;  %v102_v26 = vpop.f32.mrf.mxu3  ;;  %v65_v27 = vpop.f32.mrf.mxu0  ;;  %v114_v33 = vrot.slane %v110_v28, 3 }
  0x8d   :  { %v103_v29 = vadd.f32 %v102_v26, %v25_v23  ;;  %v78_v30 = vpop.f32.mrf.mxu1 }
  0x8e   :  { %v108_v31 = vmax.f32 %v90_v25, 0.0  ;;  %v120_v39 = vsel %vm117_vm1, %v110_v28, %v114_v33 }
  0x8f   :  { %v109_v32 = vmax.f32 %v103_v29, 0.0 }
  0x91   :  { %v111_v34 = vpack.c.bf16 %v109_v32, %v108_v31 }
  0x93   :  { %v115_v35 = vrot.slane %v111_v34, 6  ;;  %v116_v36 = vrot.slane %v111_v34, 1  ;;  %v91_v37 = vpop.f32.mrf.mxu2 }
  0x94   :  { %v104_v38 = vpop.f32.mrf.mxu3 }
  0x95   :  { %v124_v40 = vsel %vm121_vm2, %v115_v35, %v116_v36 }
  0x96   :  { %v126_v41 = vsel %vm125_vm3, %v120_v39, %v124_v40 }
  0x97   :  { %128 = vst [vmem:[%s213_s3] sm:$0xf] %v126_v41 }

// kernel: vae_forward.10
= control target key start
LH: loop header
LB: loop body
LE: loop exit
PB: predicated region body
PF: predicated region fallthrough
CT: control target
= control target key end

     0   :  { %s1430_s12 = smov 0   ;;  %s1661_s0 = inlined_call_operand.vmem [shape: bf16[2,16,256], index: 0, kind: input, shape index: {}]   ;;  %s1662_s1 = inlined_call_operand.vmem [shape: bf16[4,256,128], index: 1, kind: input, shape index: {}]   ;;  %s1663_s2 = inlined_call_operand.vmem [shape: f32[1,128], index: 2, kind: input, shape index: {}]   ;;  %s1664_s3 = inlined_call_operand.vmem [shape: bf16[2,8,128], index: 3, kind: output, shape index: {}]  }
   0x1 LB: > { %s936_s13 = sadd.s32 4294967295, %s1408_s12   ;;  %p940_p0 = scmp.ge.s32.totalorder %s1408_s12, 1  ;;  %s1408_s12 = sphi %s1430_s12, %s13_s12  }
   0x2   : > { %p137_p1 = scmp.lt.s32.totalorder %s1408_s12, 3 }
   0x4   : > { %p138_p2 = pnand %p940_p0, %p137_p1 }
   0x5   : > { %p160_p3 = scmp.lt.s32.totalorder (!%p138_p2), %s936_s13, 1 }
   0x6   : > { %141 = sbr.rel (%p138_p2) target bundleno = 221 (0xdd), region = 32 }
   0xb   : > { %v1330_v0 = vld [vmem:[%s1662_s1 + $0x38] sm:$0xff]  ;;  %v1329_v4 = vld [vmem:[%s1662_s1 + $0x30] sm:$0xff]  ;;  %s1666_s13 = smov (!%p160_p3, %s936_s13), 1  ;;  %v1328_v8 = vld [vmem:[%s1662_s1 + $0x28] sm:$0xff] }
   0xc   : > { %v1338_v1 = vld [vmem:[%s1662_s1 + $0x78] sm:$0xff]  ;;  %305 = vmatpush.bf16.msra.mxu0 %v1330_v0  ;;  %v1337_v5 = vld [vmem:[%s1662_s1 + $0x70] sm:$0xff]  ;;  %v1336_v9 = vld [vmem:[%s1662_s1 + $0x68] sm:$0xff]  ;;  %s1322_s11 = sshll.u32 %s1666_s13, 4  ;;  %s943_s26 = sshll.u32 %s1666_s13, 2 }
   0xd   : > { %v1348_v2 = vld [vmem:[%s1662_s1 + $0xb8] sm:$0xff]  ;;  %318 = vmatpush.bf16.msra.mxu1 %v1338_v1  ;;  %v1347_v6 = vld [vmem:[%s1662_s1 + $0xb0] sm:$0xff]  ;;  %v1346_v10 = vld [vmem:[%s1662_s1 + $0xa8] sm:$0xff]  ;;  %s1492_s24 = scalar_lea.vmem %s1661_s0, %s1322_s11  ;;  %s168_s29 = scalar_lea.vmem %s1664_s3, %s943_s26 }
   0xe   : > { %v1356_v3 = vld [vmem:[%s1662_s1 + $0xf8] sm:$0xff]  ;;  %487 = vmatpush.bf16.msra.mxu2 %v1348_v2  ;;  %v1355_v7 = vld [vmem:[%s1662_s1 + $0xf0] sm:$0xff]  ;;  %v1354_v11 = vld [vmem:[%s1662_s1 + $0xe8] sm:$0xff] }
   0xf   : > { %500 = vmatpush.bf16.msra.mxu3 %v1356_v3  ;;  %v1327_v12 = vld [vmem:[%s1662_s1 + $0x20] sm:$0xff]  ;;  %v1326_v16 = vld [vmem:[%s1662_s1 + $0x18] sm:$0xff]  ;;  %v1340_v21 = vld [vmem:[%s1492_s24 + $0x4] sm:$0x10] }
  0x10   : > { %306 = vmatpush.bf16.msra.mxu0 %v1329_v4  ;;  %v1335_v13 = vld [vmem:[%s1662_s1 + $0x60] sm:$0xff]  ;;  %v1334_v17 = vld [vmem:[%s1662_s1 + $0x58] sm:$0xff]  ;;  %v1044_v23 = vld [vmem:[%s1492_s24 + $0x8] sm:$0x10] }
  0x11   : > { %319 = vmatpush.bf16.msra.mxu1 %v1337_v5  ;;  %v1345_v14 = vld [vmem:[%s1662_s1 + $0xa0] sm:$0xff]  ;;  %v1344_v18 = vld [vmem:[%s1662_s1 + $0x98] sm:$0xff]  ;;  %v1325_v24 = vld [vmem:[%s1662_s1 + $0x10] sm:$0xff] }
  0x12   : > { %488 = vmatpush.bf16.msra.mxu2 %v1347_v6  ;;  %v1353_v15 = vld [vmem:[%s1662_s1 + $0xe0] sm:$0xff]  ;;  %v1352_v19 = vld [vmem:[%s1662_s1 + $0xd8] sm:$0xff]  ;;  %v1333_v25 = vld [vmem:[%s1662_s1 + $0x50] sm:$0xff] }
  0x13   : > { %501 = vmatpush.bf16.msra.mxu3 %v1355_v7  ;;  %v1042_v20 = vld [vmem:[%s1492_s24] sm:$0xf]  ;;  %v1339_v22 = vld [vmem:[%s1492_s24 + $0x4] sm:$0xf]  ;;  %v1343_v28 = vld [vmem:[%s1662_s1 + $0x90] sm:$0xff] }
  0x14   : > { %307 = vmatpush.bf16.msra.mxu0 %v1328_v8  ;;  %v1043_v26 = vor.u32 %v1340_v21, %v1042_v20  ;;  %v1047_v27 = vor.u32 %v1339_v22, %v1044_v23  ;;  %v1351_v29 = vld [vmem:[%s1662_s1 + $0xd0] sm:$0xff]  ;;  %v1324_v30 = vld [vmem:[%s1662_s1 + $0x8] sm:$0xff]  ;;  %v169_v36 = vld [vmem:[%s1492_s24] sm:$0xff] }
  0x15   : > { %320 = vmatpush.bf16.msra.mxu1 %v1336_v9  ;;  %v1332_v31 = vld [vmem:[%s1662_s1 + $0x48] sm:$0xff]  ;;  %v1323_v37 = vld [vmem:[%s1662_s1] sm:$0xff]  ;;  %v203_v45 = vunpack.c.l.b16 %v169_v36  ;;  %v204_v46 = vunpack.c.h.b16 %v169_v36  ;;  %v1366_v47 = vld [vmem:[%s1662_s1 + $0x138] sm:$0xff] }
  0x16   : > { %489 = vmatpush.bf16.msra.mxu2 %v1346_v10  ;;  %v378_v32 = vshll.u32 %v1043_v26, 16  ;;  %v385_v33 = vshll.u32 %v1047_v27, 16  ;;  %v1342_v34 = vld [vmem:[%s1662_s1 + $0x88] sm:$0xff]  ;;  %v1331_v38 = vld [vmem:[%s1662_s1 + $0x40] sm:$0xff]  ;;  %v376_v39 = vshrl.u32 %v1043_v26, 16  ;;  %v383_v41 = vshrl.u32 %v1047_v27, 16 }
  0x17   : > { %502 = vmatpush.bf16.msra.mxu3 %v1354_v11  ;;  %v1350_v35 = vld [vmem:[%s1662_s1 + $0xc8] sm:$0xff]  ;;  %v1341_v43 = vld [vmem:[%s1662_s1 + $0x80] sm:$0xff]  ;;  %v1374_v48 = vld [vmem:[%s1662_s1 + $0x178] sm:$0xff]  ;;  %v205_v53 = vpack.c.b16 %v203_v45, %v203_v45  ;;  %v206_v54 = vpack.c.b16 %v204_v46, %v204_v46 }
  0x18   : > { %308 = vmatpush.bf16.msra.mxu0 %v1327_v12  ;;  %v380_v40 = vrot.slane %v378_v32, 1  ;;  %v387_v42 = vrot.slane %v385_v33, 1  ;;  %v1349_v44 = vld [vmem:[%s1662_s1 + $0xc0] sm:$0xff]  ;;  %v1384_v49 = vld [vmem:[%s1662_s1 + $0x1b8] sm:$0xff]  ;;  %v1365_v55 = vld [vmem:[%s1662_s1 + $0x130] sm:$0xff] }
  0x19   : > { %321 = vmatpush.bf16.msra.mxu1 %v1335_v13  ;;  %v1392_v50 = vld [vmem:[%s1662_s1 + $0x1f8] sm:$0xff]  ;;  %v1373_v56 = vld [vmem:[%s1662_s1 + $0x170] sm:$0xff]  ;;  %v1364_v59 = vld [vmem:[%s1662_s1 + $0x128] sm:$0xff] }
  0x1a   : > { %490 = vmatpush.bf16.msra.mxu2 %v1345_v14  ;;  %v381_v51 = vor.u32 %v380_v40, %v376_v39  ;;  %v388_v52 = vor.u32 %v387_v42, %v383_v41  ;;  %v1383_v57 = vld [vmem:[%s1662_s1 + $0x1b0] sm:$0xff]  ;;  %v1372_v60 = vld [vmem:[%s1662_s1 + $0x168] sm:$0xff]  ;;  %v1363_v63 = vld [vmem:[%s1662_s1 + $0x120] sm:$0xff] }
  0x1b   : > { %503 = vmatpush.bf16.msra.mxu3 %v1353_v15  ;;  %v1391_v58 = vld [vmem:[%s1662_s1 + $0x1f0] sm:$0xff]  ;;  %v1382_v61 = vld [vmem:[%s1662_s1 + $0x1a8] sm:$0xff]  ;;  %v1371_v0 = vld [vmem:[%s1662_s1 + $0x160] sm:$0xff] }
  0x1c   : > { %309 = vmatpush.bf16.msra.mxu0 %v1326_v16  ;;  %v1390_v62 = vld [vmem:[%s1662_s1 + $0x1e8] sm:$0xff]  ;;  %v1381_v1 = vld [vmem:[%s1662_s1 + $0x1a0] sm:$0xff]  ;;  %v1362_v3 = vld [vmem:[%s1662_s1 + $0x118] sm:$0xff] }
  0x1d   : > { %322 = vmatpush.bf16.msra.mxu1 %v1334_v17  ;;  %v1389_v2 = vld [vmem:[%s1662_s1 + $0x1e0] sm:$0xff]  ;;  %v1370_v4 = vld [vmem:[%s1662_s1 + $0x158] sm:$0xff]  ;;  %v1358_v6 = vld [vmem:[%s1492_s24 + $0x4] sm:$0x30] }
  0x1e   : > { %491 = vmatpush.bf16.msra.mxu2 %v1344_v18  ;;  %v1146_v5 = vld [vmem:[%s1492_s24] sm:$0xe]  ;;  %v1357_v7 = vld [vmem:[%s1492_s24 + $0x4] sm:$0xe]  ;;  %v1148_v8 = vld [vmem:[%s1492_s24 + $0x8] sm:$0x30] }
  0x1f   : > { %504 = vmatpush.bf16.msra.mxu3 %v1352_v19  ;;  %v1380_v9 = vld [vmem:[%s1662_s1 + $0x198] sm:$0xff]  ;;  %v1147_v11 = vor.u32 %v1358_v6, %v1146_v5  ;;  %v1151_v12 = vor.u32 %v1357_v7, %v1148_v8  ;;  %v1361_v13 = vld [vmem:[%s1662_s1 + $0x110] sm:$0xff]  ;;  %v1360_v17 = vld [vmem:[%s1662_s1 + $0x108] sm:$0xff] }
  0x20   : > { %310 = vmatpush.bf16.msra.mxu0 %v1325_v24  ;;  %v1388_v10 = vld [vmem:[%s1662_s1 + $0x1d8] sm:$0xff]  ;;  %v1369_v14 = vld [vmem:[%s1662_s1 + $0x150] sm:$0xff]  ;;  %v1368_v18 = vld [vmem:[%s1662_s1 + $0x148] sm:$0xff] }
  0x21   : > { %323 = vmatpush.bf16.msra.mxu1 %v1333_v25  ;;  %v1379_v15 = vld [vmem:[%s1662_s1 + $0x190] sm:$0xff]  ;;  %v560_v19 = vshrl.u32 %v1147_v11, 16  ;;  %v563_v20 = vshll.u32 %v1147_v11, 16  ;;  %v568_v21 = vshrl.u32 %v1151_v12, 16  ;;  %v571_v22 = vshll.u32 %v1151_v12, 16  ;;  %v1378_v23 = vld [vmem:[%s1662_s1 + $0x188] sm:$0xff] }
  0x22   : > { %492 = vmatpush.bf16.msra.mxu2 %v1343_v28  ;;  %v1387_v16 = vld [vmem:[%s1662_s1 + $0x1d0] sm:$0xff]  ;;  %v1386_v24 = vld [vmem:[%s1662_s1 + $0x1c8] sm:$0xff]  ;;  %v1250_v25 = vld [vmem:[%s1492_s24] sm:$0xc] }
  0x23   : > { %505 = vmatpush.bf16.msra.mxu3 %v1351_v29  ;;  %v1376_v26 = vld [vmem:[%s1492_s24 + $0x4] sm:$0x30]  ;;  %v1375_v27 = vld [vmem:[%s1492_s24 + $0x4] sm:$0xc]  ;;  %v1252_v28 = vld [vmem:[%s1492_s24 + $0x8] sm:$0x30] }
  0x24   : > { %311 = vmatpush.bf16.msra.mxu0 %v1324_v30  ;;  %v562_v29 = vrot.slane %v560_v19, 1  ;;  %v565_v30 = vrot.slane %v563_v20, 2  ;;  %v573_v32 = vrot.slane %v571_v22, 2  ;;  %v1359_v33 = vld [vmem:[%s1662_s1 + $0x100] sm:$0xff]  ;;  %v1255_v36 = vor.u32 %v1375_v27, %v1252_v28 }
  0x25   : > { %324 = vmatpush.bf16.msra.mxu1 %v1332_v31  ;;  %v570_v31 = vrot.slane %v568_v21, 1 }
  0x26   : > { %493 = vmatpush.bf16.msra.mxu2 %v1342_v34  ;;  %v1367_v34 = vld [vmem:[%s1662_s1 + $0x140] sm:$0xff]  ;;  %v566_v39 = vor.u32 %v565_v30, %v562_v29  ;;  %v746_v42 = vrot.slane %v1255_v36, 2 }
  0x27   : > { %506 = vmatpush.bf16.msra.mxu3 %v1350_v35  ;;  %v1251_v35 = vor.u32 %v1376_v26, %v1250_v25  ;;  %v574_v40 = vor.u32 %v573_v32, %v570_v31 }
  0x28   : > { %312 = vmatpush.bf16.msra.mxu0 %v1323_v37  ;;  %v1377_v37 = vld [vmem:[%s1662_s1 + $0x180] sm:$0xff] }
  0x29   : > { %325 = vmatpush.bf16.msra.mxu1 %v1331_v38  ;;  %v1385_v38 = vld [vmem:[%s1662_s1 + $0x1c0] sm:$0xff]  ;;  %v745_v41 = vrot.slane %v1251_v35, 2 }
  0x2a   : > { %494 = vmatpush.bf16.msra.mxu2 %v1341_v43 }
  0x2b   : > { %507 = vmatpush.bf16.msra.mxu3 %v1349_v44  ;;  %313 = vmatmul.bf16.vlgmr.msra.gmra.mxu0 %v205_v53 }
  0x2c   : > { %673 = vmatpush.bf16.msrb.mxu0 %v1366_v47  ;;  %326 = vmatmul.bf16.vlgmr.msra.gmra.mxu1 %v206_v54 }
  0x2d   : > { %686 = vmatpush.bf16.msrb.mxu1 %v1374_v48  ;;  %495 = vmatmul.bf16.vlgmr.msra.gmra.mxu2 %v381_v51 }
  0x2e   : > { %845 = vmatpush.bf16.msrb.mxu2 %v1384_v49  ;;  %508 = vmatmul.bf16.vlgmr.msra.gmra.mxu3 %v388_v52 }
  0x2f   : > { %858 = vmatpush.bf16.msrb.mxu3 %v1392_v50 }
  0x30   : > { %674 = vmatpush.bf16.msrb.mxu0 %v1365_v55 }
  0x31   : > { %687 = vmatpush.bf16.msrb.mxu1 %v1373_v56 }
  0x32   : > { %846 = vmatpush.bf16.msrb.mxu2 %v1383_v57 }
  0x33   : > { %859 = vmatpush.bf16.msrb.mxu3 %v1391_v58 }
  0x34   : > { %675 = vmatpush.bf16.msrb.mxu0 %v1364_v59 }
  0x35   : > { %688 = vmatpush.bf16.msrb.mxu1 %v1372_v60 }
  0x36   : > { %847 = vmatpush.bf16.msrb.mxu2 %v1382_v61  ;;  %v1401_v61 = vld [vmem:[%s1663_s2] ss:$0 sm:$0xff] }
  0x37   : > { %860 = vmatpush.bf16.msrb.mxu3 %v1390_v62 }
  0x38   : > { %676 = vmatpush.bf16.msrb.mxu0 %v1363_v63 }
  0x39   : > { %689 = vmatpush.bf16.msrb.mxu1 %v1371_v0 }
  0x3a   : > { %848 = vmatpush.bf16.msrb.mxu2 %v1381_v1 }
  0x3b   : > { %861 = vmatpush.bf16.msrb.mxu3 %v1389_v2 }
  0x3c   : > { %677 = vmatpush.bf16.msrb.mxu0 %v1362_v3 }
  0x3d   : > { %690 = vmatpush.bf16.msrb.mxu1 %v1370_v4 }
  0x3e   : > { %849 = vmatpush.bf16.msrb.mxu2 %v1380_v9 }
  0x3f   : > { %862 = vmatpush.bf16.msrb.mxu3 %v1388_v10 }
  0x40   : > { %678 = vmatpush.bf16.msrb.mxu0 %v1361_v13 }
  0x41   : > { %691 = vmatpush.bf16.msrb.mxu1 %v1369_v14 }
  0x42   : > { %850 = vmatpush.bf16.msrb.mxu2 %v1379_v15 }
  0x43   : > { %863 = vmatpush.bf16.msrb.mxu3 %v1387_v16 }
  0x44   : > { %679 = vmatpush.bf16.msrb.mxu0 %v1360_v17 }
  0x45   : > { %692 = vmatpush.bf16.msrb.mxu1 %v1368_v18 }
  0x46   : > { %851 = vmatpush.bf16.msrb.mxu2 %v1378_v23 }
  0x47   : > { %864 = vmatpush.bf16.msrb.mxu3 %v1386_v24 }
  0x48   : > { %680 = vmatpush.bf16.msrb.mxu0 %v1359_v33 }
  0x49   : > { %693 = vmatpush.bf16.msrb.mxu1 %v1367_v34 }
  0x4a   : > { %852 = vmatpush.bf16.msrb.mxu2 %v1377_v37 }
  0x4b   : > { %865 = vmatpush.bf16.msrb.mxu3 %v1385_v38  ;;  %681 = vmatmul.bf16.vlgmr.msrb.gmra.mxu0 %v566_v39 }
  0x4c   : > { %694 = vmatmul.bf16.vlgmr.msrb.gmra.mxu1 %v574_v40 }
  0x4d   : > { %853 = vmatmul.bf16.vlgmr.msrb.gmra.mxu2 %v745_v41 }
  0x4e   : > { %866 = vmatmul.bf16.vlgmr.msrb.gmra.mxu3 %v746_v42 }
  0xa8   : > { %v314_v43 = vpop.f32.mrf.mxu0 }
  0xa9   : > { %v327_v44 = vpop.f32.mrf.mxu1 }
  0xaa   : > { %v328_v53 = vadd.f32 %v327_v44, %v314_v43 }
  0xb0   : > { %v496_v45 = vpop.f32.mrf.mxu2  ;;  %v316_v47 = vpop.f32.mrf.mxu0 }
  0xb1   : > { %v509_v46 = vpop.f32.mrf.mxu3  ;;  %v329_v48 = vpop.f32.mrf.mxu1 }
  0xb2   : > { %v510_v54 = vadd.f32 %v509_v46, %v496_v45 }
  0xb4   : > { %v514_v56 = vadd.f32 %v510_v54, %v328_v53 }
  0xb8   : > { %v498_v49 = vpop.f32.mrf.mxu2 }
  0xb9   : > { %v511_v50 = vpop.f32.mrf.mxu3 }
  0xc8   : > { %v682_v51 = vpop.f32.mrf.mxu0 }
  0xc9   : > { %v695_v52 = vpop.f32.mrf.mxu1 }
  0xca   : > { %v696_v55 = vadd.f32 %v695_v52, %v682_v51 }
  0xcc   : > { %v700_v59 = vadd.f32 %v696_v55, %v514_v56 }
  0xd0   : > { %v854_v57 = vpop.f32.mrf.mxu2  ;;  %v684_v62 = vpop.f32.mrf.mxu0 }
  0xd1   : > { %v867_v58 = vpop.f32.mrf.mxu3  ;;  %v697_v63 = vpop.f32.mrf.mxu1 }
  0xd2   : > { %v868_v60 = vadd.f32 %v867_v58, %v854_v57 }
  0xd4   : > { %v872_v0 = vadd.f32 %v868_v60, %v700_v59 }
  0xd6   : > { %v879_v1 = vadd.f32 %v1401_v61, %v872_v0 }
  0xd8   : > { %v880_v2 = vmax.f32 %v879_v1, 0.0  ;;  %v856_v3 = vpop.f32.mrf.mxu2 }
  0xd9   : > { %v869_v4 = vpop.f32.mrf.mxu3 }
  0xda   : > { %v881_v5 = vpack.c.bf16 %v880_v2, %v880_v2 }
  0xdc   : > { %882 = vst [vmem:[%s168_s29] sm:$0xf] %v881_v5 }
  0xdd PF: > { %s13_s12 = sadd.s32 1, %s1408_s12  }
  0xde   : > { %p10_p4 = scmp.ge.s32.totalorder %s13_s12, 4  }
  0xe0   :  { %12 = sbr.rel (!%p10_p4) target bundleno = 1 (0x1), region = 65 }

// kernel: vae_forward.11
= control target key start
LH: loop header
LB: loop body
LE: loop exit
PB: predicated region body
PF: predicated region fallthrough
CT: control target
= control target key end

     0   :  { %vm337_vm0 = vcmask 254976   ;;  %s629_s1 = inlined_call_operand.vmem [shape: bf16[512,32], index: 1, kind: input, shape index: {}]   ;;  %s630_s0 = inlined_call_operand.vmem [shape: bf16[2,512], index: 0, kind: input, shape index: {}]   ;;  %s631_s2 = inlined_call_operand.vmem [shape: f32[1,32], index: 2, kind: input, shape index: {}]   ;;  %s632_s3 = inlined_call_operand.vmem [shape: f32[2,32], index: 3, kind: output, shape index: {}]  }
   0x1   :  { %v478_v0 = vld [vmem:[%s629_s1 + $0x38] sm:$0xff]  ;;  %v477_v4 = vld [vmem:[%s629_s1 + $0x30] sm:$0xff]  ;;  %v476_v8 = vld [vmem:[%s629_s1 + $0x28] sm:$0xff] }
   0x2   :  { %v486_v1 = vld [vmem:[%s629_s1 + $0x78] sm:$0xff]  ;;  %285 = vmatpush.bf16.msra.mxu0 %v478_v0  ;;  %v485_v5 = vld [vmem:[%s629_s1 + $0x70] sm:$0xff]  ;;  %v484_v9 = vld [vmem:[%s629_s1 + $0x68] sm:$0xff] }
   0x3   :  { %v494_v2 = vld [vmem:[%s629_s1 + $0xb8] sm:$0xff]  ;;  %298 = vmatpush.bf16.msra.mxu1 %v486_v1  ;;  %v493_v6 = vld [vmem:[%s629_s1 + $0xb0] sm:$0xff]  ;;  %v492_v10 = vld [vmem:[%s629_s1 + $0xa8] sm:$0xff] }
   0x4   :  { %v502_v3 = vld [vmem:[%s629_s1 + $0xf8] sm:$0xff]  ;;  %311 = vmatpush.bf16.msra.mxu2 %v494_v2  ;;  %v501_v7 = vld [vmem:[%s629_s1 + $0xf0] sm:$0xff]  ;;  %v500_v11 = vld [vmem:[%s629_s1 + $0xe8] sm:$0xff] }
   0x5   :  { %324 = vmatpush.bf16.msra.mxu3 %v502_v3  ;;  %v475_v12 = vld [vmem:[%s629_s1 + $0x20] sm:$0xff]  ;;  %v474_v17 = vld [vmem:[%s629_s1 + $0x18] sm:$0xff]  ;;  %v473_v21 = vld [vmem:[%s629_s1 + $0x10] sm:$0xff] }
   0x6   :  { %286 = vmatpush.bf16.msra.mxu0 %v477_v4  ;;  %v483_v13 = vld [vmem:[%s629_s1 + $0x60] sm:$0xff]  ;;  %v482_v18 = vld [vmem:[%s629_s1 + $0x58] sm:$0xff]  ;;  %v481_v22 = vld [vmem:[%s629_s1 + $0x50] sm:$0xff] }
   0x7   :  { %299 = vmatpush.bf16.msra.mxu1 %v485_v5  ;;  %v14_v14 = vld [vmem:[%s630_s0] sm:$0xf]  ;;  %v490_v19 = vld [vmem:[%s629_s1 + $0x98] sm:$0xff]  ;;  %v489_v23 = vld [vmem:[%s629_s1 + $0x90] sm:$0xff] }
   0x8   :  { %312 = vmatpush.bf16.msra.mxu2 %v493_v6  ;;  %v491_v15 = vld [vmem:[%s629_s1 + $0xa0] sm:$0xff]  ;;  %84 = vst [vmem:[#allocation1] ss:$9 sm:$0xff] %v14_v14  ;;  %v498_v20 = vld [vmem:[%s629_s1 + $0xd8] sm:$0xff]  ;;  %v497_v24 = vld [vmem:[%s629_s1 + $0xd0] sm:$0xff] }
   0x9   :  { %325 = vmatpush.bf16.msra.mxu3 %v501_v7  ;;  %v499_v16 = vld [vmem:[%s629_s1 + $0xe0] sm:$0xff]  ;;  %v472_v25 = vld [vmem:[%s629_s1 + $0x8] sm:$0xff] }
   0xa   :  { %287 = vmatpush.bf16.msra.mxu0 %v476_v8  ;;  %v480_v26 = vld [vmem:[%s629_s1 + $0x48] sm:$0xff]  ;;  %v471_v29 = vld [vmem:[%s629_s1] sm:$0xff] }
   0xb   :  { %300 = vmatpush.bf16.msra.mxu1 %v484_v9  ;;  %v488_v27 = vld [vmem:[%s629_s1 + $0x88] sm:$0xff]  ;;  %v479_v30 = vld [vmem:[%s629_s1 + $0x40] sm:$0xff] }
   0xc   :  { %313 = vmatpush.bf16.msra.mxu2 %v492_v10  ;;  %v496_v28 = vld [vmem:[%s629_s1 + $0xc8] sm:$0xff]  ;;  %v487_v31 = vld [vmem:[%s629_s1 + $0x80] sm:$0xff] }
   0xd   :  { %326 = vmatpush.bf16.msra.mxu3 %v500_v11  ;;  %v495_v32 = vld [vmem:[%s629_s1 + $0xc0] sm:$0xff] }
   0xe   :  { %288 = vmatpush.bf16.msra.mxu0 %v475_v12  ;;  %v503_v37 = vld [vmem:[%s631_s2] ss:$0 sm:$0xff] }
   0xf   :  { %301 = vmatpush.bf16.msra.mxu1 %v483_v13  ;;  %v85_v33 = vld [vmem:[#allocation1] sm:$0xff]  ;;  %v86_v34 = vld [vmem:[#allocation1 + $0x9] sm:$0xff]  ;;  %v87_v35 = vld [vmem:[#allocation1 + $0x12] sm:$0xff] }
  0x10   :  { %314 = vmatpush.bf16.msra.mxu2 %v491_v15  ;;  %v88_v36 = vld [vmem:[#allocation1 + $0x1b] sm:$0xff] }
  0x11   :  { %327 = vmatpush.bf16.msra.mxu3 %v499_v16 }
  0x12   :  { %289 = vmatpush.bf16.msra.mxu0 %v474_v17 }
  0x13   :  { %302 = vmatpush.bf16.msra.mxu1 %v482_v18 }
  0x14   :  { %315 = vmatpush.bf16.msra.mxu2 %v490_v19 }
  0x15   :  { %328 = vmatpush.bf16.msra.mxu3 %v498_v20 }
  0x16   :  { %290 = vmatpush.bf16.msra.mxu0 %v473_v21 }
  0x17   :  { %303 = vmatpush.bf16.msra.mxu1 %v481_v22 }
  0x18   :  { %316 = vmatpush.bf16.msra.mxu2 %v489_v23 }
  0x19   :  { %329 = vmatpush.bf16.msra.mxu3 %v497_v24 }
  0x1a   :  { %291 = vmatpush.bf16.msra.mxu0 %v472_v25 }
  0x1b   :  { %304 = vmatpush.bf16.msra.mxu1 %v480_v26 }
  0x1c   :  { %317 = vmatpush.bf16.msra.mxu2 %v488_v27 }
  0x1d   :  { %330 = vmatpush.bf16.msra.mxu3 %v496_v28 }
  0x1e   :  { %292 = vmatpush.bf16.msra.mxu0 %v471_v29 }
  0x1f   :  { %305 = vmatpush.bf16.msra.mxu1 %v479_v30 }
  0x20   :  { %318 = vmatpush.bf16.msra.mxu2 %v487_v31 }
  0x21   :  { %331 = vmatpush.bf16.msra.mxu3 %v495_v32  ;;  %293 = vmatmul.bf16.vlgmr.msra.gmra.mxu0 %v85_v33 }
  0x22   :  { %306 = vmatmul.bf16.vlgmr.msra.gmra.mxu1 %v86_v34 }
  0x23   :  { %319 = vmatmul.bf16.vlgmr.msra.gmra.mxu2 %v87_v35 }
  0x24   :  { %332 = vmatmul.bf16.vlgmr.msra.gmra.mxu3 %v88_v36 }
  0x9e   :  { %v294_v38 = vpop.f32.mrf.mxu0 }
  0x9f   :  { %v307_v39 = vpop.f32.mrf.mxu1  ;;  %v295_v40 = vadd.f32 %v503_v37, %v294_v38 }
  0xa1   :  { %v308_v41 = vadd.f32 %v307_v39, %v295_v40 }
  0xa6   :  { %v320_v42 = vpop.f32.mrf.mxu2  ;;  %v296_v45 = vpop.f32.mrf.mxu0 }
  0xa7   :  { %v333_v43 = vpop.f32.mrf.mxu3  ;;  %v321_v44 = vadd.f32 %v320_v42, %v308_v41  ;;  %v309_v46 = vpop.f32.mrf.mxu1 }
  0xa9   :  { %v334_v47 = vadd.f32 %v333_v43, %v321_v44 }
  0xab   :  { %338 = vst.msk [vmem:[%s632_s3] sm:$0x3] %vm337_vm0, %v334_v47 }
  0xae   :  { %v322_v48 = vpop.f32.mrf.mxu2 }
  0xaf   :  { %v335_v49 = vpop.f32.mrf.mxu3 }

// kernel: vae_forward.14
= control target key start
LH: loop header
LB: loop body
LE: loop exit
PB: predicated region body
PF: predicated region fallthrough
CT: control target
= control target key end

     0   :  { %s1420_s12 = smov 0   ;;  %s1620_s0 = inlined_call_operand.vmem [shape: bf16[2,40,64], index: 0, kind: input, shape index: {}]   ;;  %s1621_s1 = inlined_call_operand.vmem [shape: bf16[9,64,128], index: 1, kind: input, shape index: {}]   ;;  %s1622_s2 = inlined_call_operand.vmem [shape: f32[1,128], index: 2, kind: input, shape index: {}]   ;;  %s1623_s3 = inlined_call_operand.vmem [shape: bf16[2,24,128], index: 3, kind: output, shape index: {}]  }
   0x1 LB: > { %s1021_s13 = sadd.s32 4294967295, %s1398_s12   ;;  %p1025_p0 = scmp.ge.s32.totalorder %s1398_s12, 1  ;;  %s1398_s12 = sphi %s1420_s12, %s13_s12  }
   0x2   : > { %p137_p1 = scmp.lt.s32.totalorder %s1398_s12, 3 }
   0x4   : > { %p138_p2 = pnand %p1025_p0, %p137_p1 }
   0x5   : > { %p161_p3 = scmp.lt.s32.totalorder (!%p138_p2), %s1021_s13, 1 }
   0x6   : > { %141 = sbr.rel (%p138_p2) target bundleno = 233 (0xe9), region = 32 }
   0xb   : > { %v1324_v0 = vld [vmem:[%s1621_s1 + $0x18] sm:$0xff]  ;;  %v1323_v3 = vld [vmem:[%s1621_s1 + $0x10] sm:$0xff]  ;;  %s1625_s13 = smov (!%p161_p3, %s1021_s13), 1  ;;  %v1322_v6 = vld [vmem:[%s1621_s1 + $0x8] sm:$0xff]  ;;  %vm362_vm0 = vcmask 1046528   ;;  %vm446_vm1 = vcmask 1044480  }
   0xc   : > { %v1336_v1 = vld [vmem:[%s1621_s1 + $0x58] sm:$0xff]  ;;  %226 = vmatpush.bf16.msra.mxu0 %v1324_v0  ;;  %1377 = vmatpush.bf16.msra.mxu1 %v1324_v0  ;;  %v1335_v4 = vld [vmem:[%s1621_s1 + $0x50] sm:$0xff]  ;;  %s1381_s26 = smul.u32 20, %s1625_s13  ;;  %v1334_v7 = vld [vmem:[%s1621_s1 + $0x48] sm:$0xff]  ;;  %vm215_vm2 = vcmask 523264   ;;  %vm705_vm5 = vcmask 1045504  }
   0xd   : > { %v1342_v2 = vld [vmem:[%s1621_s1 + $0x78] sm:$0xff]  ;;  %400 = vmatpush.bf16.msra.mxu2 %v1336_v1  ;;  %v1341_v5 = vld [vmem:[%s1621_s1 + $0x70] sm:$0xff]  ;;  %v1340_v8 = vld [vmem:[%s1621_s1 + $0x68] sm:$0xff]  ;;  %vm266_vm3 = vsmask.f32 7424  ;;  %s1382_s18 = smul.u32 12, %s1625_s13 }
   0xe   : > { %484 = vmatpush.bf16.msra.mxu3 %v1342_v2  ;;  %s1458_s6 = scalar_lea.vmem %s1620_s0, %s1381_s26  ;;  %v1321_v20 = vld [vmem:[%s1621_s1] sm:$0xff]  ;;  %v1330_v23 = vld [vmem:[%s1621_s1 + $0x38] sm:$0xff]  ;;  %v1329_v42 = vld [vmem:[%s1621_s1 + $0x30] sm:$0xff]  ;;  %vm530_vm4 = vsmask.f32 4352 }
   0xf   : > { %v1464_v9 = vld [vmem:[%s1458_s6 + $0x8] sm:$0xff]   ;;  %v1094_v10 = vld [vmem:[%s1458_s6] sm:$0xe]  ;;  %v1331_v11 = vld [vmem:[%s1458_s6] sm:$0xf0]  ;;  %s170_s21 = scalar_lea.vmem %s1623_s3, %s1382_s18 }
  0x10   : > { %227 = vmatpush.bf16.msra.mxu0 %v1323_v3  ;;  %1378 = vmatpush.bf16.msra.mxu1 %v1323_v3  ;;  %v1098_v12 = vld [vmem:[%s1458_s6 + $0x8] sm:$0xf]  ;;  %v1332_v13 = vld [vmem:[%s1458_s6 + $0x8] sm:$0x10]  ;;  %v188_v14 = vunpack.c.l.b16 %v1464_v9  ;;  %v1095_v15 = vor.u32 %v1331_v11, %v1094_v10  ;;  %v1128_v17 = vld [vmem:[%s1458_s6] sm:$0x8] }
  0x11   : > { %401 = vmatpush.bf16.msra.mxu2 %v1335_v4  ;;  %v1099_v16 = vor.u32 %v1332_v13, %v1098_v12  ;;  %v1337_v18 = vld [vmem:[%s1458_s6] sm:$0xf0]  ;;  %v1132_v19 = vld [vmem:[%s1458_s6 + $0x8] sm:$0xf]  ;;  %v1338_v21 = vld [vmem:[%s1458_s6 + $0x8] sm:$0x70] }
  0x12   : > { %485 = vmatpush.bf16.msra.mxu3 %v1341_v5  ;;  %v1129_v22 = vor.u32 %v1337_v18, %v1128_v17  ;;  %v1333_v24 = vld [vmem:[%s1621_s1 + $0x40] sm:$0xff]  ;;  %v1348_v25 = vld [vmem:[%s1621_s1 + $0x98] sm:$0xff]  ;;  %v363_v26 = vrot.slane %v1095_v15, 1  ;;  %v1133_v28 = vor.u32 %v1338_v21, %v1132_v19  ;;  %v190_v33 = vpack.c.b16 %v188_v14, %v188_v14  ;;  %v1064_v38 = vld [vmem:[%s1458_s6 + $0x8] sm:$0xf] }
  0x13   : > { %v1487_v27 = vrot.slane %v1099_v16, 1  ;;  %v1320_v29 = vld [vmem:[%s1458_s6] sm:$0xff]  ;;  %v1365_v35 = vld [vmem:[%s1621_s1 + $0xf8] sm:$0xff]  ;;  %v1326_v39 = vld [vmem:[%s1458_s6 + $0x8] sm:$0x10] }
  0x14   : > { %228 = vmatpush.bf16.msra.mxu0 %v1322_v6  ;;  %1379 = vmatpush.bf16.msra.mxu1 %v1322_v6  ;;  %v1339_v30 = vld [vmem:[%s1621_s1 + $0x60] sm:$0xff]  ;;  %v447_v31 = vrot.slane %v1129_v22, 3  ;;  %v1494_v34 = vrot.slane %v1133_v28, 3  ;;  %v1344_v40 = vld [vmem:[%s1458_s6 + $0x8] sm:$0xff]  ;;  %v1347_v44 = vld [vmem:[%s1621_s1 + $0x90] sm:$0xff]  ;;  %v1519_v47 = vor.u32 %v1326_v39, %v1064_v38 }
  0x15   : > { %402 = vmatpush.bf16.msra.mxu2 %v1334_v7  ;;  %v1162_v32 = vld [vmem:[%s1458_s6] sm:$0x8]  ;;  %v1343_v37 = vld [vmem:[%s1458_s6] sm:$0xf0]  ;;  %v365_v43 = vsel %vm362_vm0, %v363_v26, %v1487_v27  ;;  %v1359_v46 = vld [vmem:[%s1621_s1 + $0xd8] sm:$0xff]  ;;  %v540_v51 = vshrl.u32 %v1344_v40, 16 }
  0x16   : > { %486 = vmatpush.bf16.msra.mxu3 %v1340_v8  ;;  %v1325_v36 = vld [vmem:[%s1458_s6] sm:$0xff]  ;;  %v1163_v41 = vor.u32 %v1343_v37, %v1162_v32  ;;  %v449_v45 = vsel %vm446_vm1, %v447_v31, %v1494_v34  ;;  %v543_v52 = vshll.u32 %v1344_v40, 16  ;;  %v1364_v53 = vld [vmem:[%s1621_s1 + $0xf0] sm:$0xff]  ;;  %v1328_v54 = vld [vmem:[%s1621_s1 + $0x28] sm:$0xff]  ;;  %v275_v59 = vshll.u32 %v1519_v47, 16 }
  0x17   : > { %v270_v48 = vshll.u32 %v1325_v36, 16  ;;  %v1346_v55 = vld [vmem:[%s1621_s1 + $0x88] sm:$0xff]  ;;  %v1358_v56 = vld [vmem:[%s1621_s1 + $0xd0] sm:$0xff]  ;;  %v268_v57 = vshrl.u32 %v1325_v36, 16  ;;  %v542_v63 = vrot.slane %v540_v51, 3  ;;  %v1327_v1 = vld [vmem:[%s1621_s1 + $0x20] sm:$0xff] }
  0x18   : > { %229 = vmatpush.bf16.msra.mxu0 %v1321_v20  ;;  %1380 = vmatpush.bf16.msra.mxu1 %v1321_v20  ;;  %v532_v49 = vshrl.u32 %v1163_v41, 16  ;;  %v535_v50 = vshll.u32 %v1163_v41, 16  ;;  %v1363_v60 = vld [vmem:[%s1621_s1 + $0xe8] sm:$0xff]  ;;  %v545_v0 = vrot.slane %v543_v52, 4  ;;  %v1345_v2 = vld [vmem:[%s1621_s1 + $0x80] sm:$0xff]  ;;  %v1353_v3 = vld [vmem:[%s1621_s1 + $0xb8] sm:$0xff] }
  0x19   : > { %403 = vmatpush.bf16.msra.mxu2 %v1333_v24  ;;  %v272_v58 = vrot.slane %v270_v48, 1  ;;  %v1371_v4 = vld [vmem:[%s1621_s1 + $0x118] sm:$0xff]  ;;  %v1357_v5 = vld [vmem:[%s1621_s1 + $0xc8] sm:$0xff]  ;;  %v277_v7 = vrot.slane %v275_v59, 1  ;;  %v1362_v11 = vld [vmem:[%s1621_s1 + $0xe0] sm:$0xff]  ;;  %v279_v41 = vshrl.u32 %v1519_v47, 16  ;;  %v622_v59 = vunpack.c.h.b16 %v1464_v9 }
  0x1a   : > { %487 = vmatpush.bf16.msra.mxu3 %v1339_v30  ;;  %v534_v61 = vrot.slane %v532_v49, 3  ;;  %v537_v62 = vrot.slane %v535_v50, 4  ;;  %v546_v10 = vor.u32 %v545_v0, %v542_v63  ;;  %v1352_v12 = vld [vmem:[%s1621_s1 + $0xb0] sm:$0xff]  ;;  %v1260_v13 = vld [vmem:[%s1458_s6 + $0x4] sm:$0xc]  ;;  %v1351_v21 = vld [vmem:[%s1621_s1 + $0xa8] sm:$0xff] }
  0x1b   : > { %1048 = vmatmul.msk.bf16.vlgmr.msra.gmra.mxu0 %vm215_vm2, %v1320_v29  ;;  %1049 = vmatmul.msk.bf16.vlgmr.msra.gmra.mxu1 %vm215_vm2, %v190_v33  ;;  %v273_v6 = vor.u32 %v272_v58, %v268_v57  ;;  %v1360_v14 = vld [vmem:[%s1458_s6 + $0x4] sm:$0xf0]  ;;  %v1264_v15 = vld [vmem:[%s1458_s6 + $0xc] sm:$0xf]  ;;  %v1361_v16 = vld [vmem:[%s1458_s6 + $0xc] sm:$0x70] }
  0x1c   : > { %316 = vmatpush.bf16.msrb.mxu1 %v1330_v23  ;;  %582 = vmatpush.bf16.msrb.mxu0 %v1348_v25  ;;  %v538_v8 = vor.u32 %v537_v62, %v534_v61  ;;  %v1370_v19 = vld [vmem:[%s1621_s1 + $0x110] sm:$0xff]  ;;  %v1356_v20 = vld [vmem:[%s1621_s1 + $0xc0] sm:$0xff]  ;;  %v1261_v22 = vor.u32 %v1360_v14, %v1260_v13  ;;  %v1265_v23 = vor.u32 %v1361_v16, %v1264_v15  ;;  %v1369_v25 = vld [vmem:[%s1621_s1 + $0x108] sm:$0xff]  ;;  %vm789_vm6 = vsmask.f32 5376 }
  0x1d   : > { %1116 = vmatmul.msk.bf16.vlgmr.msra.gmra.mxu2 %vm215_vm2, %v365_v43  ;;  %1150 = vmatmul.msk.bf16.vlgmr.msra.gmra.mxu3 %vm215_vm2, %v449_v45  ;;  %v278_v17 = vsel %vm266_vm3, %v273_v6, %v277_v7  ;;  %v1226_v24 = vld [vmem:[%s1458_s6 + $0x4] sm:$0xc]  ;;  %v1354_v26 = vld [vmem:[%s1458_s6 + $0x4] sm:$0xf0]  ;;  %v1230_v28 = vld [vmem:[%s1458_s6 + $0xc] sm:$0xf] }
  0x1e   : > { %841 = vmatpush.bf16.msrb.mxu3 %v1365_v35  ;;  %743 = vmatpush.bf16.msrb.mxu2 %v1359_v46  ;;  %v547_v18 = vsel %vm530_vm4, %v538_v8, %v546_v10  ;;  %v1355_v29 = vld [vmem:[%s1458_s6 + $0xc] sm:$0x30]  ;;  %v791_v30 = vshrl.u32 %v1261_v22, 16  ;;  %v794_v31 = vshll.u32 %v1261_v22, 16  ;;  %v799_v32 = vshrl.u32 %v1265_v23, 16  ;;  %v1368_v35 = vld [vmem:[%s1621_s1 + $0x100] sm:$0xff] }
  0x1f   : > { %v802_v33 = vshll.u32 %v1265_v23, 16  ;;  %v1227_v36 = vor.u32 %v1354_v26, %v1226_v24  ;;  %v281_v46 = vor.u32 %v279_v41, %v277_v7  ;;  %v1294_v47 = vld [vmem:[%s1458_s6 + $0x4] sm:$0x8]  ;;  %v1366_v50 = vld [vmem:[%s1458_s6 + $0x4] sm:$0xf0] }
  0x20   : > { %317 = vmatpush.bf16.msrb.mxu1 %v1329_v42  ;;  %583 = vmatpush.bf16.msrb.mxu0 %v1347_v44  ;;  %v793_v37 = vrot.slane %v791_v30, 2  ;;  %v796_v38 = vrot.slane %v794_v31, 3  ;;  %v801_v39 = vrot.slane %v799_v32, 2  ;;  %v1298_v51 = vld [vmem:[%s1458_s6 + $0xc] sm:$0xf]  ;;  %v1349_v57 = vld [vmem:[%s1458_s6 + $0x4] sm:$0xff] }
  0x21   : > { %v804_v40 = vrot.slane %v802_v33, 3  ;;  %v706_v42 = vrot.slane %v1227_v36, 2  ;;  %v1367_v52 = vld [vmem:[%s1458_s6 + $0xc] sm:$0x70] }
  0x22   : > { %842 = vmatpush.bf16.msrb.mxu3 %v1364_v53  ;;  %744 = vmatpush.bf16.msrb.mxu2 %v1358_v56  ;;  %v797_v44 = vor.u32 %v796_v38, %v793_v37  ;;  %v1295_v53 = vor.u32 %v1366_v50, %v1294_v47 }
  0x23   : > { %v805_v45 = vor.u32 %v804_v40, %v801_v39 }
  0x24   : > { %318 = vmatpush.bf16.msrb.mxu1 %v1328_v54  ;;  %584 = vmatpush.bf16.msrb.mxu0 %v1346_v55  ;;  %v1299_v54 = vor.u32 %v1367_v52, %v1298_v51  ;;  %v887_v55 = vrot.slane %v1295_v53, 3 }
  0x25   : > { %v806_v49 = vsel %vm789_vm6, %v797_v44, %v805_v45 }
  0x26   : > { %843 = vmatpush.bf16.msrb.mxu3 %v1363_v60  ;;  %745 = vmatpush.bf16.msrb.mxu2 %v1357_v5  ;;  %v888_v56 = vrot.slane %v1299_v54, 3  ;;  %v624_v60 = vpack.c.b16 %v622_v59, %v622_v59 }
  0x28   : > { %319 = vmatpush.bf16.msrb.mxu1 %v1327_v1  ;;  %585 = vmatpush.bf16.msrb.mxu0 %v1345_v2  ;;  %v889_v58 = vsel %vm446_vm1, %v887_v55, %v888_v56 }
  0x2a   : > { %844 = vmatpush.bf16.msrb.mxu3 %v1362_v11  ;;  %746 = vmatpush.bf16.msrb.mxu2 %v1356_v20 }
  0x2b   : > { %1082 = vmatmul.msk.bf16.vlgmr.msrb.gmra.mxu1 %vm215_vm2, %v278_v17  ;;  %1184 = vmatmul.msk.bf16.vlgmr.msrb.gmra.mxu0 %vm215_vm2, %v547_v18 }
  0x2c   : > { %659 = vmatpush.bf16.msra.mxu1 %v1353_v3  ;;  %924 = vmatpush.bf16.msra.mxu0 %v1371_v4 }
  0x2d   : > { %1117 = vmatmul.msk.bf16.gmra.mxu2 %vm215_vm2, %v1487_v27  ;;  %1151 = vmatmul.msk.bf16.gmra.mxu3 %vm215_vm2, %v1494_v34  ;;  %v1350_v27 = vld [vmem:[%s1621_s1 + $0xa0] sm:$0xff]  ;;  %v1231_v34 = vor.u32 %v1355_v29, %v1230_v28 }
  0x2f   : > { %v707_v43 = vrot.slane %v1231_v34, 2 }
  0x30   : > { %660 = vmatpush.bf16.msra.mxu1 %v1352_v12  ;;  %925 = vmatpush.bf16.msra.mxu0 %v1370_v19 }
  0x31   : > { %v708_v48 = vsel %vm705_vm5, %v706_v42, %v707_v43 }
  0x34   : > { %661 = vmatpush.bf16.msra.mxu1 %v1351_v21  ;;  %926 = vmatpush.bf16.msra.mxu0 %v1369_v25 }
  0x38   : > { %662 = vmatpush.bf16.msra.mxu1 %v1350_v27  ;;  %927 = vmatpush.bf16.msra.mxu0 %v1368_v35 }
  0x3b   : > { %1083 = vmatmul.msk.bf16.gmra.mxu1 %vm215_vm2, %v281_v46  ;;  %1185 = vmatmul.msk.bf16.gmra.mxu0 %vm215_vm2, %v546_v10 }
  0x3d   : > { %1248 = vmatmul.msk.bf16.vlgmr.msrb.gmra.mxu2 %vm215_vm2, %v708_v48  ;;  %1282 = vmatmul.msk.bf16.vlgmr.msrb.gmra.mxu3 %vm215_vm2, %v806_v49 }
  0x4b   : > { %1214 = vmatmul.msk.bf16.vlgmr.msra.gmra.mxu1 %vm215_vm2, %v1349_v57  ;;  %1316 = vmatmul.msk.bf16.vlgmr.msra.gmra.mxu0 %vm215_vm2, %v889_v58 }
  0x4d   : > { %1249 = vmatmul.msk.bf16.gmra.mxu2 %vm215_vm2, %v707_v43  ;;  %1283 = vmatmul.msk.bf16.gmra.mxu3 %vm215_vm2, %v805_v45  ;;  %v1391_v43 = vld [vmem:[%s1622_s2] ss:$0 sm:$0xff] }
  0x5b   : > { %1215 = vmatmul.msk.bf16.gmra.mxu1 %vm215_vm2, %v624_v60  ;;  %1317 = vmatmul.msk.bf16.gmra.mxu0 %vm215_vm2, %v888_v56 }
  0x98   : > { %v231_v61 = vpop.f32.mrf.mxu0  ;;  %v236_v62 = vpop.f32.mrf.mxu1 }
  0xa0   : > { %v405_v63 = vpop.f32.mrf.mxu2  ;;  %v233_v0 = vpop.f32.mrf.mxu0 }
  0xa1   : > { %v238_v1 = vpop.f32.mrf.mxu1  ;;  %v489_v2 = vpop.f32.mrf.mxu3 }
  0xa8   : > { %v407_v3 = vpop.f32.mrf.mxu2  ;;  %v587_v5 = vpop.f32.mrf.mxu0 }
  0xa9   : > { %v321_v4 = vpop.f32.mrf.mxu1  ;;  %v491_v6 = vpop.f32.mrf.mxu3 }
  0xaa   : > { %v333_v15 = vadd.f32 %v321_v4, %v231_v61 }
  0xac   : > { %v417_v16 = vadd.f32 %v405_v63, %v333_v15 }
  0xae   : > { %v501_v21 = vadd.f32 %v489_v2, %v417_v16 }
  0xb0   : > { %v410_v7 = vpop.f32.mrf.mxu2  ;;  %v589_v10 = vpop.f32.mrf.mxu0  ;;  %v599_v23 = vadd.f32 %v587_v5, %v501_v21 }
  0xb1   : > { %v323_v8 = vpop.f32.mrf.mxu1  ;;  %v494_v11 = vpop.f32.mrf.mxu3 }
  0xb2   : > { %v334_v22 = vadd.f32 %v323_v8, %v233_v0 }
  0xb4   : > { %v418_v24 = vadd.f32 %v407_v3, %v334_v22 }
  0xb6   : > { %v502_v31 = vadd.f32 %v491_v6, %v418_v24 }
  0xb8   : > { %v412_v9 = vpop.f32.mrf.mxu2  ;;  %v592_v13 = vpop.f32.mrf.mxu0  ;;  %v600_v27 = vadd.f32 %v589_v10, %v502_v31 }
  0xb9   : > { %v326_v12 = vpop.f32.mrf.mxu1  ;;  %v496_v14 = vpop.f32.mrf.mxu3 }
  0xba   : > { %v335_v32 = vadd.f32 %v326_v12, %v236_v62 }
  0xbc   : > { %v419_v35 = vadd.f32 %v410_v7, %v335_v32 }
  0xbe   : > { %v503_v41 = vadd.f32 %v494_v11, %v419_v35 }
  0xc0   : > { %v748_v17 = vpop.f32.mrf.mxu2  ;;  %v594_v19 = vpop.f32.mrf.mxu0  ;;  %v601_v46 = vadd.f32 %v592_v13, %v503_v41 }
  0xc1   : > { %v328_v18 = vpop.f32.mrf.mxu1  ;;  %v846_v20 = vpop.f32.mrf.mxu3 }
  0xc8   : > { %v750_v25 = vpop.f32.mrf.mxu2  ;;  %v929_v28 = vpop.f32.mrf.mxu0 }
  0xc9   : > { %v664_v26 = vpop.f32.mrf.mxu1  ;;  %v848_v30 = vpop.f32.mrf.mxu3 }
  0xca   : > { %v676_v29 = vadd.f32 %v664_v26, %v599_v23 }
  0xcc   : > { %v760_v33 = vadd.f32 %v748_v17, %v676_v29 }
  0xce   : > { %v858_v36 = vadd.f32 %v846_v20, %v760_v33 }
  0xd0   : > { %v753_v34 = vpop.f32.mrf.mxu2  ;;  %v931_v38 = vpop.f32.mrf.mxu0  ;;  %v941_v42 = vadd.f32 %v929_v28, %v858_v36 }
  0xd1   : > { %v666_v37 = vpop.f32.mrf.mxu1  ;;  %v851_v40 = vpop.f32.mrf.mxu3 }
  0xd2   : > { %v677_v39 = vadd.f32 %v666_v37, %v600_v27  ;;  %v954_v48 = vadd.f32 %v1391_v43, %v941_v42 }
  0xd4   : > { %v761_v44 = vadd.f32 %v750_v25, %v677_v39  ;;  %v957_v55 = vmax.f32 %v954_v48, 0.0 }
  0xd6   : > { %v859_v45 = vadd.f32 %v848_v30, %v761_v44 }
  0xd8   : > { %v942_v49 = vadd.f32 %v931_v38, %v859_v45  ;;  %v755_v47 = vpop.f32.mrf.mxu2  ;;  %v934_v51 = vpop.f32.mrf.mxu0 }
  0xd9   : > { %v669_v50 = vpop.f32.mrf.mxu1  ;;  %v853_v54 = vpop.f32.mrf.mxu3 }
  0xda   : > { %v955_v52 = vadd.f32 %v1391_v43, %v942_v49  ;;  %v678_v53 = vadd.f32 %v669_v50, %v601_v46 }
  0xdc   : > { %v958_v56 = vmax.f32 %v955_v52, 0.0  ;;  %v762_v57 = vadd.f32 %v753_v34, %v678_v53 }
  0xde   : > { %v1375_v58 = vpack.c.bf16 %v958_v56, %v957_v55  ;;  %v860_v59 = vadd.f32 %v851_v40, %v762_v57 }
  0xe0   : > { %v943_v60 = vadd.f32 %v934_v51, %v860_v59  ;;  %1376 = vst [vmem:[%s170_s21] sm:$0xff] %v1375_v58   ;;  %v936_v62 = vpop.f32.mrf.mxu0 }
  0xe1   : > { %v671_v61 = vpop.f32.mrf.mxu1 }
  0xe2   : > { %v956_v63 = vadd.f32 %v1391_v43, %v943_v60 }
  0xe4   : > { %v959_v0 = vmax.f32 %v956_v63, 0.0 }
  0xe6   : > { %v962_v1 = vpack.c.bf16 %v959_v0, %v959_v0 }
  0xe8   : > { %965 = vst [vmem:[%s170_s21 + $0x8] sm:$0xf] %v962_v1 }
  0xe9 PF: > { %s13_s12 = sadd.s32 1, %s1398_s12  }
  0xea   : > { %p10_p4 = scmp.ge.s32.totalorder %s13_s12, 4  }
  0xec   :  { %12 = sbr.rel (!%p10_p4) target bundleno = 1 (0x1), region = 70 }

// kernel: vae_forward.13
= control target key start
LH: loop header
LB: loop body
LE: loop exit
PB: predicated region body
PF: predicated region fallthrough
CT: control target
= control target key end

     0   :  { %s2411_s12 = smov 0   ;;  %s3321_s0 = inlined_call_operand.vmem [shape: bf16[2,24,128], index: 0, kind: input, shape index: {}]   ;;  %s3322_s1 = inlined_call_operand.vmem [shape: bf16[9,128,256], index: 1, kind: input, shape index: {}]   ;;  %s3323_s2 = inlined_call_operand.vmem [shape: f32[1,256], index: 2, kind: input, shape index: {}]   ;;  %s3324_s3 = inlined_call_operand.vmem [shape: bf16[2,8,256], index: 3, kind: output, shape index: {}]  }
   0x1 LB: > { %s1480_s13 = sadd.s32 4294967295, %s2389_s12   ;;  %p1484_p0 = scmp.ge.s32.totalorder %s2389_s12, 1  ;;  %s2389_s12 = sphi %s2411_s12, %s13_s12  }
   0x2   : > { %p137_p1 = scmp.lt.s32.totalorder %s2389_s12, 3 }
   0x4   : > { %p138_p2 = pnand %p1484_p0, %p137_p1 }
   0x5   : > { %p161_p3 = scmp.lt.s32.totalorder (!%p138_p2), %s1480_s13, 1 }
   0x6   : > { %141 = sbr.rel (%p138_p2) target bundleno = 309 (0x135), region = 32 }
   0xb   : > { %v1546_v0 = vld [vmem:[%s3322_s1 + $0x70] sm:$0xf]  ;;  %v2238_v1 = vld [vmem:[%s3322_s1 + $0x74] sm:$0xf0]  ;;  %v2237_v2 = vld [vmem:[%s3322_s1 + $0x74] sm:$0xf] }
   0xc   : > { %v1547_v3 = vor.u32 %v2238_v1, %v1546_v0  ;;  %v1548_v4 = vld [vmem:[%s3322_s1 + $0x78] sm:$0xf0]  ;;  %v1630_v5 = vld [vmem:[%s3322_s1 + $0xf0] sm:$0xf]  ;;  %v2255_v6 = vld [vmem:[%s3322_s1 + $0xf4] sm:$0xf0] }
   0xd   : > { %v1551_v7 = vor.u32 %v2237_v2, %v1548_v4  ;;  %v1631_v8 = vor.u32 %v2255_v6, %v1630_v5  ;;  %v2254_v9 = vld [vmem:[%s3322_s1 + $0xf4] sm:$0xf]  ;;  %v1632_v10 = vld [vmem:[%s3322_s1 + $0xf8] sm:$0xf0]  ;;  %v1538_v11 = vld [vmem:[%s3322_s1 + $0x60] sm:$0xf] }
   0xe   : > { %268 = vmatpush.bf16.msra.mxu0 %v1547_v3  ;;  %v1635_v12 = vor.u32 %v2254_v9, %v1632_v10  ;;  %v2236_v13 = vld [vmem:[%s3322_s1 + $0x64] sm:$0xf0]  ;;  %v2235_v14 = vld [vmem:[%s3322_s1 + $0x64] sm:$0xf]  ;;  %v1540_v15 = vld [vmem:[%s3322_s1 + $0x68] sm:$0xf0] }
   0xf   : > { %281 = vmatpush.bf16.msra.mxu1 %v1551_v7  ;;  %408 = vmatpush.bf16.msra.mxu2 %v1631_v8  ;;  %v1539_v16 = vor.u32 %v2236_v13, %v1538_v11  ;;  %v1543_v17 = vor.u32 %v2235_v14, %v1540_v15  ;;  %v1622_v18 = vld [vmem:[%s3322_s1 + $0xe0] sm:$0xf]  ;;  %v2253_v19 = vld [vmem:[%s3322_s1 + $0xe4] sm:$0xf0]  ;;  %v2252_v20 = vld [vmem:[%s3322_s1 + $0xe4] sm:$0xf] }
  0x10   : > { %421 = vmatpush.bf16.msra.mxu3 %v1635_v12  ;;  %v1623_v21 = vor.u32 %v2253_v19, %v1622_v18  ;;  %v1624_v22 = vld [vmem:[%s3322_s1 + $0xe8] sm:$0xf0]  ;;  %v1530_v23 = vld [vmem:[%s3322_s1 + $0x50] sm:$0xf]  ;;  %v2234_v24 = vld [vmem:[%s3322_s1 + $0x54] sm:$0xf0] }
  0x11   : > { %v1627_v25 = vor.u32 %v2252_v20, %v1624_v22  ;;  %v2233_v26 = vld [vmem:[%s3322_s1 + $0x54] sm:$0xf]  ;;  %v1532_v27 = vld [vmem:[%s3322_s1 + $0x58] sm:$0xf0]  ;;  %v1614_v28 = vld [vmem:[%s3322_s1 + $0xd0] sm:$0xf]  ;;  %v1531_v29 = vor.u32 %v2234_v24, %v1530_v23 }
  0x12   : > { %269 = vmatpush.bf16.msra.mxu0 %v1539_v16  ;;  %v2251_v30 = vld [vmem:[%s3322_s1 + $0xd4] sm:$0xf0]  ;;  %v2250_v31 = vld [vmem:[%s3322_s1 + $0xd4] sm:$0xf]  ;;  %v1616_v32 = vld [vmem:[%s3322_s1 + $0xd8] sm:$0xf0]  ;;  %v1535_v33 = vor.u32 %v2233_v26, %v1532_v27 }
  0x13   : > { %282 = vmatpush.bf16.msra.mxu1 %v1543_v17  ;;  %409 = vmatpush.bf16.msra.mxu2 %v1623_v21  ;;  %v1615_v34 = vor.u32 %v2251_v30, %v1614_v28  ;;  %v1522_v35 = vld [vmem:[%s3322_s1 + $0x40] sm:$0xf]  ;;  %v2232_v36 = vld [vmem:[%s3322_s1 + $0x44] sm:$0xf0]  ;;  %v2231_v37 = vld [vmem:[%s3322_s1 + $0x44] sm:$0xf]  ;;  %v1619_v38 = vor.u32 %v2250_v31, %v1616_v32 }
  0x14   : > { %422 = vmatpush.bf16.msra.mxu3 %v1627_v25  ;;  %v1524_v39 = vld [vmem:[%s3322_s1 + $0x48] sm:$0xf0]  ;;  %v1606_v40 = vld [vmem:[%s3322_s1 + $0xc0] sm:$0xf]  ;;  %v2249_v41 = vld [vmem:[%s3322_s1 + $0xc4] sm:$0xf0]  ;;  %v1523_v44 = vor.u32 %v2232_v36, %v1522_v35 }
  0x15   : > { %v2248_v42 = vld [vmem:[%s3322_s1 + $0xc4] sm:$0xf]  ;;  %v1608_v43 = vld [vmem:[%s3322_s1 + $0xc8] sm:$0xf0]  ;;  %v1527_v45 = vor.u32 %v2231_v37, %v1524_v39  ;;  %v1607_v46 = vor.u32 %v2249_v41, %v1606_v40  ;;  %v1514_v47 = vld [vmem:[%s3322_s1 + $0x30] sm:$0xf] }
  0x16   : > { %270 = vmatpush.bf16.msra.mxu0 %v1531_v29  ;;  %v2230_v48 = vld [vmem:[%s3322_s1 + $0x34] sm:$0xf0]  ;;  %v2229_v49 = vld [vmem:[%s3322_s1 + $0x34] sm:$0xf]  ;;  %v1611_v50 = vor.u32 %v2248_v42, %v1608_v43  ;;  %v1516_v51 = vld [vmem:[%s3322_s1 + $0x38] sm:$0xf0] }
  0x17   : > { %283 = vmatpush.bf16.msra.mxu1 %v1535_v33  ;;  %410 = vmatpush.bf16.msra.mxu2 %v1615_v34  ;;  %v1598_v52 = vld [vmem:[%s3322_s1 + $0xb0] sm:$0xf]  ;;  %v2247_v53 = vld [vmem:[%s3322_s1 + $0xb4] sm:$0xf0]  ;;  %v2246_v54 = vld [vmem:[%s3322_s1 + $0xb4] sm:$0xf]  ;;  %v1515_v56 = vor.u32 %v2230_v48, %v1514_v47  ;;  %v1519_v57 = vor.u32 %v2229_v49, %v1516_v51 }
  0x18   : > { %423 = vmatpush.bf16.msra.mxu3 %v1619_v38  ;;  %v1600_v55 = vld [vmem:[%s3322_s1 + $0xb8] sm:$0xf0]  ;;  %v1599_v58 = vor.u32 %v2247_v53, %v1598_v52  ;;  %v1506_v59 = vld [vmem:[%s3322_s1 + $0x20] sm:$0xf]  ;;  %v2228_v60 = vld [vmem:[%s3322_s1 + $0x24] sm:$0xf0] }
  0x19   : > { %v2227_v61 = vld [vmem:[%s3322_s1 + $0x24] sm:$0xf]  ;;  %v1603_v62 = vor.u32 %v2246_v54, %v1600_v55  ;;  %v1508_v63 = vld [vmem:[%s3322_s1 + $0x28] sm:$0xf0]  ;;  %v1590_v0 = vld [vmem:[%s3322_s1 + $0xa0] sm:$0xf]  ;;  %v1507_v4 = vor.u32 %v2228_v60, %v1506_v59 }
  0x1a   : > { %271 = vmatpush.bf16.msra.mxu0 %v1523_v44  ;;  %v2245_v1 = vld [vmem:[%s3322_s1 + $0xa4] sm:$0xf0]  ;;  %v2244_v2 = vld [vmem:[%s3322_s1 + $0xa4] sm:$0xf]  ;;  %v1592_v3 = vld [vmem:[%s3322_s1 + $0xa8] sm:$0xf0]  ;;  %v1511_v5 = vor.u32 %v2227_v61, %v1508_v63 }
  0x1b   : > { %284 = vmatpush.bf16.msra.mxu1 %v1527_v45  ;;  %411 = vmatpush.bf16.msra.mxu2 %v1607_v46  ;;  %v1591_v6 = vor.u32 %v2245_v1, %v1590_v0  ;;  %v1498_v7 = vld [vmem:[%s3322_s1 + $0x10] sm:$0xf]  ;;  %v2226_v8 = vld [vmem:[%s3322_s1 + $0x14] sm:$0xf0]  ;;  %v2225_v9 = vld [vmem:[%s3322_s1 + $0x14] sm:$0xf]  ;;  %v1595_v10 = vor.u32 %v2244_v2, %v1592_v3 }
  0x1c   : > { %424 = vmatpush.bf16.msra.mxu3 %v1611_v50  ;;  %v1500_v11 = vld [vmem:[%s3322_s1 + $0x18] sm:$0xf0]  ;;  %v1582_v12 = vld [vmem:[%s3322_s1 + $0x90] sm:$0xf]  ;;  %v2243_v13 = vld [vmem:[%s3322_s1 + $0x94] sm:$0xf0]  ;;  %v1499_v16 = vor.u32 %v2226_v8, %v1498_v7 }
  0x1d   : > { %v2242_v14 = vld [vmem:[%s3322_s1 + $0x94] sm:$0xf]  ;;  %v1584_v15 = vld [vmem:[%s3322_s1 + $0x98] sm:$0xf0]  ;;  %v1490_v17 = vld [vmem:[%s3322_s1] sm:$0xf]  ;;  %v1503_v19 = vor.u32 %v2225_v9, %v1500_v11  ;;  %v1583_v20 = vor.u32 %v2243_v13, %v1582_v12 }
  0x1e   : > { %272 = vmatpush.bf16.msra.mxu0 %v1515_v56  ;;  %v2224_v18 = vld [vmem:[%s3322_s1 + $0x4] sm:$0xf0]  ;;  %v2223_v21 = vld [vmem:[%s3322_s1 + $0x4] sm:$0xf]  ;;  %v1492_v22 = vld [vmem:[%s3322_s1 + $0x8] sm:$0xf0]  ;;  %v1587_v24 = vor.u32 %v2242_v14, %v1584_v15 }
  0x1f   : > { %285 = vmatpush.bf16.msra.mxu1 %v1519_v57  ;;  %412 = vmatpush.bf16.msra.mxu2 %v1599_v58  ;;  %v1574_v23 = vld [vmem:[%s3322_s1 + $0x80] sm:$0xf]  ;;  %v2241_v25 = vld [vmem:[%s3322_s1 + $0x84] sm:$0xf0]  ;;  %v2240_v26 = vld [vmem:[%s3322_s1 + $0x84] sm:$0xf]  ;;  %v1491_v31 = vor.u32 %v2224_v18, %v1490_v17  ;;  %v1495_v35 = vor.u32 %v2223_v21, %v1492_v22 }
  0x20   : > { %425 = vmatpush.bf16.msra.mxu3 %v1603_v62  ;;  %v1576_v27 = vld [vmem:[%s3322_s1 + $0x88] sm:$0xf0]  ;;  %v1714_v28 = vld [vmem:[%s3322_s1 + $0x170] sm:$0xf]  ;;  %v2272_v29 = vld [vmem:[%s3322_s1 + $0x174] sm:$0xf0]  ;;  %v1575_v36 = vor.u32 %v2241_v25, %v1574_v23 }
  0x21   : > { %v2271_v30 = vld [vmem:[%s3322_s1 + $0x174] sm:$0xf]  ;;  %v1716_v32 = vld [vmem:[%s3322_s1 + $0x178] sm:$0xf0]  ;;  %v1798_v33 = vld [vmem:[%s3322_s1 + $0x1f0] sm:$0xf]  ;;  %v1579_v39 = vor.u32 %v2240_v26, %v1576_v27  ;;  %v1715_v40 = vor.u32 %v2272_v29, %v1714_v28 }
  0x22   : > { %273 = vmatpush.bf16.msra.mxu0 %v1507_v4  ;;  %v2289_v34 = vld [vmem:[%s3322_s1 + $0x1f4] sm:$0xf0]  ;;  %v2288_v37 = vld [vmem:[%s3322_s1 + $0x1f4] sm:$0xf]  ;;  %v1800_v38 = vld [vmem:[%s3322_s1 + $0x1f8] sm:$0xf0]  ;;  %v1719_v41 = vor.u32 %v2271_v30, %v1716_v32 }
  0x23   : > { %286 = vmatpush.bf16.msra.mxu1 %v1511_v5  ;;  %413 = vmatpush.bf16.msra.mxu2 %v1591_v6  ;;  %v1799_v42 = vor.u32 %v2289_v34, %v1798_v33  ;;  %v1706_v43 = vld [vmem:[%s3322_s1 + $0x160] sm:$0xf]  ;;  %v2270_v44 = vld [vmem:[%s3322_s1 + $0x164] sm:$0xf0]  ;;  %v2269_v45 = vld [vmem:[%s3322_s1 + $0x164] sm:$0xf]  ;;  %v1803_v46 = vor.u32 %v2288_v37, %v1800_v38 }
  0x24   : > { %426 = vmatpush.bf16.msra.mxu3 %v1595_v10  ;;  %v1708_v47 = vld [vmem:[%s3322_s1 + $0x168] sm:$0xf0]  ;;  %v1790_v48 = vld [vmem:[%s3322_s1 + $0x1e0] sm:$0xf]  ;;  %v2287_v49 = vld [vmem:[%s3322_s1 + $0x1e4] sm:$0xf0]  ;;  %v1707_v52 = vor.u32 %v2270_v44, %v1706_v43 }
  0x25   : > { %v2286_v50 = vld [vmem:[%s3322_s1 + $0x1e4] sm:$0xf]  ;;  %v1792_v51 = vld [vmem:[%s3322_s1 + $0x1e8] sm:$0xf0]  ;;  %v1698_v53 = vld [vmem:[%s3322_s1 + $0x150] sm:$0xf]  ;;  %v1711_v54 = vor.u32 %v2269_v45, %v1708_v47  ;;  %v1791_v55 = vor.u32 %v2287_v49, %v1790_v48 }
  0x26   : > { %274 = vmatpush.bf16.msra.mxu0 %v1499_v16  ;;  %v2268_v56 = vld [vmem:[%s3322_s1 + $0x154] sm:$0xf0]  ;;  %v2267_v57 = vld [vmem:[%s3322_s1 + $0x154] sm:$0xf]  ;;  %s3326_s13 = smov (!%p161_p3, %s1480_s13), 1  ;;  %v1795_v58 = vor.u32 %v2286_v50, %v1792_v51 }
  0x27   : > { %287 = vmatpush.bf16.msra.mxu1 %v1503_v19  ;;  %414 = vmatpush.bf16.msra.mxu2 %v1583_v20  ;;  %v1700_v59 = vld [vmem:[%s3322_s1 + $0x158] sm:$0xf0]  ;;  %v1782_v60 = vld [vmem:[%s3322_s1 + $0x1d0] sm:$0xf]  ;;  %v2285_v61 = vld [vmem:[%s3322_s1 + $0x1d4] sm:$0xf0]  ;;  %v1699_v0 = vor.u32 %v2268_v56, %v1698_v53 }
  0x28   : > { %427 = vmatpush.bf16.msra.mxu3 %v1587_v24  ;;  %v2284_v62 = vld [vmem:[%s3322_s1 + $0x1d4] sm:$0xf]  ;;  %v1784_v63 = vld [vmem:[%s3322_s1 + $0x1d8] sm:$0xf0]  ;;  %s2374_s15 = smul.u32 12, %s3326_s13  ;;  %v1703_v4 = vor.u32 %v2267_v57, %v1700_v59  ;;  %v1783_v5 = vor.u32 %v2285_v61, %v1782_v60  ;;  %s2222_s9 = sshll.u32 %s3326_s13, 3 }
  0x29   : > { %v1690_v1 = vld [vmem:[%s3322_s1 + $0x140] sm:$0xf]  ;;  %v2266_v2 = vld [vmem:[%s3322_s1 + $0x144] sm:$0xf0]  ;;  %v2265_v3 = vld [vmem:[%s3322_s1 + $0x144] sm:$0xf]  ;;  %v1787_v9 = vor.u32 %v2284_v62, %v1784_v63  ;;  %s170_s14 = scalar_lea.vmem %s3324_s3, %s2222_s9 }
  0x2a   : > { %275 = vmatpush.bf16.msra.mxu0 %v1491_v31  ;;  %v1692_v6 = vld [vmem:[%s3322_s1 + $0x148] sm:$0xf0]  ;;  %v1774_v7 = vld [vmem:[%s3322_s1 + $0x1c0] sm:$0xf]  ;;  %v2283_v8 = vld [vmem:[%s3322_s1 + $0x1c4] sm:$0xf0]  ;;  %s2711_s30 = scalar_lea.vmem %s3321_s0, %s2374_s15  ;;  %v1691_v16 = vor.u32 %v2266_v2, %v1690_v1 }
  0x2b   : > { %288 = vmatpush.bf16.msra.mxu1 %v1495_v35  ;;  %415 = vmatpush.bf16.msra.mxu2 %v1575_v36  ;;  %v171_v10 = vld [vmem:[%s2711_s30] sm:$0xf]  ;;  %v2239_v12 = vld [vmem:[%s2711_s30] sm:$0x10]  ;;  %v1776_v14 = vld [vmem:[%s3322_s1 + $0x1c8] sm:$0xf0]  ;;  %v1695_v18 = vor.u32 %v2265_v3, %v1692_v6  ;;  %v1775_v19 = vor.u32 %v2283_v8, %v1774_v7 }
  0x2c   : > { %428 = vmatpush.bf16.msra.mxu3 %v1579_v39  ;;  %v1570_v11 = vld [vmem:[%s2711_s30] sm:$0xf]  ;;  %v2282_v13 = vld [vmem:[%s3322_s1 + $0x1c4] sm:$0xf]  ;;  %v1682_v17 = vld [vmem:[%s3322_s1 + $0x130] sm:$0xf] }
  0x2d   : > { %276 = vmatmul.bf16.vlgmr.msra.gmra.mxu0 %v171_v10  ;;  %v1571_v15 = vor.u32 %v2239_v12, %v1570_v11  ;;  %v2264_v22 = vld [vmem:[%s3322_s1 + $0x134] sm:$0xf0]  ;;  %v2263_v23 = vld [vmem:[%s3322_s1 + $0x134] sm:$0xf]  ;;  %v1779_v24 = vor.u32 %v2282_v13, %v1776_v14  ;;  %v1684_v25 = vld [vmem:[%s3322_s1 + $0x138] sm:$0xf0] }
  0x2e   : > { %546 = vmatpush.bf16.msrb.mxu0 %v1715_v40  ;;  %289 = vmatmul.bf16.vlgmr.msra.gmra.mxu1 %v171_v10  ;;  %v1766_v26 = vld [vmem:[%s3322_s1 + $0x1b0] sm:$0xf]  ;;  %v2281_v27 = vld [vmem:[%s3322_s1 + $0x1b4] sm:$0xf0]  ;;  %v2280_v29 = vld [vmem:[%s3322_s1 + $0x1b4] sm:$0xf]  ;;  %v1683_v31 = vor.u32 %v2264_v22, %v1682_v17  ;;  %v1687_v33 = vor.u32 %v2263_v23, %v1684_v25 }
  0x2f   : > { %559 = vmatpush.bf16.msrb.mxu1 %v1719_v41  ;;  %684 = vmatpush.bf16.msrb.mxu2 %v1799_v42  ;;  %v321_v20 = vshrl.u32 %v1571_v15, 16  ;;  %v323_v21 = vshll.u32 %v1571_v15, 16  ;;  %v1768_v30 = vld [vmem:[%s3322_s1 + $0x1b8] sm:$0xf0]  ;;  %v1767_v34 = vor.u32 %v2281_v27, %v1766_v26  ;;  %v1674_v35 = vld [vmem:[%s3322_s1 + $0x120] sm:$0xf] }
  0x30   : > { %697 = vmatpush.bf16.msrb.mxu3 %v1803_v46  ;;  %v2262_v36 = vld [vmem:[%s3322_s1 + $0x124] sm:$0xf0]  ;;  %v2261_v37 = vld [vmem:[%s3322_s1 + $0x124] sm:$0xf]  ;;  %v1771_v38 = vor.u32 %v2280_v29, %v1768_v30  ;;  %v1676_v39 = vld [vmem:[%s3322_s1 + $0x128] sm:$0xf0] }
  0x31   : > { %v325_v28 = vrot.slane %v323_v21, 1  ;;  %v1758_v40 = vld [vmem:[%s3322_s1 + $0x1a0] sm:$0xf]  ;;  %v2279_v41 = vld [vmem:[%s3322_s1 + $0x1a4] sm:$0xf0]  ;;  %v1675_v44 = vor.u32 %v2262_v36, %v1674_v35  ;;  %v1679_v46 = vor.u32 %v2261_v37, %v1676_v39 }
  0x32   : > { %547 = vmatpush.bf16.msrb.mxu0 %v1707_v52  ;;  %v2278_v42 = vld [vmem:[%s3322_s1 + $0x1a4] sm:$0xf]  ;;  %v1760_v43 = vld [vmem:[%s3322_s1 + $0x1a8] sm:$0xf0]  ;;  %v1666_v45 = vld [vmem:[%s3322_s1 + $0x110] sm:$0xf]  ;;  %v1759_v47 = vor.u32 %v2279_v41, %v1758_v40 }
  0x33   : > { %560 = vmatpush.bf16.msrb.mxu1 %v1711_v54  ;;  %685 = vmatpush.bf16.msrb.mxu2 %v1791_v55  ;;  %v326_v32 = vor.u32 %v325_v28, %v321_v20  ;;  %v2260_v48 = vld [vmem:[%s3322_s1 + $0x114] sm:$0xf0]  ;;  %v2259_v49 = vld [vmem:[%s3322_s1 + $0x114] sm:$0xf]  ;;  %v1668_v50 = vld [vmem:[%s3322_s1 + $0x118] sm:$0xf0]  ;;  %v1763_v51 = vor.u32 %v2278_v42, %v1760_v43 }
  0x34   : > { %698 = vmatpush.bf16.msrb.mxu3 %v1795_v58  ;;  %v1750_v52 = vld [vmem:[%s3322_s1 + $0x190] sm:$0xf]  ;;  %v2277_v53 = vld [vmem:[%s3322_s1 + $0x194] sm:$0xf0]  ;;  %v2276_v54 = vld [vmem:[%s3322_s1 + $0x194] sm:$0xf]  ;;  %v1667_v58 = vor.u32 %v2260_v48, %v1666_v45  ;;  %v1671_v63 = vor.u32 %v2259_v49, %v1668_v50 }
  0x35   : > { %416 = vmatmul.bf16.vlgmr.msra.gmra.mxu2 %v326_v32  ;;  %429 = vmatmul.bf16.vlgmr.msra.gmra.mxu3 %v326_v32  ;;  %v1752_v55 = vld [vmem:[%s3322_s1 + $0x198] sm:$0xf0]  ;;  %v1658_v56 = vld [vmem:[%s3322_s1 + $0x100] sm:$0xf]  ;;  %v2258_v57 = vld [vmem:[%s3322_s1 + $0x104] sm:$0xf0] }
  0x36   : > { %548 = vmatpush.bf16.msrb.mxu0 %v1699_v0  ;;  %v2257_v59 = vld [vmem:[%s3322_s1 + $0x104] sm:$0xf]  ;;  %v1660_v60 = vld [vmem:[%s3322_s1 + $0x108] sm:$0xf0]  ;;  %v1742_v61 = vld [vmem:[%s3322_s1 + $0x180] sm:$0xf]  ;;  %v1751_v0 = vor.u32 %v2277_v53, %v1750_v52  ;;  %v1659_v11 = vor.u32 %v2258_v57, %v1658_v56 }
  0x37   : > { %561 = vmatpush.bf16.msrb.mxu1 %v1703_v4  ;;  %686 = vmatpush.bf16.msrb.mxu2 %v1783_v5  ;;  %v2275_v62 = vld [vmem:[%s3322_s1 + $0x184] sm:$0xf0]  ;;  %v2274_v1 = vld [vmem:[%s3322_s1 + $0x184] sm:$0xf]  ;;  %v1654_v2 = vld [vmem:[%s2711_s30] sm:$0xe]  ;;  %v1755_v4 = vor.u32 %v2276_v54, %v1752_v55 }
  0x38   : > { %699 = vmatpush.bf16.msrb.mxu3 %v1787_v9  ;;  %v2256_v3 = vld [vmem:[%s2711_s30] sm:$0x10]  ;;  %v1744_v5 = vld [vmem:[%s3322_s1 + $0x188] sm:$0xf0]  ;;  %v1738_v6 = vld [vmem:[%s2711_s30] sm:$0xc]  ;;  %v1743_v17 = vor.u32 %v2275_v62, %v1742_v61 }
  0x39   : > { %v2273_v7 = vld [vmem:[%s2711_s30] sm:$0x30]  ;;  %v1882_v8 = vld [vmem:[%s3322_s1 + $0x270] sm:$0xf]  ;;  %v2306_v9 = vld [vmem:[%s3322_s1 + $0x274] sm:$0xf0]  ;;  %v1655_v15 = vor.u32 %v2256_v3, %v1654_v2  ;;  %v1747_v21 = vor.u32 %v2274_v1, %v1744_v5 }
  0x3a   : > { %549 = vmatpush.bf16.msrb.mxu0 %v1691_v16  ;;  %v2305_v10 = vld [vmem:[%s3322_s1 + $0x274] sm:$0xf]  ;;  %v1884_v12 = vld [vmem:[%s3322_s1 + $0x278] sm:$0xf0]  ;;  %v1966_v13 = vld [vmem:[%s3322_s1 + $0x2f0] sm:$0xf]  ;;  %v1663_v16 = vor.u32 %v2257_v59, %v1660_v60  ;;  %v1739_v20 = vor.u32 %v2273_v7, %v1738_v6  ;;  %v1883_v22 = vor.u32 %v2306_v9, %v1882_v8 }
  0x3b   : > { %562 = vmatpush.bf16.msrb.mxu1 %v1695_v18  ;;  %687 = vmatpush.bf16.msrb.mxu2 %v1775_v19  ;;  %v2323_v14 = vld [vmem:[%s3322_s1 + $0x2f4] sm:$0xf0]  ;;  %v2322_v18 = vld [vmem:[%s3322_s1 + $0x2f4] sm:$0xf]  ;;  %v1968_v19 = vld [vmem:[%s3322_s1 + $0x2f8] sm:$0xf0] }
  0x3c   : > { %700 = vmatpush.bf16.msrb.mxu3 %v1779_v24  ;;  %v1874_v23 = vld [vmem:[%s3322_s1 + $0x260] sm:$0xf]  ;;  %v1887_v24 = vor.u32 %v2305_v10, %v1884_v12  ;;  %v1967_v25 = vor.u32 %v2323_v14, %v1966_v13  ;;  %v2304_v26 = vld [vmem:[%s3322_s1 + $0x264] sm:$0xf0]  ;;  %v2303_v27 = vld [vmem:[%s3322_s1 + $0x264] sm:$0xf]  ;;  %v1971_v29 = vor.u32 %v2322_v18, %v1968_v19 }
  0x3d   : > { %v1876_v28 = vld [vmem:[%s3322_s1 + $0x268] sm:$0xf0]  ;;  %v464_v30 = vrot.slane %v1655_v15, 1  ;;  %v2321_v32 = vld [vmem:[%s3322_s1 + $0x2e4] sm:$0xf0]  ;;  %v1875_v36 = vor.u32 %v2304_v26, %v1874_v23 }
  0x3e   : > { %550 = vmatpush.bf16.msrb.mxu0 %v1683_v31  ;;  %v1958_v31 = vld [vmem:[%s3322_s1 + $0x2e0] sm:$0xf]  ;;  %v1960_v35 = vld [vmem:[%s3322_s1 + $0x2e8] sm:$0xf0]  ;;  %v1879_v37 = vor.u32 %v2303_v27, %v1876_v28  ;;  %v1866_v39 = vld [vmem:[%s3322_s1 + $0x250] sm:$0xf] }
  0x3f   : > { %563 = vmatpush.bf16.msrb.mxu1 %v1687_v33  ;;  %688 = vmatpush.bf16.msrb.mxu2 %v1767_v34  ;;  %v602_v33 = vrot.slane %v1739_v20, 2  ;;  %v2320_v34 = vld [vmem:[%s3322_s1 + $0x2e4] sm:$0xf]  ;;  %v2302_v40 = vld [vmem:[%s3322_s1 + $0x254] sm:$0xf0] }
  0x40   : > { %701 = vmatpush.bf16.msrb.mxu3 %v1771_v38  ;;  %v1959_v38 = vor.u32 %v2321_v32, %v1958_v31  ;;  %v2301_v41 = vld [vmem:[%s3322_s1 + $0x254] sm:$0xf]  ;;  %v1963_v42 = vor.u32 %v2320_v34, %v1960_v35  ;;  %v1868_v43 = vld [vmem:[%s3322_s1 + $0x258] sm:$0xf0]  ;;  %v2319_v45 = vld [vmem:[%s3322_s1 + $0x2d4] sm:$0xf0]  ;;  %v1867_v48 = vor.u32 %v2302_v40, %v1866_v39 }
  0x41   : > { %v1871_v49 = vor.u32 %v2301_v41, %v1868_v43  ;;  %v2300_v52 = vld [vmem:[%s3322_s1 + $0x244] sm:$0xf0]  ;;  %v2299_v53 = vld [vmem:[%s3322_s1 + $0x244] sm:$0xf]  ;;  %v1860_v55 = vld [vmem:[%s3322_s1 + $0x248] sm:$0xf0] }
  0x42   : > { %551 = vmatpush.bf16.msrb.mxu0 %v1675_v44  ;;  %v1950_v44 = vld [vmem:[%s3322_s1 + $0x2d0] sm:$0xf]  ;;  %v1942_v56 = vld [vmem:[%s3322_s1 + $0x2c0] sm:$0xf]  ;;  %v2317_v57 = vld [vmem:[%s3322_s1 + $0x2c4] sm:$0xf0]  ;;  %v1863_v61 = vor.u32 %v2299_v53, %v1860_v55 }
  0x43   : > { %564 = vmatpush.bf16.msrb.mxu1 %v1679_v46  ;;  %689 = vmatpush.bf16.msrb.mxu2 %v1759_v47  ;;  %v2318_v46 = vld [vmem:[%s3322_s1 + $0x2d4] sm:$0xf]  ;;  %v1952_v47 = vld [vmem:[%s3322_s1 + $0x2d8] sm:$0xf0]  ;;  %v1951_v50 = vor.u32 %v2319_v45, %v1950_v44  ;;  %v1944_v59 = vld [vmem:[%s3322_s1 + $0x2c8] sm:$0xf0]  ;;  %v1943_v62 = vor.u32 %v2317_v57, %v1942_v56 }
  0x44   : > { %702 = vmatpush.bf16.msrb.mxu3 %v1763_v51  ;;  %v1858_v51 = vld [vmem:[%s3322_s1 + $0x240] sm:$0xf]  ;;  %v1955_v54 = vor.u32 %v2318_v46, %v1952_v47  ;;  %v2297_v1 = vld [vmem:[%s3322_s1 + $0x234] sm:$0xf]  ;;  %v1852_v3 = vld [vmem:[%s3322_s1 + $0x238] sm:$0xf0] }
  0x45   : > { %v1859_v60 = vor.u32 %v2300_v52, %v1858_v51  ;;  %v2315_v5 = vld [vmem:[%s3322_s1 + $0x2b4] sm:$0xf0]  ;;  %v2314_v6 = vld [vmem:[%s3322_s1 + $0x2b4] sm:$0xf]  ;;  %v1936_v7 = vld [vmem:[%s3322_s1 + $0x2b8] sm:$0xf0] }
  0x46   : > { %552 = vmatpush.bf16.msrb.mxu0 %v1667_v58  ;;  %v2316_v58 = vld [vmem:[%s3322_s1 + $0x2c4] sm:$0xf]  ;;  %v1842_v9 = vld [vmem:[%s3322_s1 + $0x220] sm:$0xf]  ;;  %v2296_v10 = vld [vmem:[%s3322_s1 + $0x224] sm:$0xf0] }
  0x47   : > { %565 = vmatpush.bf16.msrb.mxu1 %v1671_v63  ;;  %690 = vmatpush.bf16.msrb.mxu2 %v1751_v0  ;;  %v1850_v63 = vld [vmem:[%s3322_s1 + $0x230] sm:$0xf]  ;;  %v2298_v0 = vld [vmem:[%s3322_s1 + $0x234] sm:$0xf0]  ;;  %v1947_v2 = vor.u32 %v2316_v58, %v1944_v59  ;;  %v2295_v13 = vld [vmem:[%s3322_s1 + $0x224] sm:$0xf] }
  0x48   : > { %703 = vmatpush.bf16.msrb.mxu3 %v1755_v4  ;;  %v1934_v4 = vld [vmem:[%s3322_s1 + $0x2b0] sm:$0xf]  ;;  %v1851_v8 = vor.u32 %v2298_v0, %v1850_v63  ;;  %v1822_v14 = vld [vmem:[%s2711_s30] sm:$0xc]  ;;  %v2290_v15 = vld [vmem:[%s2711_s30] sm:$0x70] }
  0x49   : > { %v1935_v12 = vor.u32 %v2315_v5, %v1934_v4  ;;  %v1926_v18 = vld [vmem:[%s3322_s1 + $0x2a0] sm:$0xf]  ;;  %v2313_v19 = vld [vmem:[%s3322_s1 + $0x2a4] sm:$0xf0]  ;;  %v2312_v20 = vld [vmem:[%s3322_s1 + $0x2a4] sm:$0xf] }
  0x4a   : > { %553 = vmatpush.bf16.msrb.mxu0 %v1659_v11  ;;  %v1855_v11 = vor.u32 %v2297_v1, %v1852_v3  ;;  %v1834_v23 = vld [vmem:[%s3322_s1 + $0x210] sm:$0xf]  ;;  %v1927_v26 = vor.u32 %v2313_v19, %v1926_v18  ;;  %v2294_v27 = vld [vmem:[%s3322_s1 + $0x214] sm:$0xf0]  ;;  %v2293_v28 = vld [vmem:[%s3322_s1 + $0x214] sm:$0xf] }
  0x4b   : > { %566 = vmatpush.bf16.msrb.mxu1 %v1663_v16  ;;  %691 = vmatpush.bf16.msrb.mxu2 %v1743_v17  ;;  %v1939_v16 = vor.u32 %v2314_v6, %v1936_v7  ;;  %v1844_v17 = vld [vmem:[%s3322_s1 + $0x228] sm:$0xf0]  ;;  %v1918_v31 = vld [vmem:[%s3322_s1 + $0x290] sm:$0xf]  ;;  %v2311_v32 = vld [vmem:[%s3322_s1 + $0x294] sm:$0xf0] }
  0x4c   : > { %704 = vmatpush.bf16.msrb.mxu3 %v1747_v21  ;;  %v1928_v21 = vld [vmem:[%s3322_s1 + $0x2a8] sm:$0xf0]  ;;  %v1920_v34 = vld [vmem:[%s3322_s1 + $0x298] sm:$0xf0]  ;;  %v1826_v35 = vld [vmem:[%s3322_s1 + $0x200] sm:$0xf]  ;;  %v1919_v44 = vor.u32 %v2311_v32, %v1918_v31 }
  0x4d   : > { %554 = vmatmul.bf16.vlgmr.msrb.gmra.mxu0 %v464_v30  ;;  %v1828_v39 = vld [vmem:[%s3322_s1 + $0x208] sm:$0xf0]  ;;  %v1910_v40 = vld [vmem:[%s3322_s1 + $0x280] sm:$0xf]  ;;  %v2309_v45 = vld [vmem:[%s3322_s1 + $0x284] sm:$0xf0] }
  0x4e   : > { %829 = vmatpush.bf16.msra.mxu0 %v1883_v22  ;;  %567 = vmatmul.bf16.vlgmr.msrb.gmra.mxu1 %v464_v30  ;;  %v1843_v22 = vor.u32 %v2296_v10, %v1842_v9  ;;  %v1931_v30 = vor.u32 %v2312_v20, %v1928_v21  ;;  %v2308_v46 = vld [vmem:[%s3322_s1 + $0x284] sm:$0xf]  ;;  %v1912_v47 = vld [vmem:[%s3322_s1 + $0x288] sm:$0xf0]  ;;  %v2339_v52 = vld [vmem:[%s3322_s1 + $0x374] sm:$0xf0] }
  0x4f   : > { %842 = vmatpush.bf16.msra.mxu1 %v1887_v24  ;;  %967 = vmatpush.bf16.msra.mxu2 %v1967_v25  ;;  %v1823_v24 = vor.u32 %v2290_v15, %v1822_v14  ;;  %v1847_v25 = vor.u32 %v2295_v13, %v1844_v17  ;;  %v2307_v51 = vld [vmem:[%s2711_s30] sm:$0x70]  ;;  %v2338_v53 = vld [vmem:[%s3322_s1 + $0x374] sm:$0xf]  ;;  %v2130_v56 = vld [vmem:[%s3322_s1 + $0x3f0] sm:$0xf]  ;;  %v1915_v1 = vor.u32 %v2308_v46, %v1912_v47 }
  0x50   : > { %980 = vmatpush.bf16.msra.mxu3 %v1971_v29  ;;  %692 = vmatmul.bf16.vlgmr.msrb.gmra.mxu2 %v602_v33  ;;  %v1836_v29 = vld [vmem:[%s3322_s1 + $0x218] sm:$0xf0]  ;;  %v2356_v57 = vld [vmem:[%s3322_s1 + $0x3f4] sm:$0xf0]  ;;  %v2038_v5 = vld [vmem:[%s3322_s1 + $0x360] sm:$0xf] }
  0x51   : > { %705 = vmatmul.bf16.vlgmr.msrb.gmra.mxu3 %v602_v33  ;;  %v2310_v33 = vld [vmem:[%s3322_s1 + $0x294] sm:$0xf]  ;;  %v741_v41 = vshrl.u32 %v1823_v24, 16  ;;  %v1839_v43 = vor.u32 %v2293_v28, %v1836_v29  ;;  %v2132_v63 = vld [vmem:[%s3322_s1 + $0x3f8] sm:$0xf0]  ;;  %v2131_v4 = vor.u32 %v2356_v57, %v2130_v56 }
  0x52   : > { %830 = vmatpush.bf16.msra.mxu0 %v1875_v36  ;;  %v2292_v36 = vld [vmem:[%s3322_s1 + $0x204] sm:$0xf0]  ;;  %v2336_v7 = vld [vmem:[%s3322_s1 + $0x364] sm:$0xf]  ;;  %v2040_v10 = vld [vmem:[%s3322_s1 + $0x368] sm:$0xf0] }
  0x53   : > { %843 = vmatpush.bf16.msra.mxu1 %v1879_v37  ;;  %968 = vmatpush.bf16.msra.mxu2 %v1959_v38  ;;  %v1835_v37 = vor.u32 %v2294_v27, %v1834_v23  ;;  %v2291_v38 = vld [vmem:[%s3322_s1 + $0x204] sm:$0xf]  ;;  %v1827_v55 = vor.u32 %v2292_v36, %v1826_v35  ;;  %v743_v58 = vrot.slane %v741_v41, 2  ;;  %v2337_v6 = vld [vmem:[%s3322_s1 + $0x364] sm:$0xf0]  ;;  %v2043_v17 = vor.u32 %v2336_v7, %v2040_v10 }
  0x54   : > { %981 = vmatpush.bf16.msra.mxu3 %v1963_v42  ;;  %v744_v42 = vshll.u32 %v1823_v24, 16  ;;  %v2353_v14 = vld [vmem:[%s3322_s1 + $0x3e4] sm:$0xf]  ;;  %v2124_v15 = vld [vmem:[%s3322_s1 + $0x3e8] sm:$0xf0] }
  0x55   : > { %v2030_v19 = vld [vmem:[%s3322_s1 + $0x350] sm:$0xf]  ;;  %v2335_v20 = vld [vmem:[%s3322_s1 + $0x354] sm:$0xf0]  ;;  %v2334_v21 = vld [vmem:[%s3322_s1 + $0x354] sm:$0xf] }
  0x56   : > { %831 = vmatpush.bf16.msra.mxu0 %v1867_v48  ;;  %v1923_v48 = vor.u32 %v2310_v33, %v1920_v34  ;;  %v746_v59 = vrot.slane %v744_v42, 3  ;;  %v2032_v23 = vld [vmem:[%s3322_s1 + $0x358] sm:$0xf0]  ;;  %v2114_v24 = vld [vmem:[%s3322_s1 + $0x3d0] sm:$0xf]  ;;  %v2031_v28 = vor.u32 %v2335_v20, %v2030_v19 }
  0x57   : > { %844 = vmatpush.bf16.msra.mxu1 %v1871_v49  ;;  %969 = vmatpush.bf16.msra.mxu2 %v1951_v50  ;;  %v2046_v49 = vld [vmem:[%s3322_s1 + $0x370] sm:$0xf]  ;;  %v1906_v50 = vld [vmem:[%s2711_s30] sm:$0x8]  ;;  %v2116_v27 = vld [vmem:[%s3322_s1 + $0x3d8] sm:$0xf0]  ;;  %v2035_v29 = vor.u32 %v2334_v21, %v2032_v23 }
  0x58   : > { %982 = vmatpush.bf16.msra.mxu3 %v1955_v54  ;;  %v2048_v54 = vld [vmem:[%s3322_s1 + $0x378] sm:$0xf0]  ;;  %v1907_v0 = vor.u32 %v2307_v51, %v1906_v50  ;;  %v747_v9 = vor.u32 %v746_v59, %v743_v58  ;;  %v2022_v31 = vld [vmem:[%s3322_s1 + $0x340] sm:$0xf]  ;;  %v2333_v32 = vld [vmem:[%s3322_s1 + $0x344] sm:$0xf0] }
  0x59   : > { %v2051_v3 = vor.u32 %v2338_v53, %v2048_v54  ;;  %v2332_v33 = vld [vmem:[%s3322_s1 + $0x344] sm:$0xf]  ;;  %v2024_v35 = vld [vmem:[%s3322_s1 + $0x348] sm:$0xf0]  ;;  %v2106_v36 = vld [vmem:[%s3322_s1 + $0x3c0] sm:$0xf] }
  0x5a   : > { %832 = vmatpush.bf16.msra.mxu0 %v1859_v60  ;;  %v1831_v60 = vor.u32 %v2291_v38, %v1828_v39  ;;  %v885_v13 = vrot.slane %v1907_v0, 3  ;;  %v2349_v38 = vld [vmem:[%s3322_s1 + $0x3c4] sm:$0xf]  ;;  %v2108_v39 = vld [vmem:[%s3322_s1 + $0x3c8] sm:$0xf0]  ;;  %v2027_v41 = vor.u32 %v2332_v33, %v2024_v35 }
  0x5b   : > { %845 = vmatpush.bf16.msra.mxu1 %v1863_v61  ;;  %970 = vmatpush.bf16.msra.mxu2 %v1943_v62  ;;  %v1911_v61 = vor.u32 %v2309_v45, %v1910_v40  ;;  %v2355_v62 = vld [vmem:[%s3322_s1 + $0x3f4] sm:$0xf]  ;;  %v2023_v40 = vor.u32 %v2333_v32, %v2022_v31  ;;  %v2111_v46 = vor.u32 %v2349_v38, %v2108_v39  ;;  %v2016_v47 = vld [vmem:[%s3322_s1 + $0x338] sm:$0xf0]  ;;  %v2006_v53 = vld [vmem:[%s3322_s1 + $0x320] sm:$0xf] }
  0x5c   : > { %983 = vmatpush.bf16.msra.mxu3 %v1947_v2  ;;  %v2047_v2 = vor.u32 %v2339_v52, %v2046_v49  ;;  %v2330_v45 = vld [vmem:[%s3322_s1 + $0x334] sm:$0xf]  ;;  %v2348_v49 = vld [vmem:[%s3322_s1 + $0x3b4] sm:$0xf0]  ;;  %v2100_v51 = vld [vmem:[%s3322_s1 + $0x3b8] sm:$0xf0] }
  0x5d   : > { %v2347_v50 = vld [vmem:[%s3322_s1 + $0x3b4] sm:$0xf]  ;;  %v2329_v54 = vld [vmem:[%s3322_s1 + $0x324] sm:$0xf0]  ;;  %v2328_v57 = vld [vmem:[%s3322_s1 + $0x324] sm:$0xf] }
  0x5e   : > { %833 = vmatpush.bf16.msra.mxu0 %v1851_v8  ;;  %v2135_v8 = vor.u32 %v2355_v62, %v2132_v63  ;;  %v2070_v58 = vld [vmem:[%s2711_s30 + $0x4] sm:$0xf]  ;;  %v2340_v59 = vld [vmem:[%s2711_s30 + $0x4] sm:$0x10]  ;;  %v2090_v62 = vld [vmem:[%s3322_s1 + $0x3a0] sm:$0xf] }
  0x5f   : > { %846 = vmatpush.bf16.msra.mxu1 %v1855_v11  ;;  %971 = vmatpush.bf16.msra.mxu2 %v1935_v12  ;;  %v2122_v11 = vld [vmem:[%s3322_s1 + $0x3e0] sm:$0xf]  ;;  %v2354_v12 = vld [vmem:[%s3322_s1 + $0x3e4] sm:$0xf0]  ;;  %v2345_v0 = vld [vmem:[%s3322_s1 + $0x3a4] sm:$0xf] }
  0x60   : > { %984 = vmatpush.bf16.msra.mxu3 %v1939_v16  ;;  %v2039_v16 = vor.u32 %v2337_v6, %v2038_v5  ;;  %v2123_v18 = vor.u32 %v2354_v12, %v2122_v11  ;;  %v2346_v63 = vld [vmem:[%s3322_s1 + $0x3a4] sm:$0xf0]  ;;  %v1998_v6 = vld [vmem:[%s3322_s1 + $0x310] sm:$0xf]  ;;  %v2327_v7 = vld [vmem:[%s3322_s1 + $0x314] sm:$0xf0] }
  0x61   : > { %v2091_v5 = vor.u32 %v2346_v63, %v2090_v62  ;;  %v2000_v10 = vld [vmem:[%s3322_s1 + $0x318] sm:$0xf0]  ;;  %v2082_v11 = vld [vmem:[%s3322_s1 + $0x390] sm:$0xf]  ;;  %v2344_v12 = vld [vmem:[%s3322_s1 + $0x394] sm:$0xf0] }
  0x62   : > { %834 = vmatpush.bf16.msra.mxu0 %v1843_v22  ;;  %v2127_v22 = vor.u32 %v2353_v14, %v2124_v15  ;;  %v2084_v14 = vld [vmem:[%s3322_s1 + $0x398] sm:$0xf0]  ;;  %v1999_v15 = vor.u32 %v2327_v7, %v1998_v6  ;;  %v2083_v19 = vor.u32 %v2344_v12, %v2082_v11  ;;  %v2325_v20 = vld [vmem:[%s3322_s1 + $0x304] sm:$0xf0]  ;;  %v2324_v21 = vld [vmem:[%s3322_s1 + $0x304] sm:$0xf] }
  0x63   : > { %847 = vmatpush.bf16.msra.mxu1 %v1847_v25  ;;  %972 = vmatpush.bf16.msra.mxu2 %v1927_v26  ;;  %v2352_v25 = vld [vmem:[%s3322_s1 + $0x3d4] sm:$0xf0]  ;;  %v2351_v26 = vld [vmem:[%s3322_s1 + $0x3d4] sm:$0xf]  ;;  %v2216_v32 = vld [vmem:[%s3322_s1 + $0x478] sm:$0xf0] }
  0x64   : > { %985 = vmatpush.bf16.msra.mxu3 %v1931_v30  ;;  %v2115_v30 = vor.u32 %v2352_v25, %v2114_v24  ;;  %v2119_v34 = vor.u32 %v2351_v26, %v2116_v27  ;;  %v2074_v24 = vld [vmem:[%s3322_s1 + $0x380] sm:$0xf]  ;;  %v2342_v25 = vld [vmem:[%s3322_s1 + $0x384] sm:$0xf0]  ;;  %v2341_v26 = vld [vmem:[%s3322_s1 + $0x384] sm:$0xf] }
  0x65   : > { %v2076_v27 = vld [vmem:[%s3322_s1 + $0x388] sm:$0xf0]  ;;  %v2372_v31 = vld [vmem:[%s3322_s1 + $0x474] sm:$0xf]  ;;  %v2184_v63 = vld [vmem:[%s3322_s1 + $0x438] sm:$0xf0] }
  0x66   : > { %835 = vmatpush.bf16.msra.mxu0 %v1835_v37  ;;  %v2350_v37 = vld [vmem:[%s3322_s1 + $0x3c4] sm:$0xf0]  ;;  %v2219_v39 = vor.u32 %v2372_v31, %v2216_v32  ;;  %v2364_v62 = vld [vmem:[%s3322_s1 + $0x434] sm:$0xf]  ;;  %v2168_v11 = vld [vmem:[%s3322_s1 + $0x418] sm:$0xf0] }
  0x67   : > { %848 = vmatpush.bf16.msra.mxu1 %v1839_v43  ;;  %973 = vmatpush.bf16.msra.mxu2 %v1919_v44  ;;  %v2107_v42 = vor.u32 %v2350_v37, %v2106_v36  ;;  %v2014_v43 = vld [vmem:[%s3322_s1 + $0x330] sm:$0xf]  ;;  %v2331_v44 = vld [vmem:[%s3322_s1 + $0x334] sm:$0xf0]  ;;  %v2075_v36 = vor.u32 %v2342_v25, %v2074_v24  ;;  %v2079_v37 = vor.u32 %v2341_v26, %v2076_v27 }
  0x68   : > { %986 = vmatpush.bf16.msra.mxu3 %v1923_v48  ;;  %v2098_v48 = vld [vmem:[%s3322_s1 + $0x3b0] sm:$0xf]  ;;  %v2015_v52 = vor.u32 %v2331_v44, %v2014_v43  ;;  %v2370_v44 = vld [vmem:[%s3322_s1 + $0x464] sm:$0xf] }
  0x69   : > { %v2099_v56 = vor.u32 %v2348_v49, %v2098_v48  ;;  %v2198_v48 = vld [vmem:[%s3322_s1 + $0x450] sm:$0xf]  ;;  %v2369_v49 = vld [vmem:[%s3322_s1 + $0x454] sm:$0xf0] }
  0x6a   : > { %836 = vmatpush.bf16.msra.mxu0 %v1827_v55  ;;  %v2019_v55 = vor.u32 %v2330_v45, %v2016_v47  ;;  %v2208_v45 = vld [vmem:[%s3322_s1 + $0x468] sm:$0xf0] }
  0x6b   : > { %849 = vmatpush.bf16.msra.mxu1 %v1831_v60  ;;  %974 = vmatpush.bf16.msra.mxu2 %v1911_v61  ;;  %v2103_v60 = vor.u32 %v2347_v50, %v2100_v51  ;;  %v2008_v61 = vld [vmem:[%s3322_s1 + $0x328] sm:$0xf0]  ;;  %v2211_v47 = vor.u32 %v2370_v44, %v2208_v45  ;;  %v2368_v50 = vld [vmem:[%s3322_s1 + $0x454] sm:$0xf]  ;;  %v2200_v51 = vld [vmem:[%s3322_s1 + $0x458] sm:$0xf0] }
  0x6c   : > { %987 = vmatpush.bf16.msra.mxu3 %v1915_v1  ;;  %v2092_v1 = vld [vmem:[%s3322_s1 + $0x3a8] sm:$0xf0] }
  0x6d   : > { %837 = vmatmul.bf16.vlgmr.msra.gmra.mxu0 %v747_v9 }
  0x6e   : > { %1097 = vmatpush.bf16.msrb.mxu0 %v2047_v2  ;;  %850 = vmatmul.bf16.vlgmr.msra.gmra.mxu1 %v747_v9  ;;  %v2007_v2 = vor.u32 %v2329_v54, %v2006_v53  ;;  %v2095_v9 = vor.u32 %v2345_v0, %v2092_v1  ;;  %v2203_v53 = vor.u32 %v2368_v50, %v2200_v51  ;;  %v2190_v54 = vld [vmem:[%s3322_s1 + $0x440] sm:$0xf] }
  0x6f   : > { %1110 = vmatpush.bf16.msrb.mxu1 %v2051_v3  ;;  %1241 = vmatpush.bf16.msrb.mxu2 %v2131_v4  ;;  %v2071_v3 = vor.u32 %v2340_v59, %v2070_v58  ;;  %v2011_v4 = vor.u32 %v2328_v57, %v2008_v61  ;;  %v2192_v57 = vld [vmem:[%s3322_s1 + $0x448] sm:$0xf0]  ;;  %v2365_v61 = vld [vmem:[%s3322_s1 + $0x434] sm:$0xf0]  ;;  %v2187_v1 = vor.u32 %v2364_v62, %v2184_v63 }
  0x70   : > { %1254 = vmatpush.bf16.msrb.mxu3 %v2135_v8  ;;  %975 = vmatmul.bf16.vlgmr.msra.gmra.mxu2 %v885_v13  ;;  %v2326_v8 = vld [vmem:[%s3322_s1 + $0x314] sm:$0xf] }
  0x71   : > { %988 = vmatmul.bf16.vlgmr.msra.gmra.mxu3 %v885_v13  ;;  %v2343_v13 = vld [vmem:[%s3322_s1 + $0x394] sm:$0xf]  ;;  %v1154_v33 = vshrl.u32 %v2071_v3, 16 }
  0x72   : > { %1098 = vmatpush.bf16.msrb.mxu0 %v2039_v16  ;;  %v1990_v16 = vld [vmem:[%s3322_s1 + $0x300] sm:$0xf]  ;;  %v2087_v23 = vor.u32 %v2343_v13, %v2084_v14  ;;  %v2154_v13 = vld [vmem:[%s2711_s30 + $0x4] sm:$0xe]  ;;  %v2357_v14 = vld [vmem:[%s2711_s30 + $0x4] sm:$0x10] }
  0x73   : > { %1111 = vmatpush.bf16.msrb.mxu1 %v2043_v17  ;;  %1242 = vmatpush.bf16.msrb.mxu2 %v2123_v18  ;;  %v1156_v17 = vshll.u32 %v2071_v3, 16  ;;  %v2003_v18 = vor.u32 %v2326_v8, %v2000_v10  ;;  %v2363_v3 = vld [vmem:[%s3322_s1 + $0x424] sm:$0xf0]  ;;  %v2166_v8 = vld [vmem:[%s3322_s1 + $0x410] sm:$0xf] }
  0x74   : > { %1255 = vmatpush.bf16.msrb.mxu3 %v2127_v22  ;;  %v1992_v22 = vld [vmem:[%s3322_s1 + $0x308] sm:$0xf0]  ;;  %v2360_v10 = vld [vmem:[%s3322_s1 + $0x414] sm:$0xf] }
  0x75   : > { %v1995_v35 = vor.u32 %v2324_v21, %v1992_v22 }
  0x76   : > { %1099 = vmatpush.bf16.msrb.mxu0 %v2031_v28  ;;  %v2214_v28 = vld [vmem:[%s3322_s1 + $0x470] sm:$0xf] }
  0x77   : > { %1112 = vmatpush.bf16.msrb.mxu1 %v2035_v29  ;;  %1243 = vmatpush.bf16.msrb.mxu2 %v2115_v30  ;;  %v2373_v29 = vld [vmem:[%s3322_s1 + $0x474] sm:$0xf0]  ;;  %v1991_v30 = vor.u32 %v2325_v20, %v1990_v16  ;;  %v2158_v16 = vld [vmem:[%s3322_s1 + $0x400] sm:$0xf]  ;;  %v2155_v20 = vor.u32 %v2357_v14, %v2154_v13 }
  0x78   : > { %1256 = vmatpush.bf16.msrb.mxu3 %v2119_v34  ;;  %v1158_v34 = vrot.slane %v1156_v17, 1  ;;  %v2215_v38 = vor.u32 %v2373_v29, %v2214_v28  ;;  %v2359_v17 = vld [vmem:[%s3322_s1 + $0x404] sm:$0xf0] }
  0x79   : > { %v2159_v21 = vor.u32 %v2359_v17, %v2158_v16 }
  0x7a   : > { %1100 = vmatpush.bf16.msrb.mxu0 %v2023_v40  ;;  %v2206_v40 = vld [vmem:[%s3322_s1 + $0x460] sm:$0xf]  ;;  %v1159_v43 = vor.u32 %v1158_v34, %v1154_v33 }
  0x7b   : > { %1113 = vmatpush.bf16.msrb.mxu1 %v2027_v41  ;;  %1244 = vmatpush.bf16.msrb.mxu2 %v2107_v42  ;;  %v2371_v41 = vld [vmem:[%s3322_s1 + $0x464] sm:$0xf0]  ;;  %v999_v42 = vld [vmem:[%s2711_s30 + $0x4] sm:$0xf] }
  0x7c   : > { %1257 = vmatpush.bf16.msrb.mxu3 %v2111_v46  ;;  %v2207_v46 = vor.u32 %v2371_v41, %v2206_v40 }
  0x7e   : > { %1101 = vmatpush.bf16.msrb.mxu0 %v2015_v52  ;;  %v2199_v52 = vor.u32 %v2369_v49, %v2198_v48 }
  0x7f   : > { %1114 = vmatpush.bf16.msrb.mxu1 %v2019_v55  ;;  %1245 = vmatpush.bf16.msrb.mxu2 %v2099_v56  ;;  %v2367_v55 = vld [vmem:[%s3322_s1 + $0x444] sm:$0xf0]  ;;  %v2366_v56 = vld [vmem:[%s3322_s1 + $0x444] sm:$0xf] }
  0x80   : > { %1258 = vmatpush.bf16.msrb.mxu3 %v2103_v60  ;;  %v2191_v58 = vor.u32 %v2367_v55, %v2190_v54  ;;  %v2195_v59 = vor.u32 %v2366_v56, %v2192_v57  ;;  %v2182_v60 = vld [vmem:[%s3322_s1 + $0x430] sm:$0xf] }
  0x81   : > { %v2183_v0 = vor.u32 %v2365_v61, %v2182_v60 }
  0x82   : > { %1102 = vmatpush.bf16.msrb.mxu0 %v2007_v2  ;;  %v2174_v2 = vld [vmem:[%s3322_s1 + $0x420] sm:$0xf] }
  0x83   : > { %1115 = vmatpush.bf16.msrb.mxu1 %v2011_v4  ;;  %1246 = vmatpush.bf16.msrb.mxu2 %v2091_v5  ;;  %v2362_v4 = vld [vmem:[%s3322_s1 + $0x424] sm:$0xf]  ;;  %v2176_v5 = vld [vmem:[%s3322_s1 + $0x428] sm:$0xf0]  ;;  %v2175_v6 = vor.u32 %v2363_v3, %v2174_v2  ;;  %v1413_v2 = vld [vmem:[%s3323_s2] sm:$0x3] }
  0x84   : > { %1259 = vmatpush.bf16.msrb.mxu3 %v2095_v9  ;;  %v2179_v7 = vor.u32 %v2362_v4, %v2176_v5  ;;  %v2361_v9 = vld [vmem:[%s3322_s1 + $0x414] sm:$0xf0] }
  0x85   : > { %v2167_v12 = vor.u32 %v2361_v9, %v2166_v8  ;;  %v1416_v9 = vperm.slane %v1413_v2, 1 }
  0x86   : > { %1103 = vmatpush.bf16.msrb.mxu0 %v1999_v15  ;;  %v2171_v15 = vor.u32 %v2360_v10, %v2168_v11 }
  0x87   : > { %1116 = vmatpush.bf16.msrb.mxu1 %v2003_v18  ;;  %1247 = vmatpush.bf16.msrb.mxu2 %v2083_v19  ;;  %v2358_v18 = vld [vmem:[%s3322_s1 + $0x404] sm:$0xf]  ;;  %v2160_v19 = vld [vmem:[%s3322_s1 + $0x408] sm:$0xf0] }
  0x88   : > { %1260 = vmatpush.bf16.msrb.mxu3 %v2087_v23  ;;  %v2163_v22 = vor.u32 %v2358_v18, %v2160_v19  ;;  %v1297_v23 = vrot.slane %v2155_v20, 1 }
  0x8a   : > { %1104 = vmatpush.bf16.msrb.mxu0 %v1991_v30 }
  0x8b   : > { %1117 = vmatpush.bf16.msrb.mxu1 %v1995_v35  ;;  %1248 = vmatpush.bf16.msrb.mxu2 %v2075_v36 }
  0x8c   : > { %1261 = vmatpush.bf16.msrb.mxu3 %v2079_v37 }
  0x8d   : > { %1105 = vmatmul.bf16.vlgmr.msrb.gmra.mxu0 %v999_v42 }
  0x8e   : > { %1379 = vmatpush.bf16.msra.mxu0 %v2215_v38  ;;  %1118 = vmatmul.bf16.vlgmr.msrb.gmra.mxu1 %v999_v42 }
  0x8f   : > { %1392 = vmatpush.bf16.msra.mxu1 %v2219_v39  ;;  %1249 = vmatmul.bf16.vlgmr.msrb.gmra.mxu2 %v1159_v43 }
  0x90   : > { %1262 = vmatmul.bf16.vlgmr.msrb.gmra.mxu3 %v1159_v43 }
  0x92   : > { %1380 = vmatpush.bf16.msra.mxu0 %v2207_v46 }
  0x93   : > { %1393 = vmatpush.bf16.msra.mxu1 %v2211_v47 }
  0x96   : > { %1381 = vmatpush.bf16.msra.mxu0 %v2199_v52 }
  0x97   : > { %1394 = vmatpush.bf16.msra.mxu1 %v2203_v53 }
  0x9a   : > { %1382 = vmatpush.bf16.msra.mxu0 %v2191_v58 }
  0x9b   : > { %1395 = vmatpush.bf16.msra.mxu1 %v2195_v59 }
  0x9e   : > { %1383 = vmatpush.bf16.msra.mxu0 %v2183_v0 }
  0x9f   : > { %1396 = vmatpush.bf16.msra.mxu1 %v2187_v1 }
  0xa2   : > { %1384 = vmatpush.bf16.msra.mxu0 %v2175_v6  ;;  %v1415_v6 = vperm.slane %v1413_v2, 0 }
  0xa3   : > { %1397 = vmatpush.bf16.msra.mxu1 %v2179_v7 }
  0xa6   : > { %1385 = vmatpush.bf16.msra.mxu0 %v2167_v12 }
  0xa7   : > { %1398 = vmatpush.bf16.msra.mxu1 %v2171_v15 }
  0xaa   : > { %1386 = vmatpush.bf16.msra.mxu0 %v2159_v21  ;;  %v277_v24 = vpop.f32.mrf.mxu0 }
  0xab   : > { %1399 = vmatpush.bf16.msra.mxu1 %v2163_v22  ;;  %v290_v25 = vpop.f32.mrf.mxu1 }
  0xad   : > { %1387 = vmatmul.bf16.vlgmr.msra.gmra.mxu0 %v1297_v23 }
  0xae   : > { %1400 = vmatmul.bf16.vlgmr.msra.gmra.mxu1 %v1297_v23 }
  0xb2   : > { %v279_v26 = vpop.f32.mrf.mxu0 }
  0xb3   : > { %v292_v27 = vpop.f32.mrf.mxu1 }
  0xb8   : > { %v417_v28 = vpop.f32.mrf.mxu2  ;;  %v430_v29 = vpop.f32.mrf.mxu3 }
  0xb9   : > { %v436_v30 = vadd.f32 %v417_v28, %v277_v24  ;;  %v437_v31 = vadd.f32 %v430_v29, %v290_v25 }
  0xc0   : > { %v419_v32 = vpop.f32.mrf.mxu2  ;;  %v432_v33 = vpop.f32.mrf.mxu3 }
  0xca   : > { %v555_v34 = vpop.f32.mrf.mxu0 }
  0xcb   : > { %v574_v35 = vadd.f32 %v555_v34, %v436_v30  ;;  %v568_v36 = vpop.f32.mrf.mxu1 }
  0xcc   : > { %v575_v37 = vadd.f32 %v568_v36, %v437_v31 }
  0xd2   : > { %v557_v41 = vpop.f32.mrf.mxu0 }
  0xd3   : > { %v693_v38 = vpop.f32.mrf.mxu2  ;;  %v570_v43 = vpop.f32.mrf.mxu1 }
  0xd4   : > { %v712_v39 = vadd.f32 %v693_v38, %v574_v35  ;;  %v706_v40 = vpop.f32.mrf.mxu3 }
  0xd5   : > { %v713_v42 = vadd.f32 %v706_v40, %v575_v37 }
  0xdb   : > { %v695_v44 = vpop.f32.mrf.mxu2 }
  0xdc   : > { %v708_v45 = vpop.f32.mrf.mxu3 }
  0xea   : > { %v838_v46 = vpop.f32.mrf.mxu0 }
  0xeb   : > { %v851_v47 = vpop.f32.mrf.mxu1  ;;  %v857_v62 = vadd.f32 %v838_v46, %v712_v39 }
  0xec   : > { %v858_v63 = vadd.f32 %v851_v47, %v713_v42 }
  0xf2   : > { %v840_v50 = vpop.f32.mrf.mxu0 }
  0xf3   : > { %v976_v48 = vpop.f32.mrf.mxu2  ;;  %v853_v51 = vpop.f32.mrf.mxu1 }
  0xf4   : > { %v989_v49 = vpop.f32.mrf.mxu3  ;;  %v995_v0 = vadd.f32 %v976_v48, %v857_v62 }
  0xf5   : > { %v996_v1 = vadd.f32 %v989_v49, %v858_v63 }
  0xfb   : > { %v978_v52 = vpop.f32.mrf.mxu2 }
  0xfc   : > { %v991_v53 = vpop.f32.mrf.mxu3 }
 0x10a   : > { %v1106_v54 = vpop.f32.mrf.mxu0 }
 0x10b   : > { %v1119_v55 = vpop.f32.mrf.mxu1  ;;  %v1125_v3 = vadd.f32 %v1106_v54, %v995_v0 }
 0x10c   : > { %v1126_v4 = vadd.f32 %v1119_v55, %v996_v1 }
 0x112   : > { %v1250_v56 = vpop.f32.mrf.mxu2  ;;  %v1108_v58 = vpop.f32.mrf.mxu0 }
 0x113   : > { %v1263_v57 = vpop.f32.mrf.mxu3  ;;  %v1121_v59 = vpop.f32.mrf.mxu1  ;;  %v1269_v5 = vadd.f32 %v1250_v56, %v1125_v3 }
 0x114   : > { %v1270_v7 = vadd.f32 %v1263_v57, %v1126_v4 }
 0x11a   : > { %v1252_v60 = vpop.f32.mrf.mxu2 }
 0x11b   : > { %v1265_v61 = vpop.f32.mrf.mxu3 }
 0x12a   : > { %v1388_v8 = vpop.f32.mrf.mxu0 }
 0x12b   : > { %v1407_v10 = vadd.f32 %v1388_v8, %v1269_v5  ;;  %v1401_v11 = vpop.f32.mrf.mxu1 }
 0x12c   : > { %v1408_v12 = vadd.f32 %v1401_v11, %v1270_v7 }
 0x12d   : > { %v1419_v13 = vadd.f32 %v1415_v6, %v1407_v10 }
 0x12e   : > { %v1420_v14 = vadd.f32 %v1416_v9, %v1408_v12 }
 0x12f   : > { %v1421_v15 = vmax.f32 %v1419_v13, 0.0 }
 0x130   : > { %v1422_v16 = vmax.f32 %v1420_v14, 0.0 }
 0x132   : > { %v1423_v17 = vpack.c.bf16 %v1422_v16, %v1421_v15  ;;  %v1390_v18 = vpop.f32.mrf.mxu0 }
 0x133   : > { %v1403_v19 = vpop.f32.mrf.mxu1 }
 0x134   : > { %1424 = vst [vmem:[%s170_s14] sm:$0xff] %v1423_v17 }
 0x135 PF: > { %s13_s12 = sadd.s32 1, %s2389_s12  }
 0x136   : > { %p10_p4 = scmp.ge.s32.totalorder %s13_s12, 4  }
 0x138   :  { %12 = sbr.rel (!%p10_p4) target bundleno = 1 (0x1), region = 70 }

// kernel: vae_forward.15
= control target key start
LH: loop header
LB: loop body
LE: loop exit
PB: predicated region body
PF: predicated region fallthrough
CT: control target
= control target key end

     0   :  { %s2350_s12 = smov 0   ;;  %s2739_s0 = inlined_call_operand.vmem [shape: bf16[2,104,32], index: 0, kind: input, shape index: {}]   ;;  %s2740_s1 = inlined_call_operand.vmem [shape: bf16[9,32,12], index: 1, kind: input, shape index: {}]   ;;  %s2741_s2 = inlined_call_operand.vmem [shape: f32[1,12], index: 2, kind: input, shape index: {}]   ;;  %s2742_s3 = inlined_call_operand.vmem [shape: f32[2,80,12], index: 3, kind: output, shape index: {}]  }
   0x1 LB: > { %s1854_s13 = sadd.s32 4294967295, %s2328_s12   ;;  %p1858_p0 = scmp.ge.s32.totalorder %s2328_s12, 1  ;;  %s2328_s12 = sphi %s2350_s12, %s13_s12  }
   0x2   : > { %p137_p1 = scmp.lt.s32.totalorder %s2328_s12, 3 }
   0x4   : > { %p138_p2 = pnand %p1858_p0, %p137_p1 }
   0x5   : > { %p161_p3 = scmp.lt.s32.totalorder (!%p138_p2), %s1854_s13, 1 }
   0x6   : > { %141 = sbr.rel (%p138_p2) target bundleno = 397 (0x18d), region = 32 }
   0xb   : > { %v2208_v0 = vld [vmem:[%s2740_s1 + $0x8] sm:$0xff]  ;;  %v2207_v1 = vld [vmem:[%s2740_s1] sm:$0xff]  ;;  %s2744_s13 = smov (!%p161_p3, %s1854_s13), 1  ;;  %v2215_v3 = vld [vmem:[%s2740_s1 + $0x18] sm:$0xff]  ;;  %vm223_vm0 = vcmask 261120   ;;  %vm508_vm2 = vcmask 1046528  }
   0xc   : > { %2265 = vmatpush.bf16.msra.mxu1 %v2208_v0  ;;  %2266 = vmatpush.bf16.msra.mxu2 %v2208_v0  ;;  %v2222_v2 = vld [vmem:[%s2740_s1 + $0x28] sm:$0xff]  ;;  %s2271_s20 = smul.u32 52, %s2744_s13  ;;  %v2221_v4 = vld [vmem:[%s2740_s1 + $0x20] sm:$0xff]  ;;  %v2229_v5 = vld [vmem:[%s2740_s1 + $0x38] sm:$0xff]  ;;  %vm328_vm1 = vsmask.f32 7424 }
   0xd   : > { %245 = vmatpush.bf16.msra.mxu0 %v2208_v0  ;;  %2267 = vmatpush.bf16.msra.mxu3 %v2208_v0  ;;  %v2214_v9 = vld [vmem:[%s2740_s1 + $0x10] sm:$0xff]  ;;  %v2243_v12 = vld [vmem:[%s2740_s1 + $0x58] sm:$0xff]  ;;  %v2250_v16 = vld [vmem:[%s2740_s1 + $0x68] sm:$0xff]  ;;  %vm801_vm3 = vsmask.f32 6400  ;;  %vm990_vm4 = vcmask 1045504  }
   0xe   : > { %s2376_s25 = scalar_lea.vmem %s2739_s0, %s2271_s20  ;;  %v2228_v15 = vld [vmem:[%s2740_s1 + $0x30] sm:$0xff]  ;;  %v2236_v19 = vld [vmem:[%s2740_s1 + $0x48] sm:$0xff]  ;;  %v2257_v20 = vld [vmem:[%s2740_s1 + $0x78] sm:$0xff]  ;;  %vm1283_vm5 = vsmask.f32 5376  ;;  %vm1472_vm6 = vcmask 1044480  }
   0xf   : > { %v2203_v6 = vld [vmem:[%s2376_s25 + $0x8] sm:$0xff]  ;;  %v2204_v7 = vld [vmem:[%s2376_s25 + $0x10] sm:$0xff]  ;;  %v2202_v8 = vld [vmem:[%s2376_s25] sm:$0xff]  ;;  %vm273_vm7 = vcmask 97280   ;;  %s2272_s4 = smul.u32 80, %s2744_s13 }
  0x10   : > { %2268 = vmatpush.bf16.msra.mxu1 %v2207_v1  ;;  %2269 = vmatpush.bf16.msra.mxu2 %v2207_v1  ;;  %v2209_v10 = vld [vmem:[%s2376_s25] sm:$0xff]  ;;  %v2399_v13 = vld [vmem:[%s2376_s25 + $0x8] sm:$0xff]  ;;  %v2205_v39 = vld [vmem:[%s2376_s25 + $0x18] sm:$0xff] }
  0x11   : > { %246 = vmatpush.bf16.msra.mxu0 %v2207_v1  ;;  %2270 = vmatpush.bf16.msra.mxu3 %v2207_v1  ;;  %v2206_v11 = vld [vmem:[%s2376_s25 + $0x20] sm:$0xff]  ;;  %v332_v14 = vshll.u32 %v2209_v10, 16  ;;  %v2223_v18 = vld [vmem:[%s2376_s25 + $0x4] sm:$0xf0]  ;;  %v330_v21 = vshrl.u32 %v2209_v10, 16  ;;  %v337_v23 = vshll.u32 %v2399_v13, 16  ;;  %s2676_s6 = scalar_lea.vmem %s2742_s3, %s2272_s4 }
  0x12   : > { %v1974_v17 = vld [vmem:[%s2376_s25 + $0x4] sm:$0xe]  ;;  %v2224_v25 = vld [vmem:[%s2376_s25 + $0xc] sm:$0xff]  ;;  %v2230_v28 = vld [vmem:[%s2376_s25 + $0x4] sm:$0xf0]  ;;  %v341_v53 = vshrl.u32 %v2399_v13, 16 }
  0x13   : > { %1890 = vmatmul.msk.bf16.vlgmr.msra.gmra.mxu1 %vm223_vm0, %v2203_v6  ;;  %1891 = vmatmul.msk.bf16.vlgmr.msra.gmra.mxu2 %vm223_vm0, %v2204_v7  ;;  %v334_v22 = vrot.slane %v332_v14, 1  ;;  %v2235_v24 = vld [vmem:[%s2740_s1 + $0x40] sm:$0xff]  ;;  %v1975_v26 = vor.u32 %v2223_v18, %v1974_v17  ;;  %v339_v30 = vrot.slane %v337_v23, 1  ;;  %v2231_v31 = vld [vmem:[%s2376_s25 + $0xc] sm:$0xff]  ;;  %v656_v34 = vrot.slane %v2224_v25, 1  ;;  %v2225_v57 = vld [vmem:[%s2376_s25 + $0x14] sm:$0xff] }
  0x14   : > { %553 = vmatpush.bf16.msrb.mxu2 %v2222_v2  ;;  %406 = vmatpush.bf16.msrb.mxu1 %v2215_v3  ;;  %v2011_v27 = vld [vmem:[%s2376_s25 + $0x4] sm:$0xe]  ;;  %v811_v37 = vshrl.u32 %v2231_v31, 16  ;;  %v814_v38 = vshll.u32 %v2231_v31, 16  ;;  %v2264_v48 = vld [vmem:[%s2740_s1 + $0x88] sm:$0xff]  ;;  %v2211_v49 = vld [vmem:[%s2376_s25 + $0x10] sm:$0xff] }
  0x15   : > { %1889 = vmatmul.msk.bf16.vlgmr.msra.gmra.mxu0 %vm223_vm0, %v2202_v8  ;;  %699 = vmatpush.bf16.msrb.mxu3 %v2229_v5  ;;  %v335_v29 = vor.u32 %v334_v22, %v330_v21  ;;  %v2012_v32 = vor.u32 %v2230_v28, %v2011_v27  ;;  %v655_v33 = vrot.slane %v1975_v26, 1  ;;  %v1937_v50 = vld [vmem:[%s2376_s25] sm:$0xe]  ;;  %v2216_v51 = vld [vmem:[%s2376_s25] sm:$0xf0]  ;;  %v345_v54 = vshll.u32 %v2211_v49, 16 }
  0x16   : > { %1893 = vmatmul.msk.bf16.vlgmr.msra.gmra.mxu3 %vm223_vm0, %v2206_v11  ;;  %888 = vmatpush.bf16.msrb.mxu0 %v2236_v19  ;;  %v813_v43 = vrot.slane %v811_v37, 1  ;;  %v816_v44 = vrot.slane %v814_v38, 2  ;;  %v2217_v55 = vld [vmem:[%s2376_s25 + $0x8] sm:$0xff]  ;;  %v1938_v56 = vor.u32 %v2216_v51, %v1937_v50  ;;  %v343_v58 = vor.u32 %v341_v53, %v339_v30  ;;  %v2232_v62 = vld [vmem:[%s2376_s25 + $0x14] sm:$0xff]  ;;  %v2233_v19 = vld [vmem:[%s2376_s25 + $0x1c] sm:$0xff] }
  0x17   : > { %v803_v35 = vshrl.u32 %v2012_v32, 16  ;;  %v806_v36 = vshll.u32 %v2012_v32, 16  ;;  %v340_v40 = vsel %vm328_vm1, %v335_v29, %v339_v30  ;;  %v657_v45 = vsel %vm508_vm2, %v655_v33, %v656_v34  ;;  %v2242_v8 = vld [vmem:[%s2740_s1 + $0x50] sm:$0xff]  ;;  %v2212_v10 = vld [vmem:[%s2376_s25 + $0x18] sm:$0xff]  ;;  %v2213_v30 = vld [vmem:[%s2376_s25 + $0x20] sm:$0xff] }
  0x18   : > { %554 = vmatpush.bf16.msrb.mxu2 %v2221_v4  ;;  %407 = vmatpush.bf16.msrb.mxu1 %v2214_v9  ;;  %v817_v47 = vor.u32 %v816_v44, %v813_v43  ;;  %v347_v59 = vrot.slane %v345_v54, 1  ;;  %v509_v60 = vrot.slane %v1938_v56, 1  ;;  %v510_v61 = vrot.slane %v2217_v55, 1  ;;  %v2249_v9 = vld [vmem:[%s2740_s1 + $0x60] sm:$0xff]  ;;  %v2218_v14 = vld [vmem:[%s2376_s25 + $0x10] sm:$0xff] }
  0x19   : > { %700 = vmatpush.bf16.msrb.mxu3 %v2228_v15  ;;  %v805_v41 = vrot.slane %v803_v35, 1  ;;  %v808_v42 = vrot.slane %v806_v36, 2  ;;  %v658_v63 = vrot.slane %v2225_v57, 1  ;;  %v820_v0 = vshrl.u32 %v2232_v62, 16  ;;  %v2226_v15 = vld [vmem:[%s2376_s25 + $0x1c] sm:$0xff]  ;;  %v2256_v29 = vld [vmem:[%s2740_s1 + $0x70] sm:$0xff] }
  0x1a   : > { %889 = vmatpush.bf16.msrb.mxu0 %v2235_v24  ;;  %v823_v1 = vshll.u32 %v2232_v62, 16  ;;  %v348_v2 = vsel %vm328_vm1, %v343_v58, %v347_v59  ;;  %v511_v3 = vsel %vm508_vm2, %v509_v60, %v510_v61  ;;  %v353_v13 = vshll.u32 %v2212_v10, 16  ;;  %v2227_v35 = vld [vmem:[%s2376_s25 + $0x24] sm:$0xff]  ;;  %v621_v50 = vld [vmem:[%s2376_s25 + $0x2c] sm:$0x1] }
  0x1b   : > { %v809_v46 = vor.u32 %v808_v42, %v805_v41  ;;  %v822_v4 = vrot.slane %v820_v0, 1  ;;  %v659_v6 = vsel %vm508_vm2, %v656_v34, %v658_v63  ;;  %v512_v18 = vrot.slane %v2218_v14, 1  ;;  %v2219_v34 = vld [vmem:[%s2376_s25 + $0x18] sm:$0xff]  ;;  %v2220_v58 = vld [vmem:[%s2376_s25 + $0x20] sm:$0xff]  ;;  %v2252_v14 = vld [vmem:[%s2376_s25 + $0x10] sm:$0xff] }
  0x1c   : > { %1035 = vmatpush.bf16.msra.mxu1 %v2243_v12  ;;  %1181 = vmatpush.bf16.msra.mxu2 %v2250_v16  ;;  %v825_v5 = vrot.slane %v823_v1, 2  ;;  %v349_v12 = vshrl.u32 %v2211_v49, 16  ;;  %v355_v17 = vrot.slane %v353_v13, 1  ;;  %v829_v21 = vshrl.u32 %v2233_v19, 16 }
  0x1d   : > { %1370 = vmatpush.bf16.msra.mxu3 %v2257_v20  ;;  %v818_v52 = vsel %vm801_vm3, %v809_v46, %v817_v47  ;;  %v660_v20 = vrot.slane %v2226_v15, 1  ;;  %v832_v22 = vshll.u32 %v2233_v19, 16  ;;  %v513_v24 = vsel %vm508_vm2, %v510_v61, %v512_v18  ;;  %v2237_v19 = vld [vmem:[%s2376_s25 + $0x4] sm:$0xf0] }
  0x1e   : > { %1517 = vmatpush.bf16.msra.mxu0 %v2264_v48  ;;  %v826_v7 = vor.u32 %v825_v5, %v822_v4  ;;  %v351_v16 = vor.u32 %v349_v12, %v347_v59  ;;  %v831_v25 = vrot.slane %v829_v21, 1  ;;  %v357_v32 = vshrl.u32 %v2212_v10, 16  ;;  %v767_v59 = vld [vmem:[%s2376_s25 + $0x2c] sm:$0x3]  ;;  %v2122_v5 = vld [vmem:[%s2376_s25 + $0x8] sm:$0xc] }
  0x1f   : > { %v834_v26 = vrot.slane %v832_v22, 2  ;;  %v661_v27 = vsel %vm508_vm2, %v658_v63, %v660_v20  ;;  %v361_v33 = vshll.u32 %v2213_v30, 16  ;;  %v514_v38 = vrot.slane %v2219_v34, 1 }
  0x20   : > { %v827_v11 = vsel %vm801_vm3, %v817_v47, %v826_v7  ;;  %1036 = vmatpush.bf16.msra.mxu1 %v2242_v8  ;;  %1182 = vmatpush.bf16.msra.mxu2 %v2249_v9  ;;  %v356_v23 = vsel %vm328_vm1, %v351_v16, %v355_v17  ;;  %v359_v36 = vor.u32 %v357_v32, %v355_v17  ;;  %v662_v41 = vrot.slane %v2227_v35, 1 }
  0x21   : > { %v835_v28 = vor.u32 %v834_v26, %v831_v25  ;;  %1371 = vmatpush.bf16.msra.mxu3 %v2256_v29  ;;  %v363_v37 = vrot.slane %v361_v33, 1  ;;  %v648_v55 = vunpack.c.l.b16 %v621_v50  ;;  %v365_v56 = vshrl.u32 %v2213_v30, 16  ;;  %v2238_v25 = vld [vmem:[%s2376_s25 + $0xc] sm:$0xff] }
  0x22   : > { %v663_v49 = vsel %vm508_vm2, %v660_v20, %v662_v41  ;;  %v794_v61 = vunpack.c.l.b16 %v767_v59  ;;  %v516_v0 = vrot.slane %v2220_v58, 1  ;;  %v1293_v22 = vshrl.u32 %v2252_v14, 16 }
  0x23   : > { %1892 = vmatmul.msk.bf16.gmra.mxu2 %vm223_vm0, %v2205_v39  ;;  %1926 = vmatmul.msk.bf16.vlgmr.msrb.gmra.mxu1 %vm223_vm0, %v340_v40  ;;  %v836_v31 = vsel %vm801_vm3, %v826_v7, %v835_v28  ;;  %v2234_v39 = vld [vmem:[%s2376_s25 + $0x24] sm:$0xff]  ;;  %v364_v44 = vsel %vm328_vm1, %v359_v36, %v363_v37  ;;  %v654_v60 = vpack.c.b16 %v648_v55, %v648_v55  ;;  %v992_v33 = vrot.slane %v2238_v25, 2 }
  0x24   : > { %v294_v40 = vld [vmem:[%s2376_s25 + $0x28] sm:$0x1]  ;;  %v838_v42 = vshrl.u32 %v2234_v39, 16  ;;  %v841_v43 = vshll.u32 %v2234_v39, 16  ;;  %v367_v62 = vor.u32 %v365_v56, %v363_v37  ;;  %v800_v1 = vpack.c.b16 %v794_v61, %v794_v61  ;;  %v2159_v36 = vld [vmem:[%s2376_s25 + $0x8] sm:$0x8] }
  0x25   : > { %2037 = vmatmul.msk.bf16.vlgmr.msrb.gmra.mxu0 %vm223_vm0, %v818_v52  ;;  %v321_v46 = vunpack.c.l.b16 %v294_v40  ;;  %v2263_v52 = vld [vmem:[%s2740_s1 + $0x80] sm:$0xff]  ;;  %v517_v8 = vsel %vm508_vm2, %v514_v38, %v516_v0  ;;  %v1295_v29 = vrot.slane %v1293_v22, 2  ;;  %v2258_v37 = vld [vmem:[%s2376_s25 + $0x8] sm:$0xf0]  ;;  %v2259_v40 = vld [vmem:[%s2376_s25 + $0x10] sm:$0xff] }
  0x26   : > { %2000 = vmatmul.msk.bf16.vlgmr.msrb.gmra.mxu3 %vm223_vm0, %v657_v45  ;;  %v515_v45 = vsel %vm508_vm2, %v512_v18, %v514_v38  ;;  %v840_v47 = vrot.slane %v838_v42, 1  ;;  %v843_v48 = vrot.slane %v841_v43, 2  ;;  %1518 = vmatpush.bf16.msra.mxu0 %v2263_v52  ;;  %v850_v4 = vshll.u32 %v800_v1, 16  ;;  %v2048_v18 = vld [vmem:[%s2376_s25 + $0x4] sm:$0xc]  ;;  %v2253_v43 = vld [vmem:[%s2376_s25 + $0x18] sm:$0xff] }
  0x27   : > { %v327_v53 = vpack.c.b16 %v321_v46, %v321_v46  ;;  %v2049_v26 = vor.u32 %v2237_v19, %v2048_v18  ;;  %v2085_v46 = vld [vmem:[%s2376_s25 + $0x8] sm:$0xc]  ;;  %v1305_v50 = vshll.u32 %v2253_v43, 16  ;;  %v2245_v52 = vld [vmem:[%s2376_s25 + $0x10] sm:$0xff] }
  0x28   : > { %v844_v51 = vor.u32 %v843_v48, %v840_v47  ;;  %v852_v10 = vrot.slane %v850_v4, 2  ;;  %v2244_v47 = vld [vmem:[%s2376_s25 + $0x8] sm:$0xf0]  ;;  %v1138_v58 = vrot.slane %v2245_v52, 2  ;;  %v2241_v25 = vld [vmem:[%s2376_s25 + $0x24] sm:$0xff] }
  0x29   : > { %v369_v57 = vshll.u32 %v327_v53, 16  ;;  %v991_v32 = vrot.slane %v2049_v26, 2  ;;  %v2086_v53 = vor.u32 %v2244_v47, %v2085_v46  ;;  %v1307_v55 = vrot.slane %v1305_v50, 3  ;;  %v2255_v18 = vld [vmem:[%s2376_s25 + $0x28] sm:$0xff]  ;;  %v2247_v26 = vld [vmem:[%s2376_s25 + $0x20] sm:$0xff] }
  0x2a   : > { %v845_v54 = vsel %vm801_vm3, %v835_v28, %v844_v51  ;;  %v1320_v22 = vshrl.u32 %v2255_v18, 16 }
  0x2b   : > { %v371_v63 = vrot.slane %v369_v57, 1  ;;  %v993_v39 = vsel %vm990_vm4, %v991_v32, %v992_v33  ;;  %v1137_v57 = vrot.slane %v2086_v53, 2  ;;  %v998_v32 = vrot.slane %v2241_v25, 2 }
  0x2d   : > { %v372_v7 = vsel %vm328_vm1, %v367_v62, %v371_v63  ;;  %v1139_v61 = vsel %vm990_vm4, %v1137_v57, %v1138_v58  ;;  %v2260_v62 = vld [vmem:[%s2376_s25 + $0x18] sm:$0xff]  ;;  %v2248_v57 = vld [vmem:[%s2376_s25 + $0x28] sm:$0xff] }
  0x33   : > { %1927 = vmatmul.msk.bf16.gmra.mxu1 %vm223_vm0, %v348_v2  ;;  %1963 = vmatmul.msk.bf16.vlgmr.msrb.gmra.mxu2 %vm223_vm0, %v511_v3  ;;  %v664_v2 = vrot.slane %v654_v60, 1  ;;  %v847_v3 = vshrl.u32 %v800_v1, 16  ;;  %v1476_v1 = vrot.slane %v2260_v62, 3 }
  0x35   : > { %2038 = vmatmul.msk.bf16.gmra.mxu0 %vm223_vm0, %v827_v11  ;;  %v849_v9 = vrot.slane %v847_v3, 1  ;;  %v474_v11 = vld [vmem:[%s2376_s25 + $0x28] sm:$0x1]  ;;  %v665_v12 = vsel %vm508_vm2, %v662_v41, %v664_v2  ;;  %v2160_v41 = vor.u32 %v2258_v37, %v2159_v36 }
  0x36   : > { %2001 = vmatmul.msk.bf16.gmra.mxu3 %vm223_vm0, %v659_v6  ;;  %v2251_v6 = vld [vmem:[%s2376_s25 + $0x8] sm:$0xf0]  ;;  %v501_v16 = vunpack.c.l.b16 %v474_v11 }
  0x37   : > { %v853_v13 = vor.u32 %v852_v10, %v849_v9  ;;  %v2123_v15 = vor.u32 %v2251_v6, %v2122_v5  ;;  %v2240_v5 = vld [vmem:[%s2376_s25 + $0x1c] sm:$0xff] }
  0x38   : > { %v2246_v6 = vld [vmem:[%s2376_s25 + $0x18] sm:$0xff]  ;;  %v996_v9 = vrot.slane %v2240_v5, 2 }
  0x39   : > { %v854_v17 = vsel %vm801_vm3, %v844_v51, %v853_v13  ;;  %v1285_v20 = vshrl.u32 %v2123_v15, 16  ;;  %v1288_v21 = vshll.u32 %v2123_v15, 16  ;;  %v2239_v51 = vld [vmem:[%s2376_s25 + $0x14] sm:$0xff]  ;;  %v1140_v10 = vrot.slane %v2246_v6, 2  ;;  %v2261_v15 = vld [vmem:[%s2376_s25 + $0x20] sm:$0xff] }
  0x3a   : > { %v994_v56 = vrot.slane %v2239_v51, 2  ;;  %v1478_v19 = vrot.slane %v2261_v15, 3 }
  0x3b   : > { %v1290_v28 = vrot.slane %v1288_v21, 3 }
  0x3c   : > { %v995_v60 = vsel %vm990_vm4, %v992_v33, %v994_v56  ;;  %v997_v13 = vsel %vm990_vm4, %v994_v56, %v996_v9  ;;  %v1142_v33 = vrot.slane %v2247_v26, 2 }
  0x43   : > { %1928 = vmatmul.msk.bf16.gmra.mxu1 %vm223_vm0, %v356_v23  ;;  %1964 = vmatmul.msk.bf16.gmra.mxu2 %vm223_vm0, %v513_v24  ;;  %v1296_v23 = vshll.u32 %v2252_v14, 16  ;;  %v507_v24 = vpack.c.b16 %v501_v16, %v501_v16  ;;  %v1141_v14 = vsel %vm990_vm4, %v1138_v58, %v1140_v10 }
  0x45   : > { %2039 = vmatmul.msk.bf16.gmra.mxu0 %vm223_vm0, %v836_v31  ;;  %v1298_v30 = vrot.slane %v1296_v23, 3  ;;  %v518_v31 = vrot.slane %v507_v24, 1  ;;  %v1323_v23 = vshll.u32 %v2255_v18, 16 }
  0x46   : > { %2002 = vmatmul.msk.bf16.gmra.mxu3 %vm223_vm0, %v661_v27  ;;  %v1287_v27 = vrot.slane %v1285_v20, 2  ;;  %v1479_v20 = vsel %vm1472_vm6, %v1476_v1, %v1478_v19 }
  0x47   : > { %v1299_v35 = vor.u32 %v1298_v30, %v1295_v29  ;;  %v519_v38 = vsel %vm508_vm2, %v516_v0, %v518_v31  ;;  %v2254_v0 = vld [vmem:[%s2376_s25 + $0x20] sm:$0xff]  ;;  %v1322_v29 = vrot.slane %v1320_v22, 2  ;;  %v1325_v30 = vrot.slane %v1323_v23, 3  ;;  %v1249_v31 = vld [vmem:[%s2376_s25 + $0x30] sm:$0x7] }
  0x48   : > { %v1291_v34 = vor.u32 %v1290_v28, %v1287_v27  ;;  %v1311_v3 = vshrl.u32 %v2254_v0, 16  ;;  %v1314_v4 = vshll.u32 %v2254_v0, 16  ;;  %v1276_v37 = vunpack.c.l.b16 %v1249_v31 }
  0x49   : > { %v1326_v36 = vor.u32 %v1325_v30, %v1322_v29 }
  0x4a   : > { %v1300_v42 = vsel %vm1283_vm5, %v1291_v34, %v1299_v35  ;;  %v1282_v46 = vpack.c.b16 %v1276_v37, %v1276_v37 }
  0x4c   : > { %v1329_v53 = vshrl.u32 %v1282_v46, 16 }
  0x53   : > { %1929 = vmatmul.msk.bf16.gmra.mxu1 %vm223_vm0, %v364_v44  ;;  %1965 = vmatmul.msk.bf16.gmra.mxu2 %vm223_vm0, %v515_v45  ;;  %v1474_v44 = vrot.slane %v2259_v40, 3  ;;  %v1473_v45 = vrot.slane %v2160_v41, 3  ;;  %v1143_v40 = vsel %vm990_vm4, %v1140_v10, %v1142_v33 }
  0x55   : > { %2040 = vmatmul.msk.bf16.gmra.mxu0 %vm223_vm0, %v845_v54  ;;  %v1475_v48 = vsel %vm1472_vm6, %v1473_v45, %v1474_v44  ;;  %v1477_v2 = vsel %vm1472_vm6, %v1474_v44, %v1476_v1  ;;  %v2262_v44 = vld [vmem:[%s2376_s25 + $0x28] sm:$0xff] }
  0x56   : > { %2003 = vmatmul.msk.bf16.gmra.mxu3 %vm223_vm0, %v663_v49  ;;  %v1302_v49 = vshrl.u32 %v2253_v43, 16  ;;  %v956_v43 = vld [vmem:[%s2376_s25 + $0x2c] sm:$0x3]  ;;  %v1480_v47 = vrot.slane %v2262_v44, 3 }
  0x58   : > { %v1304_v54 = vrot.slane %v1302_v49, 2  ;;  %v1481_v50 = vsel %vm1472_vm6, %v1478_v19, %v1480_v47 }
  0x5a   : > { %v1308_v59 = vor.u32 %v1307_v55, %v1304_v54  ;;  %v1332_v54 = vshll.u32 %v1282_v46, 16 }
  0x5c   : > { %v1309_v63 = vsel %vm1283_vm5, %v1299_v35, %v1308_v59 }
  0x63   : > { %1930 = vmatmul.msk.bf16.gmra.mxu1 %vm223_vm0, %v372_v7  ;;  %1966 = vmatmul.msk.bf16.gmra.mxu2 %vm223_vm0, %v517_v8  ;;  %v1313_v7 = vrot.slane %v1311_v3, 2  ;;  %v1316_v8 = vrot.slane %v1314_v4, 3 }
  0x65   : > { %2041 = vmatmul.msk.bf16.gmra.mxu0 %vm223_vm0, %v854_v17  ;;  %v1317_v11 = vor.u32 %v1316_v8, %v1313_v7 }
  0x66   : > { %2004 = vmatmul.msk.bf16.gmra.mxu3 %vm223_vm0, %v665_v12 }
  0x67   : > { %v1318_v17 = vsel %vm1283_vm5, %v1308_v59, %v1317_v11  ;;  %v1327_v45 = vsel %vm1283_vm5, %v1317_v11, %v1326_v36  ;;  %v1103_v11 = vld [vmem:[%s2376_s25 + $0x30] sm:$0x3] }
  0x73   : > { %1967 = vmatmul.msk.bf16.gmra.mxu2 %vm223_vm0, %v519_v38  ;;  %2074 = vmatmul.msk.bf16.vlgmr.msra.gmra.mxu1 %vm223_vm0, %v993_v39  ;;  %v999_v39 = vsel %vm990_vm4, %v996_v9, %v998_v32 }
  0x75   : > { %2185 = vmatmul.msk.bf16.vlgmr.msra.gmra.mxu0 %vm223_vm0, %v1475_v48  ;;  %v983_v48 = vunpack.c.l.b16 %v956_v43 }
  0x76   : > { %2148 = vmatmul.msk.bf16.vlgmr.msra.gmra.mxu3 %vm223_vm0, %v1300_v42 }
  0x77   : > { %v989_v56 = vpack.c.b16 %v983_v48, %v983_v48 }
  0x79   : > { %v1000_v62 = vrot.slane %v989_v56, 2 }
  0x7b   : > { %v1001_v7 = vsel %vm990_vm4, %v998_v32, %v1000_v62 }
  0x83   : > { %2075 = vmatmul.msk.bf16.gmra.mxu1 %vm223_vm0, %v995_v60  ;;  %2111 = vmatmul.msk.bf16.vlgmr.msra.gmra.mxu2 %vm223_vm0, %v1139_v61  ;;  %v1331_v60 = vrot.slane %v1329_v53, 2  ;;  %v1334_v61 = vrot.slane %v1332_v54, 3 }
  0x85   : > { %2186 = vmatmul.msk.bf16.gmra.mxu0 %vm223_vm0, %v1477_v2  ;;  %v1335_v1 = vor.u32 %v1334_v61, %v1331_v60  ;;  %v1438_v2 = vld [vmem:[%s2376_s25 + $0x30] sm:$0x7] }
  0x86   : > { %2149 = vmatmul.msk.bf16.gmra.mxu3 %vm223_vm0, %v1309_v63  ;;  %v1144_v63 = vrot.slane %v2248_v57, 2  ;;  %v1465_v4 = vunpack.c.l.b16 %v1438_v2 }
  0x88   : > { %v1145_v8 = vsel %vm990_vm4, %v1142_v33, %v1144_v63 }
  0x90   : > { %v253_v12 = vpop.f32.mrf.mxu1 }
  0x91   : > { %276 = vst.msk [vmem:[#allocation2 + $0x10] sm:$0xff] %vm273_vm7, %v253_v12  ;;  %v1471_v12 = vpack.c.b16 %v1465_v4, %v1465_v4 }
  0x92   : > { %v248_v16 = vpop.f32.mrf.mxu0 }
  0x93   : > { %274 = vst.msk [vmem:[#allocation2] sm:$0xff] %vm273_vm7, %v248_v16  ;;  %2076 = vmatmul.msk.bf16.gmra.mxu1 %vm223_vm0, %v997_v13  ;;  %2112 = vmatmul.msk.bf16.gmra.mxu2 %vm223_vm0, %v1141_v14  ;;  %v1336_v13 = vsel %vm1283_vm5, %v1326_v36, %v1335_v1  ;;  %v1482_v14 = vrot.slane %v1471_v12, 3  ;;  %v1130_v16 = vunpack.c.l.b16 %v1103_v11 }
  0x95   : > { %2187 = vmatmul.msk.bf16.gmra.mxu0 %vm223_vm0, %v1479_v20  ;;  %v1136_v22 = vpack.c.b16 %v1130_v16, %v1130_v16 }
  0x96   : > { %2150 = vmatmul.msk.bf16.gmra.mxu3 %vm223_vm0, %v1318_v17  ;;  %v258_v21 = vpop.f32.mrf.mxu2  ;;  %v1483_v17 = vsel %vm1472_vm6, %v1480_v47, %v1482_v14 }
  0x97   : > { %278 = vst.msk [vmem:[#allocation2 + $0x20] sm:$0xff] %vm273_vm7, %v258_v21  ;;  %v1146_v26 = vrot.slane %v1136_v22, 2 }
  0x98   : > { %v255_v24 = vpop.f32.mrf.mxu1  ;;  %v436_v6 = vld [vmem:[#allocation2 + $0x10] sm:$0xff] }
  0x99   : > { %v268_v27 = vpop.f32.mrf.mxu3  ;;  %277 = vst.msk [vmem:[#allocation2 + $0x18] sm:$0xff] %vm273_vm7, %v255_v24  ;;  %v1147_v33 = vsel %vm990_vm4, %v1144_v63, %v1146_v26 }
  0x9a   : > { %v250_v28 = vpop.f32.mrf.mxu0  ;;  %282 = vst.msk [vmem:[#allocation2 + $0x40] sm:$0xff] %vm273_vm7, %v268_v27  ;;  %v434_v35 = vld [vmem:[#allocation2] sm:$0xff] }
  0x9b   : > { %275 = vst.msk [vmem:[#allocation2 + $0x8] sm:$0xff] %vm273_vm7, %v250_v28 }
  0x9e   : > { %v260_v34 = vpop.f32.mrf.mxu2  ;;  %v438_v32 = vld [vmem:[#allocation2 + $0x20] sm:$0xff] }
  0x9f   : > { %279 = vst.msk [vmem:[#allocation2 + $0x28] sm:$0xff] %vm273_vm7, %v260_v34 }
  0xa0   : > { %v409_v38 = vpop.f32.mrf.mxu1  ;;  %v437_v21 = vld [vmem:[#allocation2 + $0x18] sm:$0xff] }
  0xa1   : > { %v270_v41 = vpop.f32.mrf.mxu3  ;;  %v444_v42 = vadd.f32 %v434_v35, %v409_v38  ;;  %v442_v14 = vld [vmem:[#allocation2 + $0x40] sm:$0xff] }
  0xa2   : > { %283 = vst.msk [vmem:[#allocation2 + $0x48] sm:$0xff] %vm273_vm7, %v270_v41  ;;  %v2563_v49 = vpop.f32.mrf.mxu0  ;;  %v435_v52 = vld [vmem:[#allocation2 + $0x8] sm:$0xff] }
  0xa3   : > { %454 = vst.msk [vmem:[#allocation2] sm:$0xff] %vm273_vm7, %v444_v42  ;;  %2077 = vmatmul.msk.bf16.gmra.mxu1 %vm223_vm0, %v999_v39  ;;  %2113 = vmatmul.msk.bf16.gmra.mxu2 %vm223_vm0, %v1143_v40 }
  0xa5   : > { %2188 = vmatmul.msk.bf16.gmra.mxu0 %vm223_vm0, %v1481_v50 }
  0xa6   : > { %2151 = vmatmul.msk.bf16.gmra.mxu3 %vm223_vm0, %v1327_v45  ;;  %v263_v51 = vpop.f32.mrf.mxu2  ;;  %v439_v43 = vld [vmem:[#allocation2 + $0x28] sm:$0xff] }
  0xa7   : > { %280 = vst.msk [vmem:[#allocation2 + $0x30] sm:$0xff] %vm273_vm7, %v263_v51 }
  0xa8   : > { %v411_v55 = vpop.f32.mrf.mxu1 }
  0xa9   : > { %v702_v58 = vpop.f32.mrf.mxu3  ;;  %v445_v59 = vadd.f32 %v435_v52, %v411_v55  ;;  %v443_v26 = vld [vmem:[#allocation2 + $0x48] sm:$0xff] }
  0xaa   : > { %v2572_v3 = vpop.f32.mrf.mxu0  ;;  %v581_v15 = vld [vmem:[#allocation2] sm:$0xff] }
  0xab   : > { %455 = vst.msk [vmem:[#allocation2 + $0x8] sm:$0xff] %vm273_vm7, %v445_v59 }
  0xae   : > { %v265_v0 = vpop.f32.mrf.mxu2  ;;  %v440_v56 = vld [vmem:[#allocation2 + $0x30] sm:$0xff] }
  0xaf   : > { %281 = vst.msk [vmem:[#allocation2 + $0x38] sm:$0xff] %vm273_vm7, %v265_v0 }
  0xb0   : > { %v414_v5 = vpop.f32.mrf.mxu1 }
  0xb1   : > { %v704_v9 = vpop.f32.mrf.mxu3  ;;  %v446_v10 = vadd.f32 %v436_v6, %v414_v5 }
  0xb2   : > { %v896_v25 = vpop.f32.mrf.mxu0  ;;  %v582_v28 = vld [vmem:[#allocation2 + $0x8] sm:$0xff] }
  0xb3   : > { %456 = vst.msk [vmem:[#allocation2 + $0x10] sm:$0xff] %vm273_vm7, %v446_v10  ;;  %2078 = vmatmul.msk.bf16.gmra.mxu1 %vm223_vm0, %v1001_v7  ;;  %2114 = vmatmul.msk.bf16.gmra.mxu2 %vm223_vm0, %v1145_v8 }
  0xb5   : > { %2189 = vmatmul.msk.bf16.gmra.mxu0 %vm223_vm0, %v1483_v17 }
  0xb6   : > { %2152 = vmatmul.msk.bf16.gmra.mxu3 %vm223_vm0, %v1336_v13  ;;  %v556_v18 = vpop.f32.mrf.mxu2  ;;  %v441_v4 = vld [vmem:[#allocation2 + $0x38] sm:$0xff] }
  0xb7   : > { %v591_v19 = vadd.f32 %v581_v15, %v556_v18 }
  0xb8   : > { %v416_v20 = vpop.f32.mrf.mxu1 }
  0xb9   : > { %v707_v23 = vpop.f32.mrf.mxu3  ;;  %601 = vst.msk [vmem:[#allocation2] sm:$0xff] %vm273_vm7, %v591_v19  ;;  %v447_v24 = vadd.f32 %v437_v21, %v416_v20 }
  0xba   : > { %v898_v37 = vpop.f32.mrf.mxu0  ;;  %v583_v39 = vld [vmem:[#allocation2 + $0x10] sm:$0xff] }
  0xbb   : > { %457 = vst.msk [vmem:[#allocation2 + $0x18] sm:$0xff] %vm273_vm7, %v447_v24 }
  0xbe   : > { %v558_v27 = vpop.f32.mrf.mxu2 }
  0xbf   : > { %v592_v29 = vadd.f32 %v582_v28, %v558_v27 }
  0xc0   : > { %v727_v30 = vld [vmem:[#allocation2] sm:$0xff]  ;;  %v419_v31 = vpop.f32.mrf.mxu1 }
  0xc1   : > { %v709_v34 = vpop.f32.mrf.mxu3  ;;  %v737_v35 = vadd.f32 %v727_v30, %v702_v58  ;;  %602 = vst.msk [vmem:[#allocation2 + $0x8] sm:$0xff] %vm273_vm7, %v592_v29  ;;  %v448_v36 = vadd.f32 %v438_v32, %v419_v31 }
  0xc2   : > { %v901_v50 = vpop.f32.mrf.mxu0  ;;  %v584_v52 = vld [vmem:[#allocation2 + $0x18] sm:$0xff] }
  0xc3   : > { %747 = vst.msk [vmem:[#allocation2] sm:$0xff] %vm273_vm7, %v737_v35  ;;  %2115 = vmatmul.msk.bf16.gmra.mxu2 %vm223_vm0, %v1147_v33 }
  0xc4   : > { %458 = vst.msk [vmem:[#allocation2 + $0x20] sm:$0xff] %vm273_vm7, %v448_v36 }
  0xc6   : > { %v561_v38 = vpop.f32.mrf.mxu2 }
  0xc7   : > { %v593_v40 = vadd.f32 %v583_v39, %v561_v38 }
  0xc8   : > { %v728_v41 = vld [vmem:[#allocation2 + $0x8] sm:$0xff]  ;;  %v421_v42 = vpop.f32.mrf.mxu1 }
  0xc9   : > { %v712_v44 = vpop.f32.mrf.mxu3  ;;  %v738_v45 = vadd.f32 %v728_v41, %v704_v9  ;;  %603 = vst.msk [vmem:[#allocation2 + $0x10] sm:$0xff] %vm273_vm7, %v593_v40  ;;  %v449_v46 = vadd.f32 %v439_v43, %v421_v42 }
  0xca   : > { %v916_v47 = vld [vmem:[#allocation2] sm:$0xff]  ;;  %v903_v0 = vpop.f32.mrf.mxu0 }
  0xcb   : > { %748 = vst.msk [vmem:[#allocation2 + $0x8] sm:$0xff] %vm273_vm7, %v738_v45  ;;  %v926_v48 = vadd.f32 %v916_v47, %v2563_v49  ;;  %v585_v62 = vld [vmem:[#allocation2 + $0x20] sm:$0xff] }
  0xcc   : > { %459 = vst.msk [vmem:[#allocation2 + $0x28] sm:$0xff] %vm273_vm7, %v449_v46 }
  0xcd   : > { %936 = vst.msk [vmem:[#allocation2] sm:$0xff] %vm273_vm7, %v926_v48 }
  0xce   : > { %v563_v51 = vpop.f32.mrf.mxu2 }
  0xcf   : > { %v594_v53 = vadd.f32 %v584_v52, %v563_v51 }
  0xd0   : > { %v729_v54 = vld [vmem:[#allocation2 + $0x10] sm:$0xff]  ;;  %v424_v55 = vpop.f32.mrf.mxu1 }
  0xd1   : > { %v714_v57 = vpop.f32.mrf.mxu3  ;;  %v739_v58 = vadd.f32 %v729_v54, %v707_v23  ;;  %604 = vst.msk [vmem:[#allocation2 + $0x18] sm:$0xff] %vm273_vm7, %v594_v53  ;;  %v450_v59 = vadd.f32 %v440_v56, %v424_v55 }
  0xd2   : > { %v917_v60 = vld [vmem:[#allocation2 + $0x8] sm:$0xff]  ;;  %v906_v19 = vpop.f32.mrf.mxu0 }
  0xd3   : > { %749 = vst.msk [vmem:[#allocation2 + $0x10] sm:$0xff] %vm273_vm7, %v739_v58  ;;  %v927_v49 = vadd.f32 %v917_v60, %v2572_v3  ;;  %v586_v10 = vld [vmem:[#allocation2 + $0x28] sm:$0xff] }
  0xd4   : > { %460 = vst.msk [vmem:[#allocation2 + $0x30] sm:$0xff] %vm273_vm7, %v450_v59  ;;  %v1063_v38 = vld [vmem:[#allocation2] sm:$0xff] }
  0xd5   : > { %937 = vst.msk [vmem:[#allocation2 + $0x8] sm:$0xff] %vm273_vm7, %v927_v49 }
  0xd6   : > { %v566_v61 = vpop.f32.mrf.mxu2 }
  0xd7   : > { %v595_v63 = vadd.f32 %v585_v62, %v566_v61 }
  0xd8   : > { %v730_v1 = vld [vmem:[#allocation2 + $0x18] sm:$0xff]  ;;  %v426_v2 = vpop.f32.mrf.mxu1 }
  0xd9   : > { %v717_v5 = vpop.f32.mrf.mxu3  ;;  %v740_v6 = vadd.f32 %v730_v1, %v709_v34  ;;  %605 = vst.msk [vmem:[#allocation2 + $0x20] sm:$0xff] %vm273_vm7, %v595_v63  ;;  %v451_v7 = vadd.f32 %v441_v4, %v426_v2 }
  0xda   : > { %v918_v8 = vld [vmem:[#allocation2 + $0x10] sm:$0xff]  ;;  %v908_v32 = vpop.f32.mrf.mxu0 }
  0xdb   : > { %750 = vst.msk [vmem:[#allocation2 + $0x18] sm:$0xff] %vm273_vm7, %v740_v6  ;;  %v928_v3 = vadd.f32 %v918_v8, %v896_v25  ;;  %v587_v22 = vld [vmem:[#allocation2 + $0x30] sm:$0xff] }
  0xdc   : > { %461 = vst.msk [vmem:[#allocation2 + $0x38] sm:$0xff] %vm273_vm7, %v451_v7  ;;  %v1064_v51 = vld [vmem:[#allocation2 + $0x8] sm:$0xff] }
  0xdd   : > { %938 = vst.msk [vmem:[#allocation2 + $0x10] sm:$0xff] %vm273_vm7, %v928_v3 }
  0xde   : > { %v568_v9 = vpop.f32.mrf.mxu2 }
  0xdf   : > { %v596_v11 = vadd.f32 %v586_v10, %v568_v9 }
  0xe0   : > { %v731_v12 = vld [vmem:[#allocation2 + $0x20] sm:$0xff]  ;;  %v429_v13 = vpop.f32.mrf.mxu1 }
  0xe1   : > { %v741_v15 = vadd.f32 %v731_v12, %v712_v44  ;;  %606 = vst.msk [vmem:[#allocation2 + $0x28] sm:$0xff] %vm273_vm7, %v596_v11  ;;  %v452_v16 = vadd.f32 %v442_v14, %v429_v13  ;;  %v719_v17 = vpop.f32.mrf.mxu3 }
  0xe2   : > { %v919_v18 = vld [vmem:[#allocation2 + $0x18] sm:$0xff]  ;;  %v911_v46 = vpop.f32.mrf.mxu0 }
  0xe3   : > { %751 = vst.msk [vmem:[#allocation2 + $0x20] sm:$0xff] %vm273_vm7, %v741_v15  ;;  %v929_v20 = vadd.f32 %v919_v18, %v898_v37  ;;  %v588_v34 = vld [vmem:[#allocation2 + $0x38] sm:$0xff] }
  0xe4   : > { %462 = vst.msk [vmem:[#allocation2 + $0x40] sm:$0xff] %vm273_vm7, %v452_v16  ;;  %v1065_v61 = vld [vmem:[#allocation2 + $0x10] sm:$0xff] }
  0xe5   : > { %939 = vst.msk [vmem:[#allocation2 + $0x18] sm:$0xff] %vm273_vm7, %v929_v20 }
  0xe6   : > { %v571_v21 = vpop.f32.mrf.mxu2 }
  0xe7   : > { %v597_v23 = vadd.f32 %v587_v22, %v571_v21 }
  0xe8   : > { %v732_v24 = vld [vmem:[#allocation2 + $0x28] sm:$0xff]  ;;  %v431_v25 = vpop.f32.mrf.mxu1 }
  0xe9   : > { %v742_v27 = vadd.f32 %v732_v24, %v714_v57  ;;  %607 = vst.msk [vmem:[#allocation2 + $0x30] sm:$0xff] %vm273_vm7, %v597_v23  ;;  %v453_v28 = vadd.f32 %v443_v26, %v431_v25  ;;  %v722_v31 = vpop.f32.mrf.mxu3 }
  0xea   : > { %v920_v29 = vld [vmem:[#allocation2 + $0x20] sm:$0xff]  ;;  %v913_v62 = vpop.f32.mrf.mxu0 }
  0xeb   : > { %752 = vst.msk [vmem:[#allocation2 + $0x28] sm:$0xff] %vm273_vm7, %v742_v27  ;;  %v930_v30 = vadd.f32 %v920_v29, %v901_v50  ;;  %v589_v45 = vld [vmem:[#allocation2 + $0x40] sm:$0xff] }
  0xec   : > { %463 = vst.msk [vmem:[#allocation2 + $0x48] sm:$0xff] %vm273_vm7, %v453_v28  ;;  %v1066_v3 = vld [vmem:[#allocation2 + $0x18] sm:$0xff] }
  0xed   : > { %940 = vst.msk [vmem:[#allocation2 + $0x20] sm:$0xff] %vm273_vm7, %v930_v30 }
  0xee   : > { %v573_v33 = vpop.f32.mrf.mxu2 }
  0xef   : > { %v598_v35 = vadd.f32 %v588_v34, %v573_v33 }
  0xf0   : > { %v733_v36 = vld [vmem:[#allocation2 + $0x30] sm:$0xff]  ;;  %v1038_v37 = vpop.f32.mrf.mxu1 }
  0xf1   : > { %v743_v39 = vadd.f32 %v733_v36, %v717_v5  ;;  %608 = vst.msk [vmem:[#allocation2 + $0x38] sm:$0xff] %vm273_vm7, %v598_v35  ;;  %v1073_v40 = vadd.f32 %v1063_v38, %v1038_v37  ;;  %v724_v43 = vpop.f32.mrf.mxu3 }
  0xf2   : > { %v921_v41 = vld [vmem:[#allocation2 + $0x28] sm:$0xff]  ;;  %v1520_v13 = vpop.f32.mrf.mxu0 }
  0xf3   : > { %753 = vst.msk [vmem:[#allocation2 + $0x30] sm:$0xff] %vm273_vm7, %v743_v39  ;;  %v931_v42 = vadd.f32 %v921_v41, %v903_v0  ;;  %v590_v57 = vld [vmem:[#allocation2 + $0x48] sm:$0xff] }
  0xf4   : > { %1083 = vst.msk [vmem:[#allocation2] sm:$0xff] %vm273_vm7, %v1073_v40  ;;  %v1067_v20 = vld [vmem:[#allocation2 + $0x20] sm:$0xff] }
  0xf5   : > { %941 = vst.msk [vmem:[#allocation2 + $0x28] sm:$0xff] %vm273_vm7, %v931_v42 }
  0xf6   : > { %v576_v44 = vpop.f32.mrf.mxu2 }
  0xf7   : > { %v599_v47 = vadd.f32 %v589_v45, %v576_v44  ;;  %v2640_v45 = vld [vmem:[%s2741_s2] ss:$0 sm:$0xff] }
  0xf8   : > { %v734_v48 = vld [vmem:[#allocation2 + $0x38] sm:$0xff]  ;;  %v1040_v50 = vpop.f32.mrf.mxu1 }
  0xf9   : > { %v744_v52 = vadd.f32 %v734_v48, %v719_v17  ;;  %609 = vst.msk [vmem:[#allocation2 + $0x40] sm:$0xff] %vm273_vm7, %v599_v47  ;;  %v1074_v53 = vadd.f32 %v1064_v51, %v1040_v50  ;;  %v1373_v59 = vpop.f32.mrf.mxu3 }
  0xfa   : > { %v922_v54 = vld [vmem:[#allocation2 + $0x30] sm:$0xff]  ;;  %v1522_v26 = vpop.f32.mrf.mxu0 }
  0xfb   : > { %754 = vst.msk [vmem:[#allocation2 + $0x38] sm:$0xff] %vm273_vm7, %v744_v52  ;;  %v932_v55 = vadd.f32 %v922_v54, %v906_v19  ;;  %v1209_v5 = vld [vmem:[#allocation2] sm:$0xff] }
  0xfc   : > { %1084 = vst.msk [vmem:[#allocation2 + $0x8] sm:$0xff] %vm273_vm7, %v1074_v53 }
  0xfd   : > { %942 = vst.msk [vmem:[#allocation2 + $0x30] sm:$0xff] %vm273_vm7, %v932_v55 }
  0xfe   : > { %v578_v56 = vpop.f32.mrf.mxu2 }
  0xff   : > { %v600_v58 = vadd.f32 %v590_v57, %v578_v56 }
 0x100   : > { %v735_v60 = vld [vmem:[#allocation2 + $0x40] sm:$0xff]  ;;  %v1043_v49 = vpop.f32.mrf.mxu1 }
 0x101   : > { %v745_v63 = vadd.f32 %v735_v60, %v722_v31  ;;  %610 = vst.msk [vmem:[#allocation2 + $0x48] sm:$0xff] %vm273_vm7, %v600_v58  ;;  %v1075_v0 = vadd.f32 %v1065_v61, %v1043_v49  ;;  %v1375_v11 = vpop.f32.mrf.mxu3 }
 0x102   : > { %v923_v1 = vld [vmem:[#allocation2 + $0x38] sm:$0xff]  ;;  %v1525_v40 = vpop.f32.mrf.mxu0 }
 0x103   : > { %755 = vst.msk [vmem:[#allocation2 + $0x40] sm:$0xff] %vm273_vm7, %v745_v63  ;;  %v933_v2 = vadd.f32 %v923_v1, %v908_v32  ;;  %v1210_v16 = vld [vmem:[#allocation2 + $0x8] sm:$0xff] }
 0x104   : > { %1085 = vst.msk [vmem:[#allocation2 + $0x10] sm:$0xff] %vm273_vm7, %v1075_v0  ;;  %v1068_v32 = vld [vmem:[#allocation2 + $0x28] sm:$0xff]  ;;  %v1069_v44 = vld [vmem:[#allocation2 + $0x30] sm:$0xff] }
 0x105   : > { %943 = vst.msk [vmem:[#allocation2 + $0x38] sm:$0xff] %vm273_vm7, %v933_v2 }
 0x106   : > { %v1184_v4 = vpop.f32.mrf.mxu2 }
 0x107   : > { %v1219_v6 = vadd.f32 %v1209_v5, %v1184_v4 }
 0x108   : > { %v736_v7 = vld [vmem:[#allocation2 + $0x48] sm:$0xff]  ;;  %v1045_v8 = vpop.f32.mrf.mxu1 }
 0x109   : > { %v746_v9 = vadd.f32 %v736_v7, %v724_v43  ;;  %1229 = vst.msk [vmem:[#allocation2] sm:$0xff] %vm273_vm7, %v1219_v6  ;;  %v1076_v10 = vadd.f32 %v1066_v3, %v1045_v8  ;;  %v1378_v25 = vpop.f32.mrf.mxu3 }
 0x10a   : > { %v924_v12 = vld [vmem:[#allocation2 + $0x40] sm:$0xff]  ;;  %v1527_v49 = vpop.f32.mrf.mxu0 }
 0x10b   : > { %756 = vst.msk [vmem:[#allocation2 + $0x48] sm:$0xff] %vm273_vm7, %v746_v9  ;;  %v934_v14 = vadd.f32 %v924_v12, %v911_v46  ;;  %v1211_v28 = vld [vmem:[#allocation2 + $0x10] sm:$0xff] }
 0x10c   : > { %1086 = vst.msk [vmem:[#allocation2 + $0x18] sm:$0xff] %vm273_vm7, %v1076_v10  ;;  %v1070_v60 = vld [vmem:[#allocation2 + $0x38] sm:$0xff] }
 0x10d   : > { %944 = vst.msk [vmem:[#allocation2 + $0x40] sm:$0xff] %vm273_vm7, %v934_v14 }
 0x10e   : > { %v1186_v15 = vpop.f32.mrf.mxu2 }
 0x10f   : > { %v1220_v17 = vadd.f32 %v1210_v16, %v1186_v15 }
 0x110   : > { %v1398_v18 = vld [vmem:[#allocation2] sm:$0xff]  ;;  %v1048_v19 = vpop.f32.mrf.mxu1 }
 0x111   : > { %v1408_v21 = vadd.f32 %v1398_v18, %v1373_v59  ;;  %1230 = vst.msk [vmem:[#allocation2 + $0x8] sm:$0xff] %vm273_vm7, %v1220_v17  ;;  %v1077_v22 = vadd.f32 %v1067_v20, %v1048_v19  ;;  %v1380_v37 = vpop.f32.mrf.mxu3 }
 0x112   : > { %v925_v23 = vld [vmem:[#allocation2 + $0x48] sm:$0xff]  ;;  %v1530_v16 = vpop.f32.mrf.mxu0 }
 0x113   : > { %1418 = vst.msk [vmem:[#allocation2] sm:$0xff] %vm273_vm7, %v1408_v21  ;;  %v935_v24 = vadd.f32 %v925_v23, %v913_v62  ;;  %v1212_v39 = vld [vmem:[#allocation2 + $0x18] sm:$0xff] }
 0x114   : > { %1087 = vst.msk [vmem:[#allocation2 + $0x20] sm:$0xff] %vm273_vm7, %v1077_v22 }
 0x115   : > { %945 = vst.msk [vmem:[#allocation2 + $0x48] sm:$0xff] %vm273_vm7, %v935_v24 }
 0x116   : > { %v1189_v27 = vpop.f32.mrf.mxu2 }
 0x117   : > { %v1221_v29 = vadd.f32 %v1211_v28, %v1189_v27 }
 0x118   : > { %v1399_v30 = vld [vmem:[#allocation2 + $0x8] sm:$0xff]  ;;  %v1050_v31 = vpop.f32.mrf.mxu1 }
 0x119   : > { %v1409_v33 = vadd.f32 %v1399_v30, %v1375_v11  ;;  %1231 = vst.msk [vmem:[#allocation2 + $0x10] sm:$0xff] %vm273_vm7, %v1221_v29  ;;  %v1078_v34 = vadd.f32 %v1068_v32, %v1050_v31  ;;  %v1383_v57 = vpop.f32.mrf.mxu3  ;;  %v1071_v11 = vld [vmem:[#allocation2 + $0x40] sm:$0xff] }
 0x11a   : > { %v1545_v35 = vld [vmem:[#allocation2] sm:$0xff] }
 0x11b   : > { %1419 = vst.msk [vmem:[#allocation2 + $0x8] sm:$0xff] %vm273_vm7, %v1409_v33  ;;  %v1555_v36 = vadd.f32 %v1545_v35, %v1520_v13  ;;  %v1213_v54 = vld [vmem:[#allocation2 + $0x20] sm:$0xff] }
 0x11c   : > { %1088 = vst.msk [vmem:[#allocation2 + $0x28] sm:$0xff] %vm273_vm7, %v1078_v34  ;;  %v1072_v32 = vld [vmem:[#allocation2 + $0x48] sm:$0xff] }
 0x11d   : > { %1565 = vst.msk [vmem:[#allocation2] sm:$0xff] %vm273_vm7, %v1555_v36 }
 0x11e   : > { %v1191_v38 = vpop.f32.mrf.mxu2 }
 0x11f   : > { %v1222_v41 = vadd.f32 %v1212_v39, %v1191_v38  ;;  %v1532_v39 = vpop.f32.mrf.mxu0 }
 0x120   : > { %v1400_v42 = vld [vmem:[#allocation2 + $0x10] sm:$0xff]  ;;  %v1053_v43 = vpop.f32.mrf.mxu1 }
 0x121   : > { %v1410_v46 = vadd.f32 %v1400_v42, %v1378_v25  ;;  %1232 = vst.msk [vmem:[#allocation2 + $0x18] sm:$0xff] %vm273_vm7, %v1222_v41  ;;  %v1079_v47 = vadd.f32 %v1069_v44, %v1053_v43  ;;  %v1385_v14 = vpop.f32.mrf.mxu3 }
 0x122   : > { %v1546_v48 = vld [vmem:[#allocation2 + $0x8] sm:$0xff] }
 0x123   : > { %1420 = vst.msk [vmem:[#allocation2 + $0x10] sm:$0xff] %vm273_vm7, %v1410_v46  ;;  %v1556_v50 = vadd.f32 %v1546_v48, %v1522_v26  ;;  %v1214_v5 = vld [vmem:[#allocation2 + $0x28] sm:$0xff] }
 0x124   : > { %v1575_v51 = vld [vmem:[#allocation2] sm:$0xff]  ;;  %1089 = vst.msk [vmem:[#allocation2 + $0x30] sm:$0xff] %vm273_vm7, %v1079_v47 }
 0x125   : > { %v1589_v52 = vadd.f32 %v2640_v45, %v1575_v51  ;;  %1566 = vst.msk [vmem:[#allocation2 + $0x8] sm:$0xff] %vm273_vm7, %v1556_v50 }
 0x126   : > { %v1194_v53 = vpop.f32.mrf.mxu2 }
 0x127   : > { %v2190_v55 = vmul.f32 -1.442695, %v1589_v52  ;;  %v1223_v56 = vadd.f32 %v1213_v54, %v1194_v53 }
 0x128   : > { %v1401_v58 = vld [vmem:[#allocation2 + $0x18] sm:$0xff]  ;;  %v1055_v59 = vpop.f32.mrf.mxu1 }
 0x129   : > { %2282 = vpow2.f32 %v2190_v55  ;;  %v1411_v61 = vadd.f32 %v1401_v58, %v1380_v37  ;;  %1233 = vst.msk [vmem:[#allocation2 + $0x20] sm:$0xff] %vm273_vm7, %v1223_v56  ;;  %v1080_v62 = vadd.f32 %v1070_v60, %v1055_v59  ;;  %v1388_v36 = vpop.f32.mrf.mxu3 }
 0x12a   : > { %v1547_v63 = vld [vmem:[#allocation2 + $0x10] sm:$0xff] }
 0x12b   : > { %1421 = vst.msk [vmem:[#allocation2 + $0x18] sm:$0xff] %vm273_vm7, %v1411_v61  ;;  %v1557_v0 = vadd.f32 %v1547_v63, %v1525_v40  ;;  %v1215_v21 = vld [vmem:[#allocation2 + $0x30] sm:$0xff] }
 0x12c   : > { %v1576_v1 = vld [vmem:[#allocation2 + $0x8] sm:$0xff]  ;;  %1090 = vst.msk [vmem:[#allocation2 + $0x38] sm:$0xff] %vm273_vm7, %v1080_v62 }
 0x12d   : > { %v1590_v2 = vadd.f32 %v2640_v45, %v1576_v1  ;;  %1567 = vst.msk [vmem:[#allocation2 + $0x10] sm:$0xff] %vm273_vm7, %v1557_v0 }
 0x12e   : > { %v1196_v4 = vpop.f32.mrf.mxu2 }
 0x12f   : > { %v2283_v6 = vpop.eup %2282  ;;  %v2191_v7 = vmul.f32 -1.442695, %v1590_v2  ;;  %v1224_v8 = vadd.f32 %v1214_v5, %v1196_v4  ;;  %v1535_v4 = vpop.f32.mrf.mxu0 }
 0x130   : > { %v2652_v3 = vadd.f32 1.0, %v2283_v6  ;;  %v1402_v9 = vld [vmem:[#allocation2 + $0x20] sm:$0xff]  ;;  %v1058_v10 = vpop.f32.mrf.mxu1 }
 0x131   : > { %2284 = vpow2.f32 %v2191_v7  ;;  %v1412_v12 = vadd.f32 %v1402_v9, %v1383_v57  ;;  %1234 = vst.msk [vmem:[#allocation2 + $0x28] sm:$0xff] %vm273_vm7, %v1224_v8  ;;  %v1081_v13 = vadd.f32 %v1071_v11, %v1058_v10  ;;  %v1390_v2 = vpop.f32.mrf.mxu3 }
 0x132   : > { %2286 = vrcp.f32 %v2652_v3  ;;  %v1548_v15 = vld [vmem:[#allocation2 + $0x18] sm:$0xff]  ;;  %v1650_v37 = vand.u32 2147483648, %v2652_v3  ;;  %v1648_v41 = vand.u32 2147483647, %v2652_v3  ;;  %vm1644_vm9 = vweird.f32 %v2652_v3 }
 0x133   : > { %1422 = vst.msk [vmem:[#allocation2 + $0x20] sm:$0xff] %vm273_vm7, %v1412_v12  ;;  %v1558_v17 = vadd.f32 %v1548_v15, %v1527_v49  ;;  %v1216_v44 = vld [vmem:[#allocation2 + $0x38] sm:$0xff] }
 0x134   : > { %v1577_v18 = vld [vmem:[#allocation2 + $0x10] sm:$0xff]  ;;  %1091 = vst.msk [vmem:[#allocation2 + $0x40] sm:$0xff] %vm273_vm7, %v1081_v13  ;;  %v1651_v52 = vor.u32 1.1754944e-38, %v1650_v37  ;;  %vm1649_vm11 = vcmp.eq.f32.partialorder %v1648_v41, 8.507059e+37 }
 0x135   : > { %v1591_v19 = vadd.f32 %v2640_v45, %v1577_v18  ;;  %1568 = vst.msk [vmem:[#allocation2 + $0x18] sm:$0xff] %vm273_vm7, %v1558_v17 }
 0x136   : > { %v1199_v20 = vpop.f32.mrf.mxu2 }
 0x137   : > { %v2285_v22 = vpop.eup %2284  ;;  %v2192_v23 = vmul.f32 -1.442695, %v1591_v19  ;;  %v1225_v24 = vadd.f32 %v1215_v21, %v1199_v20  ;;  %v1537_v37 = vpop.f32.mrf.mxu0 }
 0x138   : > { %v2287_v25 = vpop.eup %2286  ;;  %v2660_v26 = vadd.f32 1.0, %v2285_v22  ;;  %v1403_v27 = vld [vmem:[#allocation2 + $0x28] sm:$0xff]  ;;  %v1060_v28 = vpop.f32.mrf.mxu1 }
 0x139   : > { %v1640_v29 = vmul.f32 %v2287_v25, %v2652_v3  ;;  %2288 = vpow2.f32 %v2192_v23  ;;  %v1413_v30 = vadd.f32 %v1403_v27, %v1385_v14  ;;  %1235 = vst.msk [vmem:[#allocation2 + $0x30] sm:$0xff] %vm273_vm7, %v1225_v24  ;;  %v1082_v35 = vadd.f32 %v1072_v32, %v1060_v28 }
 0x13a   : > { %2290 = vrcp.f32 %v2660_v26  ;;  %v1549_v31 = vld [vmem:[#allocation2 + $0x20] sm:$0xff]  ;;  %vm1645_vm8 = vweird.f32 %v2287_v25  ;;  %v1665_v61 = vand.u32 2147483648, %v2660_v26  ;;  %v1663_v0 = vand.u32 2147483647, %v2660_v26 }
 0x13b   : > { %v1641_v33 = vsub.f32 1.0, %v1640_v29  ;;  %1423 = vst.msk [vmem:[#allocation2 + $0x28] sm:$0xff] %vm273_vm7, %v1413_v30  ;;  %v1559_v34 = vadd.f32 %v1549_v31, %v1530_v16  ;;  %vm1646_vm10 = vmor %vm1644_vm9, %vm1645_vm8  ;;  %v1217_v6 = vld [vmem:[#allocation2 + $0x40] sm:$0xff]  ;;  %vm1659_vm13 = vweird.f32 %v2660_v26  ;;  %v1393_v30 = vpop.f32.mrf.mxu3 }
 0x13c   : > { %v1578_v38 = vld [vmem:[#allocation2 + $0x18] sm:$0xff]  ;;  %1092 = vst.msk [vmem:[#allocation2 + $0x48] sm:$0xff] %vm273_vm7, %v1082_v35  ;;  %v1666_v11 = vor.u32 1.1754944e-38, %v1665_v61  ;;  %vm1664_vm15 = vcmp.eq.f32.partialorder %v1663_v0, 8.507059e+37 }
 0x13d   : > { %v1642_v40 = vmul.f32 %v2287_v25, %v1641_v33  ;;  %v1592_v42 = vadd.f32 %v2640_v45, %v1578_v38  ;;  %1569 = vst.msk [vmem:[#allocation2 + $0x20] sm:$0xff] %vm273_vm7, %v1559_v34 }
 0x13e   : > { %v1201_v43 = vpop.f32.mrf.mxu2 }
 0x13f   : > { %v2289_v46 = vpop.eup %2288  ;;  %v1643_v47 = vadd.f32 %v2287_v25, %v1642_v40  ;;  %v2193_v48 = vmul.f32 -1.442695, %v1592_v42  ;;  %v1226_v50 = vadd.f32 %v1216_v44, %v1201_v43 }
 0x140   : > { %v2291_v51 = vpop.eup %2290  ;;  %v2678_v53 = vadd.f32 1.0, %v2289_v46  ;;  %v1404_v54 = vld [vmem:[#allocation2 + $0x30] sm:$0xff] }
 0x141   : > { %v1647_v55 = vsel %vm1646_vm10, %v2287_v25, %v1643_v47  ;;  %v1655_v56 = vmul.f32 %v2291_v51, %v2660_v26  ;;  %2292 = vpow2.f32 %v2193_v48  ;;  %1236 = vst.msk [vmem:[#allocation2 + $0x38] sm:$0xff] %vm273_vm7, %v1226_v50  ;;  %v1414_v60 = vadd.f32 %v1404_v54, %v1388_v36 }
 0x142   : > { %v1652_v57 = vsel %vm1649_vm11, %v1651_v52, %v1647_v55  ;;  %2294 = vrcp.f32 %v2678_v53  ;;  %v1550_v58 = vld [vmem:[#allocation2 + $0x28] sm:$0xff]  ;;  %vm1660_vm12 = vweird.f32 %v2291_v51  ;;  %v1680_v19 = vand.u32 2147483648, %v2678_v53 }
 0x143   : > { %1789 = vst.msk [vmem:[%s2676_s6] sm:$0xff] %vm273_vm7, %v1652_v57  ;;  %v1656_v59 = vsub.f32 1.0, %v1655_v56  ;;  %v1560_v49 = vadd.f32 %v1550_v58, %v1532_v39  ;;  %vm1661_vm14 = vmor %vm1659_vm13, %vm1660_vm12  ;;  %v1678_v22 = vand.u32 2147483647, %v2678_v53  ;;  %v1218_v27 = vld [vmem:[#allocation2 + $0x48] sm:$0xff]  ;;  %vm1674_vm1 = vweird.f32 %v2678_v53 }
 0x144   : > { %v1579_v62 = vld [vmem:[#allocation2 + $0x20] sm:$0xff]  ;;  %1424 = vst.msk [vmem:[#allocation2 + $0x30] sm:$0xff] %vm273_vm7, %v1414_v60  ;;  %v1681_v33 = vor.u32 1.1754944e-38, %v1680_v19  ;;  %v1395_v60 = vpop.f32.mrf.mxu3 }
 0x145   : > { %v1657_v63 = vmul.f32 %v2291_v51, %v1656_v59  ;;  %v1593_v1 = vadd.f32 %v2640_v45, %v1579_v62  ;;  %1570 = vst.msk [vmem:[#allocation2 + $0x28] sm:$0xff] %vm273_vm7, %v1560_v49  ;;  %vm1679_vm3 = vcmp.eq.f32.partialorder %v1678_v22, 8.507059e+37 }
 0x146   : > { %v1204_v5 = vpop.f32.mrf.mxu2 }
 0x147   : > { %v2293_v7 = vpop.eup %2292  ;;  %v1658_v8 = vadd.f32 %v2291_v51, %v1657_v63  ;;  %v2194_v3 = vmul.f32 -1.442695, %v1593_v1  ;;  %v1227_v9 = vadd.f32 %v1217_v6, %v1204_v5  ;;  %v1540_v63 = vpop.f32.mrf.mxu0 }
 0x148   : > { %v2295_v10 = vpop.eup %2294  ;;  %v2692_v12 = vadd.f32 1.0, %v2293_v7  ;;  %v1405_v13 = vld [vmem:[#allocation2 + $0x38] sm:$0xff] }
 0x149   : > { %v1662_v14 = vsel %vm1661_vm14, %v2291_v51, %v1658_v8  ;;  %v1670_v15 = vmul.f32 %v2295_v10, %v2678_v53  ;;  %2296 = vpow2.f32 %v2194_v3  ;;  %1237 = vst.msk [vmem:[#allocation2 + $0x40] sm:$0xff] %vm273_vm7, %v1227_v9  ;;  %v1415_v18 = vadd.f32 %v1405_v13, %v1390_v2 }
 0x14a   : > { %v1667_v16 = vsel %vm1664_vm15, %v1666_v11, %v1662_v14  ;;  %2298 = vrcp.f32 %v2692_v12  ;;  %vm1675_vm0 = vweird.f32 %v2295_v10  ;;  %v1695_v43 = vand.u32 2147483648, %v2692_v12 }
 0x14b   : > { %1790 = vst.msk [vmem:[%s2676_s6 + $0x8] sm:$0xff] %vm273_vm7, %v1667_v16  ;;  %v1671_v17 = vsub.f32 1.0, %v1670_v15  ;;  %v1551_v20 = vld [vmem:[#allocation2 + $0x30] sm:$0xff]  ;;  %vm1676_vm2 = vmor %vm1674_vm1, %vm1675_vm0  ;;  %v1693_v47 = vand.u32 2147483647, %v2692_v12  ;;  %vm1689_vm5 = vweird.f32 %v2692_v12 }
 0x14c   : > { %v1580_v23 = vld [vmem:[#allocation2 + $0x28] sm:$0xff]  ;;  %1425 = vst.msk [vmem:[#allocation2 + $0x38] sm:$0xff] %vm273_vm7, %v1415_v18  ;;  %v1561_v24 = vadd.f32 %v1551_v20, %v1535_v4  ;;  %v1696_v54 = vor.u32 1.1754944e-38, %v1695_v43 }
 0x14d   : > { %v1672_v21 = vmul.f32 %v2295_v10, %v1671_v17  ;;  %v1594_v25 = vadd.f32 %v2640_v45, %v1580_v23  ;;  %vm1694_vm8 = vcmp.eq.f32.partialorder %v1693_v47, 8.507059e+37 }
 0x14e   : > { %v1206_v26 = vpop.f32.mrf.mxu2  ;;  %1571 = vst.msk [vmem:[#allocation2 + $0x30] sm:$0xff] %vm273_vm7, %v1561_v24 }
 0x14f   : > { %v2297_v28 = vpop.eup %2296  ;;  %v1673_v29 = vadd.f32 %v2295_v10, %v1672_v21  ;;  %v1228_v31 = vadd.f32 %v1218_v27, %v1206_v26  ;;  %v2195_v35 = vmul.f32 -1.442695, %v1594_v25  ;;  %v1542_v18 = vpop.f32.mrf.mxu0 }
 0x150   : > { %v2299_v32 = vpop.eup %2298  ;;  %v1633_v34 = vadd.f32 1.0, %v2297_v28  ;;  %v1406_v36 = vld [vmem:[#allocation2 + $0x40] sm:$0xff] }
 0x151   : > { %v1677_v38 = vsel %vm1676_vm2, %v2295_v10, %v1673_v29  ;;  %v1685_v39 = vmul.f32 %v2299_v32, %v2692_v12  ;;  %v1416_v40 = vadd.f32 %v1406_v36, %v1393_v30  ;;  %1238 = vst.msk [vmem:[#allocation2 + $0x48] sm:$0xff] %vm273_vm7, %v1228_v31  ;;  %vm1690_vm4 = vweird.f32 %v2299_v32 }
 0x152   : > { %v1682_v41 = vsel %vm1679_vm3, %v1681_v33, %v1677_v38  ;;  %2300 = vrcp.f32 %v1633_v34  ;;  %vm1691_vm6 = vmor %vm1689_vm5, %vm1690_vm4  ;;  %v1710_v2 = vand.u32 2147483648, %v1633_v34  ;;  %v1708_v5 = vand.u32 2147483647, %v1633_v34 }
 0x153   : > { %1791 = vst.msk [vmem:[%s2676_s6 + $0x10] sm:$0xff] %vm273_vm7, %v1682_v41  ;;  %v1686_v42 = vsub.f32 1.0, %v1685_v39  ;;  %2302 = vpow2.f32 %v2195_v35  ;;  %v1552_v44 = vld [vmem:[#allocation2 + $0x38] sm:$0xff]  ;;  %vm1704_vm10 = vweird.f32 %v1633_v34 }
 0x154   : > { %1426 = vst.msk [vmem:[#allocation2 + $0x40] sm:$0xff] %vm273_vm7, %v1416_v40  ;;  %v1562_v48 = vadd.f32 %v1552_v44, %v1537_v37  ;;  %v1711_v9 = vor.u32 1.1754944e-38, %v1710_v2  ;;  %vm1709_vm12 = vcmp.eq.f32.partialorder %v1708_v5, 8.507059e+37 }
 0x155   : > { %v1687_v46 = vmul.f32 %v2299_v32, %v1686_v42  ;;  %v1581_v50 = vld [vmem:[#allocation2 + $0x30] sm:$0xff] }
 0x156   : > { %v1595_v52 = vadd.f32 %v2640_v45, %v1581_v50  ;;  %1572 = vst.msk [vmem:[#allocation2 + $0x38] sm:$0xff] %vm273_vm7, %v1562_v48 }
 0x157   : > { %v1688_v51 = vadd.f32 %v2299_v32, %v1687_v46 }
 0x158   : > { %v2301_v53 = vpop.eup %2300  ;;  %v1407_v55 = vld [vmem:[#allocation2 + $0x48] sm:$0xff]  ;;  %v2196_v59 = vmul.f32 -1.442695, %v1595_v52 }
 0x159   : > { %v2303_v56 = vpop.eup %2302  ;;  %v1692_v57 = vsel %vm1691_vm6, %v2299_v32, %v1688_v51  ;;  %v1700_v58 = vmul.f32 %v2301_v53, %v1633_v34  ;;  %v1417_v62 = vadd.f32 %v1407_v55, %v1395_v60  ;;  %vm1705_vm9 = vweird.f32 %v2301_v53 }
 0x15a   : > { %v1697_v49 = vsel %vm1694_vm8, %v1696_v54, %v1692_v57  ;;  %v1634_v61 = vadd.f32 1.0, %v2303_v56  ;;  %2304 = vpow2.f32 %v2196_v59  ;;  %vm1706_vm11 = vmor %vm1704_vm10, %vm1705_vm9 }
 0x15b   : > { %1792 = vst.msk [vmem:[%s2676_s6 + $0x18] sm:$0xff] %vm273_vm7, %v1697_v49  ;;  %v1701_v0 = vsub.f32 1.0, %v1700_v58  ;;  %v1553_v1 = vld [vmem:[#allocation2 + $0x40] sm:$0xff] }
 0x15c   : > { %2306 = vrcp.f32 %v1634_v61  ;;  %1427 = vst.msk [vmem:[#allocation2 + $0x48] sm:$0xff] %vm273_vm7, %v1417_v62  ;;  %v1563_v6 = vadd.f32 %v1553_v1, %v1540_v63  ;;  %v1725_v21 = vand.u32 2147483648, %v1634_v61  ;;  %v1723_v24 = vand.u32 2147483647, %v1634_v61 }
 0x15d   : > { %v1702_v4 = vmul.f32 %v2301_v53, %v1701_v0  ;;  %v1582_v7 = vld [vmem:[#allocation2 + $0x38] sm:$0xff]  ;;  %vm1719_vm14 = vweird.f32 %v1634_v61 }
 0x15e   : > { %v1596_v3 = vadd.f32 %v2640_v45, %v1582_v7  ;;  %1573 = vst.msk [vmem:[#allocation2 + $0x40] sm:$0xff] %vm273_vm7, %v1563_v6  ;;  %v1726_v30 = vor.u32 1.1754944e-38, %v1725_v21  ;;  %vm1724_vm0 = vcmp.eq.f32.partialorder %v1723_v24, 8.507059e+37 }
 0x15f   : > { %v1703_v8 = vadd.f32 %v2301_v53, %v1702_v4 }
 0x160   : > { %v2305_v10 = vpop.eup %2304  ;;  %v2197_v12 = vmul.f32 -1.442695, %v1596_v3 }
 0x161   : > { %v1707_v11 = vsel %vm1706_vm11, %v2301_v53, %v1703_v8  ;;  %v1635_v15 = vadd.f32 1.0, %v2305_v10 }
 0x162   : > { %v2307_v13 = vpop.eup %2306  ;;  %v1712_v14 = vsel %vm1709_vm12, %v1711_v9, %v1707_v11  ;;  %2308 = vpow2.f32 %v2197_v12 }
 0x163   : > { %1793 = vst.msk [vmem:[%s2676_s6 + $0x20] sm:$0xff] %vm273_vm7, %v1712_v14  ;;  %v1715_v16 = vmul.f32 %v2307_v13, %v1634_v61  ;;  %v1554_v17 = vld [vmem:[#allocation2 + $0x48] sm:$0xff]  ;;  %2310 = vrcp.f32 %v1635_v15  ;;  %vm1720_vm13 = vweird.f32 %v2307_v13  ;;  %v1740_v36 = vand.u32 2147483648, %v1635_v15 }
 0x164   : > { %v1564_v20 = vadd.f32 %v1554_v17, %v1542_v18  ;;  %vm1721_vm15 = vmor %vm1719_vm14, %vm1720_vm13  ;;  %v1738_v39 = vand.u32 2147483647, %v1635_v15  ;;  %vm1734_vm2 = vweird.f32 %v1635_v15 }
 0x165   : > { %v1716_v19 = vsub.f32 1.0, %v1715_v16  ;;  %v1583_v22 = vld [vmem:[#allocation2 + $0x40] sm:$0xff]  ;;  %v1741_v46 = vor.u32 1.1754944e-38, %v1740_v36 }
 0x166   : > { %v1597_v25 = vadd.f32 %v2640_v45, %v1583_v22  ;;  %1574 = vst.msk [vmem:[#allocation2 + $0x48] sm:$0xff] %vm273_vm7, %v1564_v20  ;;  %vm1739_vm4 = vcmp.eq.f32.partialorder %v1738_v39, 8.507059e+37 }
 0x167   : > { %v1717_v23 = vmul.f32 %v2307_v13, %v1716_v19 }
 0x168   : > { %v2309_v26 = vpop.eup %2308  ;;  %v2198_v28 = vmul.f32 -1.442695, %v1597_v25 }
 0x169   : > { %v1718_v27 = vadd.f32 %v2307_v13, %v1717_v23  ;;  %v2311_v29 = vpop.eup %2310  ;;  %v1636_v31 = vadd.f32 1.0, %v2309_v26 }
 0x16a   : > { %v1730_v33 = vmul.f32 %v2311_v29, %v1635_v15  ;;  %2312 = vpow2.f32 %v2198_v28  ;;  %vm1735_vm1 = vweird.f32 %v2311_v29 }
 0x16b   : > { %v1722_v32 = vsel %vm1721_vm15, %v2307_v13, %v1718_v27  ;;  %2314 = vrcp.f32 %v1636_v31  ;;  %vm1736_vm3 = vmor %vm1734_vm2, %vm1735_vm1  ;;  %v1755_v53 = vand.u32 2147483648, %v1636_v31  ;;  %v1753_v54 = vand.u32 2147483647, %v1636_v31 }
 0x16c   : > { %v1727_v34 = vsel %vm1724_vm0, %v1726_v30, %v1722_v32  ;;  %v1731_v35 = vsub.f32 1.0, %v1730_v33  ;;  %vm1749_vm6 = vweird.f32 %v1636_v31 }
 0x16d   : > { %1794 = vst.msk [vmem:[%s2676_s6 + $0x28] sm:$0xff] %vm273_vm7, %v1727_v34  ;;  %v1584_v37 = vld [vmem:[#allocation2 + $0x48] sm:$0xff]  ;;  %v1756_v58 = vor.u32 1.1754944e-38, %v1755_v53  ;;  %vm1754_vm9 = vcmp.eq.f32.partialorder %v1753_v54, 8.507059e+37 }
 0x16e   : > { %v1732_v38 = vmul.f32 %v2311_v29, %v1731_v35  ;;  %v1598_v40 = vadd.f32 %v2640_v45, %v1584_v37 }
 0x170   : > { %v2313_v41 = vpop.eup %2312  ;;  %v1733_v42 = vadd.f32 %v2311_v29, %v1732_v38  ;;  %v2199_v43 = vmul.f32 -1.442695, %v1598_v40 }
 0x171   : > { %v2315_v44 = vpop.eup %2314  ;;  %v1637_v47 = vadd.f32 1.0, %v2313_v41 }
 0x172   : > { %v1737_v48 = vsel %vm1736_vm3, %v2311_v29, %v1733_v42  ;;  %v1745_v50 = vmul.f32 %v2315_v44, %v1636_v31  ;;  %2316 = vpow2.f32 %v2199_v43  ;;  %vm1750_vm5 = vweird.f32 %v2315_v44 }
 0x173   : > { %v1742_v51 = vsel %vm1739_vm4, %v1741_v46, %v1737_v48  ;;  %2318 = vrcp.f32 %v1637_v47  ;;  %vm1751_vm8 = vmor %vm1749_vm6, %vm1750_vm5  ;;  %v1770_v63 = vand.u32 2147483648, %v1637_v47  ;;  %v1768_v1 = vand.u32 2147483647, %v1637_v47 }
 0x174   : > { %1795 = vst.msk [vmem:[%s2676_s6 + $0x30] sm:$0xff] %vm273_vm7, %v1742_v51  ;;  %v1746_v52 = vsub.f32 1.0, %v1745_v50  ;;  %vm1764_vm11 = vweird.f32 %v1637_v47 }
 0x175   : > { %v1771_v5 = vor.u32 1.1754944e-38, %v1770_v63  ;;  %vm1769_vm13 = vcmp.eq.f32.partialorder %v1768_v1, 8.507059e+37 }
 0x176   : > { %v1747_v45 = vmul.f32 %v2315_v44, %v1746_v52 }
 0x178   : > { %v2317_v55 = vpop.eup %2316  ;;  %v1748_v56 = vadd.f32 %v2315_v44, %v1747_v45 }
 0x179   : > { %v2319_v57 = vpop.eup %2318  ;;  %v1638_v59 = vadd.f32 1.0, %v2317_v55 }
 0x17a   : > { %v1752_v60 = vsel %vm1751_vm8, %v2315_v44, %v1748_v56  ;;  %v1760_v49 = vmul.f32 %v2319_v57, %v1637_v47  ;;  %vm1765_vm10 = vweird.f32 %v2319_v57 }
 0x17b   : > { %v1757_v61 = vsel %vm1754_vm9, %v1756_v58, %v1752_v60  ;;  %2320 = vrcp.f32 %v1638_v59  ;;  %vm1766_vm12 = vmor %vm1764_vm11, %vm1765_vm10  ;;  %v1785_v9 = vand.u32 2147483648, %v1638_v59  ;;  %v1783_v11 = vand.u32 2147483647, %v1638_v59 }
 0x17c   : > { %1796 = vst.msk [vmem:[%s2676_s6 + $0x38] sm:$0xff] %vm273_vm7, %v1757_v61  ;;  %v1761_v62 = vsub.f32 1.0, %v1760_v49  ;;  %vm1779_vm15 = vweird.f32 %v1638_v59 }
 0x17d   : > { %v1786_v13 = vor.u32 1.1754944e-38, %v1785_v9  ;;  %vm1784_vm1 = vcmp.eq.f32.partialorder %v1783_v11, 8.507059e+37 }
 0x17e   : > { %v1762_v0 = vmul.f32 %v2319_v57, %v1761_v62 }
 0x180   : > { %v1763_v2 = vadd.f32 %v2319_v57, %v1762_v0 }
 0x181   : > { %v2321_v4 = vpop.eup %2320 }
 0x182   : > { %v1767_v6 = vsel %vm1766_vm12, %v2319_v57, %v1763_v2  ;;  %v1775_v7 = vmul.f32 %v2321_v4, %v1638_v59  ;;  %vm1780_vm14 = vweird.f32 %v2321_v4 }
 0x183   : > { %v1772_v8 = vsel %vm1769_vm13, %v1771_v5, %v1767_v6  ;;  %vm1781_vm0 = vmor %vm1779_vm15, %vm1780_vm14 }
 0x184   : > { %1797 = vst.msk [vmem:[%s2676_s6 + $0x40] sm:$0xff] %vm273_vm7, %v1772_v8  ;;  %v1776_v3 = vsub.f32 1.0, %v1775_v7 }
 0x186   : > { %v1777_v10 = vmul.f32 %v2321_v4, %v1776_v3 }
 0x188   : > { %v1778_v12 = vadd.f32 %v2321_v4, %v1777_v10 }
 0x18a   : > { %v1782_v14 = vsel %vm1781_vm0, %v2321_v4, %v1778_v12 }
 0x18b   : > { %v1787_v15 = vsel %vm1784_vm1, %v1786_v13, %v1782_v14 }
 0x18c   : > { %1798 = vst.msk [vmem:[%s2676_s6 + $0x48] sm:$0xff] %vm273_vm7, %v1787_v15 }
 0x18d PF: > { %s13_s12 = sadd.s32 1, %s2328_s12  }
 0x18e   : > { %p10_p4 = scmp.ge.s32.totalorder %s13_s12, 4  }
 0x190   :  { %12 = sbr.rel (!%p10_p4) target bundleno = 1 (0x1), region = 70 }

</bundles_post_ra>
